<compile_context>
chip_gen: v7x
topology: tpu7x:2x2x1
jax: 0.10.0
libtpu: 0.0.40
codegen_flags: <defaults>
</compile_context>

<pallas_src>
import functools

import jax
import jax.numpy as jnp
from jax.experimental import pallas as pl
from jax.experimental.pallas import tpu as pltpu

_CIN = 8                    # coordinate dim padded 3 -> 8
_D1, _D2, _D3 = 128, 256, 512


def _round_up(x, m):
    return ((x + m - 1) // m) * m


# --------------------------------------------------------------------------- #
# Kernel
# --------------------------------------------------------------------------- #
def _encoder_kernel(pts_ref, w1_ref, b1_ref, w2_ref, b2_ref,
                    w3g_ref, w3l_ref, b3_ref, w4_ref, b4_ref,
                    out_ref, f_ref, *, n_true, n_chunk):
    TG, Np, CIN = pts_ref.shape
    M = TG * Np
    C = out_ref.shape[-1]
    NC = n_chunk
    num_chunks = Np // NC

    # ---- stage 1: Conv1d(3,128,1)+BN(folded)+ReLU, Conv1d(128,256,1) --------
    x = pts_ref[...].reshape(M, CIN)                                  # bf16
    h1 = jnp.dot(x, w1_ref[...],
                 preferred_element_type=jnp.float32) + b1_ref[...]
    h1 = jnp.maximum(h1, 0.0)                                         # (M,128) f32
    f = jnp.dot(h1.astype(jnp.bfloat16), w2_ref[...],
                preferred_element_type=jnp.float32) + b2_ref[...]     # (M,256) f32
    fb = f.astype(jnp.bfloat16)
    f3 = fb.reshape(TG, Np, _D2)
    f_ref[...] = f3                                                   # bf16 scratch

    # ---- per-group global max over (valid) points ----------------------------
    if Np != n_true:
        valid = jax.lax.broadcasted_iota(jnp.int32, (1, Np, 1), 1) < n_true
        f3 = jnp.where(valid, f3, jnp.array(-jnp.inf, f3.dtype))
    fg = jnp.max(f3, axis=1)                                          # (TG,256) bf16

    # second_conv[0] with the concat fused: [global|local] @ w3 = fg@w3g + f@w3l
    g = jnp.dot(fg, w3g_ref[...],
                preferred_element_type=jnp.float32) + b3_ref[...]     # (TG,512) f32

    # ---- stage 2: N-chunked, online max straight into the output block -------
    out_ref[...] = jnp.full(out_ref.shape, -jnp.inf, out_ref.dtype)

    def chunk_step(c, start):
        fc = f_ref[:, pl.ds(start, NC), :]                            # (TG,NC,256) bf16
        hl = jnp.dot(fc.reshape(TG * NC, _D2), w3l_ref[...],
                     preferred_element_type=jnp.float32)              # (TG*NC,512) f32
        # fused bias-broadcast + ReLU + bf16 cast (single bf16 copy of h2)
        h2 = jnp.maximum(hl.reshape(TG, NC, _D3) + g[:, None, :],
                         0.0).astype(jnp.bfloat16)
        o = jnp.dot(h2.reshape(TG * NC, _D3), w4_ref[...],
                    preferred_element_type=jnp.float32)               # (TG*NC,C) f32
        o3 = o.reshape(TG, NC, C)
        if Np != n_true:
            rid = c * NC + jax.lax.broadcasted_iota(jnp.int32, (1, NC, 1), 1)
            o3 = jnp.where(rid < n_true, o3, -jnp.inf)
        out_ref[...] = jnp.maximum(out_ref[...], jnp.max(o3, axis=1))

    if num_chunks == 1:
        chunk_step(0, 0)
    else:
        def body(c, carry):
            chunk_step(c, pl.multiple_of(c * NC, NC))
            return carry
        jax.lax.fori_loop(0, num_chunks, body, 0)

    # final bias (commutes with the max over points)
    out_ref[...] = out_ref[...] + b4_ref[...]


# --------------------------------------------------------------------------- #
# Tiling / VMEM planning (generation aware)
# --------------------------------------------------------------------------- #
def _vmem_capacity_bytes():
    try:
        info = pltpu.get_tpu_info()
        cap = int(getattr(info, "vmem_capacity_bytes", 0) or 0)
        if cap > 0:
            return cap
    except Exception:
        pass
    return 64 * 1024 * 1024          # conservative (v7x-sized) fallback


def _chunk_for(tg, n, c, budget):
    """N-chunk size for the second stage, and the padded point count."""
    c_pad = _round_up(c, 128)
    per_row = tg * (_D3 * 4 + _D3 * 2 + c_pad * 4 + _D2 * 2)   # hl + h2(bf16) + o + fc
    chunk_budget = min(max(budget // 3, per_row * 8), 6 << 20)
    max_rows = max(8, chunk_budget // max(per_row, 1))
    if max_rows >= n:
        return n, n                                  # single chunk, no padding
    nc = max(16, (max_rows // 16) * 16)              # bf16-sublane-aligned slices
    return nc, _round_up(n, nc)


def _vmem_estimate(tg, np_, nc, c):
    """Conservative per-grid-step VMEM bytes (sums, incl. lane-padded blocks)."""
    c_pad = _round_up(c, 128)
    m = tg * np_
    pts_blk = tg * _round_up(np_, 16) * 128 * 2      # bf16, 8-wide minor dim pads to 128 lanes
    out_blk = tg * c_pad * 4
    io = 2 * (pts_blk + out_blk)                     # double-buffered pipeline blocks
    weights = 2 * ((_CIN * _D1 + _D1 * _D2 + 2 * _D2 * _D3 + _D3 * c_pad) * 2
                   + (_D1 + _D2 + _D3 + c_pad) * 4)  # constant-map blocks, double-buffered
    stage1 = m * (128 * 2 + _D1 * 4 + _D1 * 2 + _D2 * 4 + _D2 * 2)
    f_scr = tg * _round_up(np_, 16) * _D2 * 2
    stage2 = tg * nc * (_D3 * 4 + _D3 * 2 + c_pad * 4 + _D2 * 2)
    return io + weights + stage1 + f_scr + stage2 + (2 << 20)


def _plan_tiles(bg, n, c):
    cap = _vmem_capacity_bytes()
    budget = int(cap * 0.22)         # ~28 MiB on v5e/v6e (128 MiB), ~14 MiB on v7x (64 MiB)
    vmem_limit = int(cap * 0.82)     # ~105 MiB on v5e/v6e, ~52 MiB on v7x
    bg8 = _round_up(bg, 8)
    # keep >= 2 grid steps when there is enough work so both v7x TCs are used
    tg_cap = bg8 if bg8 <= 8 else min(_round_up((bg8 + 1) // 2, 8), 512)
    plan = None
    tg = tg_cap
    while tg >= 8:
        nc, np_ = _chunk_for(tg, n, c, budget)
        if _vmem_estimate(tg, np_, nc, c) <= budget:
            plan = (tg, nc, np_)
            break
        tg -= 8
    if plan is None:                 # fall back to the smallest tile
        nc, np_ = _chunk_for(8, n, c, budget)
        plan = (8, nc, np_)
    return plan[0], plan[1], plan[2], vmem_limit


# --------------------------------------------------------------------------- #
# Wrapper
# --------------------------------------------------------------------------- #
def encoder_forward(point_groups, params, *, encoder_channel):
    """point_groups: (B, G, N, 3) -> (B, G, encoder_channel)."""
    B, G, N, _ = point_groups.shape
    BG = B * G
    C = encoder_channel
    w1, b1, w2, b2, w3g, w3l, b3, w4, b4 = params

    TG, NC, Np, vmem_limit = _plan_tiles(BG, N, C)
    BGp = _round_up(BG, TG)

    pts = point_groups.reshape(BG, N, 3).astype(jnp.float32)
    # pad groups (sliced off afterwards), points (masked in-kernel) and coords (zeros)
    pts = jnp.pad(pts, ((0, BGp - BG), (0, Np - N), (0, _CIN - 3)))
    pts = pts.astype(jnp.bfloat16)

    grid = (BGp // TG,)

    def full(a):
        nd = a.ndim
        return pl.BlockSpec(a.shape, lambda i, _nd=nd: (0,) * _nd)

    kernel = functools.partial(_encoder_kernel, n_true=N, n_chunk=NC)

    out = pl.pallas_call(
        kernel,
        out_shape=jax.ShapeDtypeStruct((BGp, C), jnp.float32),
        grid=grid,
        in_specs=[
            pl.BlockSpec((TG, Np, _CIN), lambda i: (i, 0, 0)),   # points
            full(w1), full(b1),
            full(w2), full(b2),
            full(w3g), full(w3l), full(b3),
            full(w4), full(b4),
        ],
        out_specs=pl.BlockSpec((TG, C), lambda i: (i, 0)),
        scratch_shapes=[pltpu.VMEM((TG, Np, _D2), jnp.bfloat16)],
        compiler_params=pltpu.CompilerParams(
            dimension_semantics=("parallel",),
            vmem_limit_bytes=vmem_limit),
    )(pts, w1, b1, w2, b2, w3g, w3l, b3, w4, b4)

    return out[:BG].reshape(B, G, C)


# --------------------------------------------------------------------------- #
# Parameters (eval-mode BN folded) and pure-JAX reference
# --------------------------------------------------------------------------- #
def _fold_bn(w, b, gamma, beta, mean, var, eps=1e-5):
    s = gamma / jnp.sqrt(var + eps)
    return w * s[None, :], b * s + beta - mean * s


def make_params(key, encoder_channel):
    ks = jax.random.split(key, 16)
    C = encoder_channel
    # conv weights stored as (in, out); PyTorch Conv1d(k=1) weight is (out, in, 1).
    w1 = jax.random.normal(ks[0], (3, 128), jnp.float32) * 0.1
    b1 = jax.random.normal(ks[1], (128,), jnp.float32) * 0.1
    g1 = 1.0 + 0.1 * jax.random.normal(ks[2], (128,), jnp.float32)
    be1 = 0.1 * jax.random.normal(ks[3], (128,), jnp.float32)
    m1 = 0.1 * jax.random.normal(ks[4], (128,), jnp.float32)
    v1 = 0.5 + jax.random.uniform(ks[5], (128,), jnp.float32)

    w2 = jax.random.normal(ks[6], (128, 256), jnp.float32) * 0.05
    b2 = jax.random.normal(ks[7], (256,), jnp.float32) * 0.1

    w3 = jax.random.normal(ks[8], (512, 512), jnp.float32) * 0.05
    b3 = jax.random.normal(ks[9], (512,), jnp.float32) * 0.1
    g2 = 1.0 + 0.1 * jax.random.normal(ks[10], (512,), jnp.float32)
    be2 = 0.1 * jax.random.normal(ks[11], (512,), jnp.float32)
    m2 = 0.1 * jax.random.normal(ks[12], (512,), jnp.float32)
    v2 = 0.5 + jax.random.uniform(ks[13], (512,), jnp.float32)

    w4 = jax.random.normal(ks[14], (512, C), jnp.float32) * 0.05
    b4 = jax.random.normal(ks[15], (C,), jnp.float32) * 0.1

    # eval-mode BatchNorm folded into the preceding conv.
    w1f, b1f = _fold_bn(w1, b1, g1, be1, m1, v1)
    w3f, b3f = _fold_bn(w3, b3, g2, be2, m2, v2)

    # coordinate dim padded 3 -> 8 with zero weight rows (wrapper pads points too)
    w1p = jnp.zeros((_CIN, 128), jnp.float32).at[:3].set(w1f)

    # concat order is [global, local]: rows 0:256 of w3 act on the GLOBAL feature.
    w3g, w3l = w3f[:256, :], w3f[256:, :]

    bf = jnp.bfloat16
    return (w1p.astype(bf), b1f.reshape(1, 128).astype(jnp.float32),
            w2.astype(bf), b2.reshape(1, 256).astype(jnp.float32),
            w3g.astype(bf), w3l.astype(bf),
            b3f.reshape(1, 512).astype(jnp.float32),
            w4.astype(bf), b4.reshape(1, C).astype(jnp.float32))


def encoder_reference(point_groups, params, *, encoder_channel):
    """Pure-JAX reference with the explicit broadcast+concat formulation
    (checks the w3 split) and the same bf16 matmul inputs as the kernel."""
    B, G, N, _ = point_groups.shape
    w1, b1, w2, b2, w3g, w3l, b3, w4, b4 = params
    x = point_groups.reshape(B * G, N, 3).astype(jnp.float32)
    x = jnp.pad(x, ((0, 0), (0, 0), (0, _CIN - 3))).astype(jnp.bfloat16)
    h1 = jnp.maximum(jnp.einsum('bnc,cd->bnd', x, w1,
                                preferred_element_type=jnp.float32) + b1, 0.0)
    f = jnp.einsum('bnd,de->bne', h1.astype(jnp.bfloat16), w2,
                   preferred_element_type=jnp.float32) + b2
    fg = jnp.max(f, axis=1, keepdims=True)
    cat = jnp.concatenate([jnp.broadcast_to(fg, f.shape), f], axis=-1)
    w3 = jnp.concatenate([w3g, w3l], axis=0)
    h2 = jnp.maximum(jnp.einsum('bnc,cd->bnd', cat.astype(jnp.bfloat16), w3,
                                preferred_element_type=jnp.float32) + b3, 0.0)
    o = jnp.einsum('bnd,de->bne', h2.astype(jnp.bfloat16), w4,
                   preferred_element_type=jnp.float32) + b4
    return jnp.max(o, axis=1).reshape(B, G, encoder_channel)


if __name__ == "__main__":
    B, G, N = 2, 4, 32
    ENCODER_CHANNEL = 256

    key = jax.random.PRNGKey(0)
    k_pts, k_par = jax.random.split(key)
    point_groups = jax.random.normal(k_pts, (B, G, N, 3), jnp.float32)
    params = make_params(k_par, ENCODER_CHANNEL)

    fwd = jax.jit(functools.partial(encoder_forward,
                                    encoder_channel=ENCODER_CHANNEL))
    out = fwd(point_groups, params)
    jax.block_until_ready(out)

    ref = encoder_reference(point_groups, params,
                            encoder_channel=ENCODER_CHANNEL)
    assert out.shape == (B, G, ENCODER_CHANNEL), out.shape
    max_err = float(jnp.max(jnp.abs(out - ref)))
    assert jnp.allclose(out, ref, atol=5e-3, rtol=5e-3), max_err

    print("KERNEL_OK")
</pallas_src>

<mosaic_0001>
module attributes {stable_mosaic.version = 11 : i64} {
  func.func @_encoder_kernel(%arg0: i32, %arg1: memref<8x32x8xbf16, #tpu.memory_space<vmem>>, %arg2: memref<8x128xbf16, #tpu.memory_space<vmem>>, %arg3: memref<1x128xf32, #tpu.memory_space<vmem>>, %arg4: memref<128x256xbf16, #tpu.memory_space<vmem>>, %arg5: memref<1x256xf32, #tpu.memory_space<vmem>>, %arg6: memref<256x512xbf16, #tpu.memory_space<vmem>>, %arg7: memref<256x512xbf16, #tpu.memory_space<vmem>>, %arg8: memref<1x512xf32, #tpu.memory_space<vmem>>, %arg9: memref<512x256xbf16, #tpu.memory_space<vmem>>, %arg10: memref<1x256xf32, #tpu.memory_space<vmem>>, %arg11: memref<8x256xf32, #tpu.memory_space<vmem>>, %arg12: memref<8x32x256xbf16, #tpu.memory_space<vmem>>) attributes {dimension_semantics = [#tpu.dimension_semantics<parallel>], iteration_bounds = array<i64: 1>, scalar_prefetch = 0 : i64, scratch_operands = 1 : i64, tpu.core_type = #tpu.core_type<tc>, window_params = [{transform_indices = @transform_0, window_bounds = array<i64: 8, 32, 8>}, {pipeline_mode = #tpu.pipeline_mode<synchronous>, transform_indices = @transform_1, window_bounds = array<i64: 8, 128>}, {pipeline_mode = #tpu.pipeline_mode<synchronous>, transform_indices = @transform_2, window_bounds = array<i64: 1, 128>}, {pipeline_mode = #tpu.pipeline_mode<synchronous>, transform_indices = @transform_3, window_bounds = array<i64: 128, 256>}, {pipeline_mode = #tpu.pipeline_mode<synchronous>, transform_indices = @transform_4, window_bounds = array<i64: 1, 256>}, {pipeline_mode = #tpu.pipeline_mode<synchronous>, transform_indices = @transform_5, window_bounds = array<i64: 256, 512>}, {pipeline_mode = #tpu.pipeline_mode<synchronous>, transform_indices = @transform_6, window_bounds = array<i64: 256, 512>}, {pipeline_mode = #tpu.pipeline_mode<synchronous>, transform_indices = @transform_7, window_bounds = array<i64: 1, 512>}, {pipeline_mode = #tpu.pipeline_mode<synchronous>, transform_indices = @transform_8, window_bounds = array<i64: 512, 256>}, {pipeline_mode = #tpu.pipeline_mode<synchronous>, transform_indices = @transform_9, window_bounds = array<i64: 1, 256>}, {transform_indices = @transform_10, window_bounds = array<i64: 8, 256>}]} {
    %c0 = arith.constant 0 : index
    %c0_0 = arith.constant 0 : index
    %c0_1 = arith.constant 0 : index
    %0 = vector.load %arg1[%c0, %c0_0, %c0_1] : memref<8x32x8xbf16, #tpu.memory_space<vmem>>, vector<8x32x8xbf16>
    %1 = vector.shape_cast %0 : vector<8x32x8xbf16> to vector<256x8xbf16>
    %c0_2 = arith.constant 0 : index
    %c0_3 = arith.constant 0 : index
    %2 = vector.load %arg2[%c0_2, %c0_3] : memref<8x128xbf16, #tpu.memory_space<vmem>>, vector<8x128xbf16>
    %cst = arith.constant dense<0.000000e+00> : vector<256x128xf32>
    %3 = tpu.matmul %1, %2, %cst {dimension_numbers = #tpu.dot_dimension_numbers<[1], [0], [0], [1], [0, 0, 1, 1], [], []>} : vector<256x8xbf16>, vector<8x128xbf16>, vector<256x128xf32> -> vector<256x128xf32>
    %c0_4 = arith.constant 0 : index
    %c0_5 = arith.constant 0 : index
    %4 = vector.load %arg3[%c0_4, %c0_5] : memref<1x128xf32, #tpu.memory_space<vmem>>, vector<1x128xf32>
    %5 = vector.broadcast %4 : vector<1x128xf32> to vector<256x128xf32>
    %6 = arith.addf %3, %5 : vector<256x128xf32>
    %cst_6 = arith.constant 0.000000e+00 : f32
    %7 = vector.broadcast %cst_6 : f32 to vector<256x128xf32>
    %8 = arith.maximumf %6, %7 : vector<256x128xf32>
    %9 = arith.truncf %8 : vector<256x128xf32> to vector<256x128xbf16>
    %c0_7 = arith.constant 0 : index
    %c0_8 = arith.constant 0 : index
    %10 = vector.load %arg4[%c0_7, %c0_8] : memref<128x256xbf16, #tpu.memory_space<vmem>>, vector<128x256xbf16>
    %cst_9 = arith.constant dense<0.000000e+00> : vector<256x256xf32>
    %11 = tpu.matmul %9, %10, %cst_9 {dimension_numbers = #tpu.dot_dimension_numbers<[1], [0], [0], [1], [0, 0, 1, 1], [], []>} : vector<256x128xbf16>, vector<128x256xbf16>, vector<256x256xf32> -> vector<256x256xf32>
    %c0_10 = arith.constant 0 : index
    %c0_11 = arith.constant 0 : index
    %12 = vector.load %arg5[%c0_10, %c0_11] : memref<1x256xf32, #tpu.memory_space<vmem>>, vector<1x256xf32>
    %13 = vector.broadcast %12 : vector<1x256xf32> to vector<256x256xf32>
    %14 = arith.addf %11, %13 : vector<256x256xf32>
    %15 = arith.truncf %14 : vector<256x256xf32> to vector<256x256xbf16>
    %16 = vector.shape_cast %15 : vector<256x256xbf16> to vector<8x32x256xbf16>
    %c0_12 = arith.constant 0 : index
    %c0_13 = arith.constant 0 : index
    %c0_14 = arith.constant 0 : index
    %17 = vector.load %arg12[%c0_12, %c0_13, %c0_14] : memref<8x32x256xbf16, #tpu.memory_space<vmem>>, vector<8x32x256xbf16>
    tpu.vector_store %arg12[%c0_12, %c0_13, %c0_14], %16 {strides = array<i32>} : memref<8x32x256xbf16, #tpu.memory_space<vmem>>, vector<8x32x256xbf16>,
    %cst_15 = arith.constant dense<0xFF80> : vector<8x256xbf16>
    %18 = vector.multi_reduction <maximumf>, %16, %cst_15 [1] : vector<8x32x256xbf16> to vector<8x256xbf16>
    %c0_16 = arith.constant 0 : index
    %c0_17 = arith.constant 0 : index
    %19 = vector.load %arg6[%c0_16, %c0_17] : memref<256x512xbf16, #tpu.memory_space<vmem>>, vector<256x512xbf16>
    %cst_18 = arith.constant dense<0.000000e+00> : vector<8x512xf32>
    %20 = tpu.matmul %18, %19, %cst_18 {dimension_numbers = #tpu.dot_dimension_numbers<[1], [0], [0], [1], [0, 0, 1, 1], [], []>} : vector<8x256xbf16>, vector<256x512xbf16>, vector<8x512xf32> -> vector<8x512xf32>
    %c0_19 = arith.constant 0 : index
    %c0_20 = arith.constant 0 : index
    %21 = vector.load %arg8[%c0_19, %c0_20] : memref<1x512xf32, #tpu.memory_space<vmem>>, vector<1x512xf32>
    %22 = vector.broadcast %21 : vector<1x512xf32> to vector<8x512xf32>
    %23 = arith.addf %20, %22 : vector<8x512xf32>
    %cst_21 = arith.constant 0xFF800000 : f32
    %24 = vector.broadcast %cst_21 : f32 to vector<8x256xf32>
    %c0_22 = arith.constant 0 : index
    %c0_23 = arith.constant 0 : index
    %25 = vector.load %arg11[%c0_22, %c0_23] : memref<8x256xf32, #tpu.memory_space<vmem>>, vector<8x256xf32>
    tpu.vector_store %arg11[%c0_22, %c0_23], %24 {strides = array<i32>} : memref<8x256xf32, #tpu.memory_space<vmem>>, vector<8x256xf32>,
    %c0_24 = arith.constant 0 : index
    %c0_25 = arith.constant 0 : index
    %c0_26 = arith.constant 0 : index
    %26 = vector.load %arg12[%c0_24, %c0_25, %c0_26] : memref<8x32x256xbf16, #tpu.memory_space<vmem>>, vector<8x32x256xbf16>
    %27 = vector.shape_cast %26 : vector<8x32x256xbf16> to vector<256x256xbf16>
    %c0_27 = arith.constant 0 : index
    %c0_28 = arith.constant 0 : index
    %28 = vector.load %arg7[%c0_27, %c0_28] : memref<256x512xbf16, #tpu.memory_space<vmem>>, vector<256x512xbf16>
    %cst_29 = arith.constant dense<0.000000e+00> : vector<256x512xf32>
    %29 = tpu.matmul %27, %28, %cst_29 {dimension_numbers = #tpu.dot_dimension_numbers<[1], [0], [0], [1], [0, 0, 1, 1], [], []>} : vector<256x256xbf16>, vector<256x512xbf16>, vector<256x512xf32> -> vector<256x512xf32>
    %30 = vector.shape_cast %29 : vector<256x512xf32> to vector<8x32x512xf32>
    %31 = vector.shape_cast %23 : vector<8x512xf32> to vector<8x1x512xf32>
    %32 = vector.broadcast %31 : vector<8x1x512xf32> to vector<8x32x512xf32>
    %33 = arith.addf %30, %32 : vector<8x32x512xf32>
    %cst_30 = arith.constant 0.000000e+00 : f32
    %34 = vector.broadcast %cst_30 : f32 to vector<8x32x512xf32>
    %35 = arith.maximumf %33, %34 : vector<8x32x512xf32>
    %36 = arith.truncf %35 : vector<8x32x512xf32> to vector<8x32x512xbf16>
    %37 = vector.shape_cast %36 : vector<8x32x512xbf16> to vector<256x512xbf16>
    %c0_31 = arith.constant 0 : index
    %c0_32 = arith.constant 0 : index
    %38 = vector.load %arg9[%c0_31, %c0_32] : memref<512x256xbf16, #tpu.memory_space<vmem>>, vector<512x256xbf16>
    %cst_33 = arith.constant dense<0.000000e+00> : vector<256x256xf32>
    %39 = tpu.matmul %37, %38, %cst_33 {dimension_numbers = #tpu.dot_dimension_numbers<[1], [0], [0], [1], [0, 0, 1, 1], [], []>} : vector<256x512xbf16>, vector<512x256xbf16>, vector<256x256xf32> -> vector<256x256xf32>
    %40 = vector.shape_cast %39 : vector<256x256xf32> to vector<8x32x256xf32>
    %c0_34 = arith.constant 0 : index
    %c0_35 = arith.constant 0 : index
    %41 = vector.load %arg11[%c0_34, %c0_35] : memref<8x256xf32, #tpu.memory_space<vmem>>, vector<8x256xf32>
    %cst_36 = arith.constant dense<0xFF800000> : vector<8x256xf32>
    %42 = vector.multi_reduction <maximumf>, %40, %cst_36 [1] : vector<8x32x256xf32> to vector<8x256xf32>
    %43 = arith.maximumf %41, %42 : vector<8x256xf32>
    %c0_37 = arith.constant 0 : index
    %c0_38 = arith.constant 0 : index
    %44 = vector.load %arg11[%c0_37, %c0_38] : memref<8x256xf32, #tpu.memory_space<vmem>>, vector<8x256xf32>
    tpu.vector_store %arg11[%c0_37, %c0_38], %43 {strides = array<i32>} : memref<8x256xf32, #tpu.memory_space<vmem>>, vector<8x256xf32>,
    %c0_39 = arith.constant 0 : index
    %c0_40 = arith.constant 0 : index
    %45 = vector.load %arg11[%c0_39, %c0_40] : memref<8x256xf32, #tpu.memory_space<vmem>>, vector<8x256xf32>
    %c0_41 = arith.constant 0 : index
    %c0_42 = arith.constant 0 : index
    %46 = vector.load %arg10[%c0_41, %c0_42] : memref<1x256xf32, #tpu.memory_space<vmem>>, vector<1x256xf32>
    %47 = vector.broadcast %46 : vector<1x256xf32> to vector<8x256xf32>
    %48 = arith.addf %45, %47 : vector<8x256xf32>
    %c0_43 = arith.constant 0 : index
    %c0_44 = arith.constant 0 : index
    %49 = vector.load %arg11[%c0_43, %c0_44] : memref<8x256xf32, #tpu.memory_space<vmem>>, vector<8x256xf32>
    tpu.vector_store %arg11[%c0_43, %c0_44], %48 {strides = array<i32>} : memref<8x256xf32, #tpu.memory_space<vmem>>, vector<8x256xf32>,
    return
  }
  func.func @transform_0(%arg0: i32) -> (i32, i32, i32) {
    %c0_i32 = arith.constant 0 : i32
    %c0_i32_0 = arith.constant 0 : i32
    %c0_i32_1 = arith.constant 0 : i32
    return %arg0, %c0_i32, %c0_i32_0 : i32, i32, i32
  }
  func.func @transform_1(%arg0: i32) -> (i32, i32) {
    %c0_i32 = arith.constant 0 : i32
    %c0_i32_0 = arith.constant 0 : i32
    %c0_i32_1 = arith.constant 0 : i32
    return %c0_i32, %c0_i32_0 : i32, i32
  }
  func.func @transform_2(%arg0: i32) -> (i32, i32) {
    %c0_i32 = arith.constant 0 : i32
    %c0_i32_0 = arith.constant 0 : i32
    %c0_i32_1 = arith.constant 0 : i32
    return %c0_i32, %c0_i32_0 : i32, i32
  }
  func.func @transform_3(%arg0: i32) -> (i32, i32) {
    %c0_i32 = arith.constant 0 : i32
    %c0_i32_0 = arith.constant 0 : i32
    %c0_i32_1 = arith.constant 0 : i32
    return %c0_i32, %c0_i32_0 : i32, i32
  }
  func.func @transform_4(%arg0: i32) -> (i32, i32) {
    %c0_i32 = arith.constant 0 : i32
    %c0_i32_0 = arith.constant 0 : i32
    %c0_i32_1 = arith.constant 0 : i32
    return %c0_i32, %c0_i32_0 : i32, i32
  }
  func.func @transform_5(%arg0: i32) -> (i32, i32) {
    %c0_i32 = arith.constant 0 : i32
    %c0_i32_0 = arith.constant 0 : i32
    %c0_i32_1 = arith.constant 0 : i32
    return %c0_i32, %c0_i32_0 : i32, i32
  }
  func.func @transform_6(%arg0: i32) -> (i32, i32) {
    %c0_i32 = arith.constant 0 : i32
    %c0_i32_0 = arith.constant 0 : i32
    %c0_i32_1 = arith.constant 0 : i32
    return %c0_i32, %c0_i32_0 : i32, i32
  }
  func.func @transform_7(%arg0: i32) -> (i32, i32) {
    %c0_i32 = arith.constant 0 : i32
    %c0_i32_0 = arith.constant 0 : i32
    %c0_i32_1 = arith.constant 0 : i32
    return %c0_i32, %c0_i32_0 : i32, i32
  }
  func.func @transform_8(%arg0: i32) -> (i32, i32) {
    %c0_i32 = arith.constant 0 : i32
    %c0_i32_0 = arith.constant 0 : i32
    %c0_i32_1 = arith.constant 0 : i32
    return %c0_i32, %c0_i32_0 : i32, i32
  }
  func.func @transform_9(%arg0: i32) -> (i32, i32) {
    %c0_i32 = arith.constant 0 : i32
    %c0_i32_0 = arith.constant 0 : i32
    %c0_i32_1 = arith.constant 0 : i32
    return %c0_i32, %c0_i32_0 : i32, i32
  }
  func.func @transform_10(%arg0: i32) -> (i32, i32) {
    %c0_i32 = arith.constant 0 : i32
    %c0_i32_0 = arith.constant 0 : i32
    return %arg0, %c0_i32 : i32, i32
  }
}

</mosaic_0001>

<bundles_post_ra>
// kernel: encoder_forward.1
= control target key start
LH: loop header
LB: loop body
LE: loop exit
PB: predicated region body
PF: predicated region fallthrough
CT: control target
= control target key end

     0   :  { %15 = vsyncpa [#allocation4], 0  ;;  %s5927_s0 = inlined_call_operand.vmem [shape: bf16[8,32,8], index: 0, kind: input, shape index: {}]   ;;  %s5928_s1 = inlined_call_operand.vmem [shape: bf16[8,128], index: 1, kind: input, shape index: {}]   ;;  %s5929_s2 = inlined_call_operand.vmem [shape: f32[1,128], index: 2, kind: input, shape index: {}]   ;;  %s5930_s3 = inlined_call_operand.vmem [shape: bf16[128,256], index: 3, kind: input, shape index: {}]   ;;  %s5931_s4 = inlined_call_operand.vmem [shape: f32[1,256], index: 4, kind: input, shape index: {}]   ;;  %s5932_s5 = inlined_call_operand.hbm [shape: bf16[256,512], index: 5, kind: input, shape index: {}]   ;;  %s5933_s6 = inlined_call_operand.hbm [shape: bf16[256,512], index: 6, kind: input, shape index: {}]   ;;  %s5934_s7 = inlined_call_operand.vmem [shape: f32[1,512], index: 7, kind: input, shape index: {}]   ;;  %s5935_s8 = inlined_call_operand.hbm [shape: bf16[512,256], index: 8, kind: input, shape index: {}]   ;;  %s5936_s9 = inlined_call_operand.vmem [shape: f32[1,256], index: 9, kind: input, shape index: {}]   ;;  %s5937_s10 = inlined_call_operand.vmem [shape: f32[8,256], index: 10, kind: output, shape index: {}]  }
   0x1   :  { %16 = vsyncpa [#allocation6], 0  ;;  %s4674_s13 = smov [#allocation5]   ;;  %s4675_s15 = smov [#allocation3]  }
   0x2   :  { %s44_s14 = sshll.u32 %s4674_s13, 4  ;;  %s32_s16 = sshll.u32 %s4675_s15, 4  ;;  %s45_s14 = int_to_ptr.vmem [resolvable:$true] %s44_s14  ;;  %s4738_s16 = int_to_ptr.vmem [resolvable:$true] %s32_s16 }
   0x3   :  { %s4604_s19 = scalar_lea.hbm %s5933_s6, 8192 }
   0x4   :  { %p4605_p0 = scmp.ne.s32.totalorder %s5933_s6, %s4604_s19  ;;  %p4608_p1 = scmp.lt.u32.totalorder %s4604_s19, %s5933_s6 }
   0x6   :  { %p4610_p2 = pnand %p4608_p1, %p4605_p0 }
   0x8   :  { %4613 = shalt.err (!%p4610_p2)
}
   0x9   :  { %s4614_s24 = scalar_lea.vmem %s45_s14, 8192  ;;  %p4619_p4 = scmp.lt.s32.totalorder %s45_s14, %s45_s14 }
   0xa   :  { %p4615_p3 = scmp.ne.s32.totalorder %s45_s14, %s4614_s24  ;;  %p4620_p5 = scmp.lt.s32.totalorder %s4614_s24, %s4614_s24 }
   0xc   :  { %p4621_p6 = por %p4620_p5, %p4619_p4 }
   0xe   :  { %p4622_p7 = pnand %p4621_p6, %p4615_p3 }
  0x10   :  { %4625 = shalt.err (!%p4622_p7)
}
  0x11   :  { %s4676_s25 = smov 256   ;;  %s4677_s26 = smov 16  }
  0x12   :  { %50 = dma.hbm_to_vmem [thread:$0]  %s5933_s6, 8192, %s45_s14, [#allocation6], %s4676_s25, %s4676_s25, %s4677_s26  }
  0x13   :  { %s4626_s11 = scalar_lea.hbm %s5932_s5, 8192 }
  0x14   :  { %p4627_p8 = scmp.ne.s32.totalorder %s5932_s5, %s4626_s11  ;;  %p4630_p9 = scmp.lt.u32.totalorder %s4626_s11, %s5932_s5 }
  0x16   :  { %p4632_p10 = pnand %p4630_p9, %p4627_p8 }
  0x18   :  { %4635 = shalt.err (!%p4632_p10)
}
  0x19   :  { %s4636_s18 = scalar_lea.vmem %s4738_s16, 8192  ;;  %p4641_p12 = scmp.lt.s32.totalorder %s4738_s16, %s4738_s16 }
  0x1a   :  { %p4637_p11 = scmp.ne.s32.totalorder %s4738_s16, %s4636_s18  ;;  %p4642_p13 = scmp.lt.s32.totalorder %s4636_s18, %s4636_s18 }
  0x1c   :  { %p4643_p0 = por %p4642_p13, %p4641_p12 }
  0x1e   :  { %p4644_p1 = pnand %p4643_p0, %p4637_p11 }
  0x20   :  { %4647 = shalt.err (!%p4644_p1)
}
  0x21   :  { %38 = dma.hbm_to_vmem [thread:$0]  %s5932_s5, 8192, %s4738_s16, [#allocation4], %s4676_s25, %s4676_s25, %s4677_s26  }
  0x22   :  { %s4678_s19 = smov [#allocation7]   ;;  %s4648_s23 = scalar_lea.hbm %s5935_s8, 8192 }
  0x23   :  { %s58_s20 = sshll.u32 %s4678_s19, 4  ;;  %p4649_p2 = scmp.ne.s32.totalorder %s5935_s8, %s4648_s23  ;;  %s59_s20 = int_to_ptr.vmem [resolvable:$true] %s58_s20 }
  0x24   :  { %p4652_p3 = scmp.lt.u32.totalorder %s4648_s23, %s5935_s8 }
  0x26   :  { %p4654_p4 = pnand %p4652_p3, %p4649_p2 }
  0x28   :  { %4657 = shalt.err (!%p4654_p4)
}
  0x29   :  { %s4658_s30 = scalar_lea.vmem %s59_s20, 8192  ;;  %p4663_p6 = scmp.lt.s32.totalorder %s59_s20, %s59_s20 }
  0x2a   :  { %p4659_p5 = scmp.ne.s32.totalorder %s59_s20, %s4658_s30  ;;  %p4664_p7 = scmp.lt.s32.totalorder %s4658_s30, %s4658_s30 }
  0x2c   :  { %p4665_p8 = por %p4664_p7, %p4663_p6 }
  0x2e   :  { %p4666_p9 = pnand %p4665_p8, %p4659_p5 }
  0x30   :  { %4669 = shalt.err (!%p4666_p9)
}
  0x31   :  { %s4679_s5 = smov 128   ;;  %s4680_s16 = smov 8  }
  0x32   :  { %64 = dma.hbm_to_vmem [thread:$0]  %s5935_s8, 8192, %s59_s20, [#allocation6], %s4679_s5, %s4679_s5, %s4680_s16  }
  0x33   :  { %4670 = dma.done.wait [#allocation4], 8192  }
  0x34   :  { %4671 = vsyncadd [#allocation4], 4294959104 }
  0x35   :  { %4672 = dma.done.wait [#allocation6], 16384  }
  0x36   :  { %4673 = vsyncadd [#allocation6], 4294950912  ;;  %vm246_vm0 = vcmask 1043456   ;;  %vm197_vm1 = vcmask 64512   ;;  %v109_v0 = vld [vmem:[%s5928_s1] sm:$0xf] }
  0x37   :  { %4265 = vmatprep.subr.msk.bf16.mxu0 %vm246_vm0, %v109_v0  ;;  %v248_v1 = vsel %vm246_vm0, %v109_v0, 0  ;;  %v4276_v2 = vld [vmem:[%s5927_s0] sm:$0xff]   ;;  %v4277_v3 = vld [vmem:[%s5927_s0 + $0x8] sm:$0xff]   ;;  %v4278_v4 = vld [vmem:[%s5927_s0 + $0x10] sm:$0xff]   ;;  %v4681_v34 = vmov 0   ;;  %vm1118_vm2 = vcmask 1041409  }
  0x38   :  { %4136 = vmatpush3.bf16.msra.mxu0 %v248_v1  ;;  %4137 = vmatprep.mubr.msk.bf16.mxu0 %vm197_vm1, %v4276_v2  ;;  %v4279_v5 = vld [vmem:[%s5927_s0 + $0x18] sm:$0xff]   ;;  %v4280_v6 = vld [vmem:[%s5927_s0 + $0x20] sm:$0xff]   ;;  %v4281_v7 = vld [vmem:[%s5927_s0 + $0x28] sm:$0xff]   ;;  %vm1120_vm3 = vcmask 1042434   ;;  %vm1122_vm4 = vcmask 1043459   ;;  %vm1124_vm5 = vcmask 1044484  }
  0x39   :  { %v4292_v8 = vld [vmem:[%s5930_s3 + $0x4] ss:$8 sps:$4 sm:$0xff]   ;;  %v4294_v9 = vld [vmem:[%s5930_s3] ss:$8 sps:$4 sm:$0xff]   ;;  %v4282_v10 = vld [vmem:[%s5927_s0 + $0x30] sm:$0xff]   ;;  %599 = vmatprep.mubr.bf16.mxu1 %v4681_v34  ;;  %vm1126_vm6 = vcmask 1045509  }
  0x3a   :  { %v4295_v11 = vld [vmem:[%s5930_s3 + $0x14] ss:$8 sps:$4 sm:$0xff]   ;;  %567 = vmatprep.subr.bf16.mxu1 %v4292_v8  ;;  %v4297_v12 = vld [vmem:[%s5930_s3 + $0x10] ss:$8 sps:$4 sm:$0xff]   ;;  %v4298_v13 = vld [vmem:[%s5930_s3 + $0x24] ss:$8 sps:$4 sm:$0xff]  }
  0x3b   :  { %4138 = vmatmul.mubr.msk.bf16.vlgmr.msra.gmra.mrb[0].mxu0 %vm197_vm1, %v4277_v3  ;;  %568 = vmatpush1.bf16.msra.mxu1 %v4294_v9  ;;  %v4283_v14 = vld [vmem:[%s5927_s0 + $0x38] sm:$0xff]   ;;  %v4300_v15 = vld [vmem:[%s5930_s3 + $0x20] ss:$8 sps:$4 sm:$0xff]   ;;  %v4304_v19 = vld [vmem:[%s5930_s3 + $0x44] ss:$8 sps:$4 sm:$0xff]   ;;  %vm1128_vm7 = vcmask 1046534  }
  0x3c   :  { %4141 = vmatprep.mubr.msk.bf16.mxu0 %vm197_vm1, %v4278_v4  ;;  %569 = vmatprep.subr.bf16.mxu1 %v4295_v11  ;;  %v4284_v16 = vld [vmem:[%s5927_s0 + $0x40] sm:$0xff]   ;;  %v4301_v17 = vld [vmem:[%s5930_s3 + $0x34] ss:$8 sps:$4 sm:$0xff]   ;;  %v4303_v18 = vld [vmem:[%s5930_s3 + $0x30] ss:$8 sps:$4 sm:$0xff]   ;;  %vm1130_vm8 = vcmask 1047559  }
  0x3d   :  { %v4306_v20 = vld [vmem:[%s5930_s3 + $0x40] ss:$8 sps:$4 sm:$0xff]   ;;  %v4307_v22 = vld [vmem:[%s5930_s3 + $0x54] ss:$8 sps:$4 sm:$0xff]   ;;  %v4309_v24 = vld [vmem:[%s5930_s3 + $0x50] ss:$8 sps:$4 sm:$0xff]  }
  0x3e   :  { %v4285_v21 = vld [vmem:[%s5927_s0 + $0x48] sm:$0xff]   ;;  %v4286_v23 = vld [vmem:[%s5927_s0 + $0x50] sm:$0xff]   ;;  %v4287_v25 = vld [vmem:[%s5927_s0 + $0x58] sm:$0xff]  }
  0x3f   :  { %570 = vmatpush1.bf16.msra.mxu1 %v4297_v12  ;;  %v4288_v26 = vld [vmem:[%s5927_s0 + $0x60] sm:$0xff]   ;;  %v4289_v27 = vld [vmem:[%s5927_s0 + $0x68] sm:$0xff]   ;;  %v4290_v28 = vld [vmem:[%s5927_s0 + $0x70] sm:$0xff]  }
  0x40   :  { %571 = vmatprep.subr.bf16.mxu1 %v4298_v13  ;;  %v4291_v29 = vld [vmem:[%s5927_s0 + $0x78] sm:$0xff]   ;;  %v4310_v30 = vld [vmem:[%s5930_s3 + $0x64] ss:$8 sps:$4 sm:$0xff]   ;;  %v4312_v31 = vld [vmem:[%s5930_s3 + $0x60] ss:$8 sps:$4 sm:$0xff]  }
  0x41   :  { %v4313_v32 = vld [vmem:[%s5930_s3 + $0x74] ss:$8 sps:$4 sm:$0xff]   ;;  %v4315_v33 = vld [vmem:[%s5930_s3 + $0x70] ss:$8 sps:$4 sm:$0xff]   ;;  %v4900_v35 = vld [vmem:[%s5929_s2] ss:$0 sm:$0xff] }
  0x42   :  { %v4318_v41 = vld [vmem:[#allocation5 + $0x4] ss:$16 sps:$4 sm:$0xff]   ;;  %v4316_v50 = vld [vmem:[#allocation5] ss:$16 sps:$4 sm:$0xff]  }
  0x43   :  { %4142 = vmatmul.mubr.msk.bf16.gmra.mrb[4].mxu0 %vm197_vm1, %v4279_v5  ;;  %572 = vmatpush1.bf16.msra.mxu1 %v4300_v15  ;;  %v4321_v53 = vld [vmem:[#allocation5 + $0x24] ss:$16 sps:$4 sm:$0xff]   ;;  %v4319_v61 = vld [vmem:[#allocation5 + $0x20] ss:$16 sps:$4 sm:$0xff]  }
  0x44   :  { %4145 = vmatprep.mubr.msk.bf16.mxu0 %vm197_vm1, %v4280_v6  ;;  %573 = vmatprep.subr.bf16.mxu1 %v4301_v17  ;;  %v4324_v0 = vld [vmem:[#allocation5 + $0x44] ss:$16 sps:$4 sm:$0xff]   ;;  %v4322_v4 = vld [vmem:[#allocation5 + $0x40] ss:$16 sps:$4 sm:$0xff]  }
  0x45   :  { %v4325_v15 = vld [vmem:[#allocation5 + $0x60] ss:$16 sps:$4 sm:$0xff]  }
  0x47   :  { %574 = vmatpush1.bf16.msra.mxu1 %v4303_v18  ;;  %v4330_v18 = vld [vmem:[#allocation5 + $0x84] ss:$16 sps:$4 sm:$0xff]  }
  0x48   :  { %575 = vmatprep.subr.bf16.mxu1 %v4304_v19 }
  0x4b   :  { %4146 = vmatmul.mubr.msk.bf16.gmra.mrb[8].mxu0 %vm197_vm1, %v4281_v7  ;;  %576 = vmatpush1.bf16.msra.mxu1 %v4306_v20  ;;  %v4327_v7 = vld [vmem:[#allocation5 + $0x64] ss:$16 sps:$4 sm:$0xff]  }
  0x4c   :  { %4149 = vmatprep.mubr.msk.bf16.mxu0 %vm197_vm1, %v4282_v10  ;;  %577 = vmatprep.subr.bf16.mxu1 %v4307_v22  ;;  %v4328_v22 = vld [vmem:[#allocation5 + $0x80] ss:$16 sps:$4 sm:$0xff]  }
  0x4f   :  { %578 = vmatpush1.bf16.msra.mxu1 %v4309_v24 }
  0x50   :  { %579 = vmatprep.subr.bf16.mxu1 %v4310_v30 }
  0x53   :  { %4150 = vmatmul.mubr.msk.bf16.gmra.mrb[12].mxu0 %vm197_vm1, %v4283_v14  ;;  %580 = vmatpush1.bf16.msra.mxu1 %v4312_v31 }
  0x54   :  { %4153 = vmatprep.mubr.msk.bf16.mxu0 %vm197_vm1, %v4284_v16  ;;  %581 = vmatprep.subr.bf16.mxu1 %v4313_v32 }
  0x57   :  { %582 = vmatpush1.bf16.msra.mxu1 %v4315_v33  ;;  %v4331_v33 = vld [vmem:[#allocation5 + $0xa0] ss:$16 sps:$4 sm:$0xff]  }
  0x58   :  { %1963 = vmatprep.subr.bf16.mxu1 %v4318_v41 }
  0x5b   :  { %4154 = vmatmul.mubr.msk.bf16.gmra.mrb[16].mxu0 %vm197_vm1, %v4285_v21 }
  0x5c   :  { %4157 = vmatprep.mubr.msk.bf16.mxu0 %vm197_vm1, %v4286_v23 }
  0x63   :  { %4158 = vmatmul.mubr.msk.bf16.gmra.mrb[20].mxu0 %vm197_vm1, %v4287_v25  ;;  %v4333_v25 = vld [vmem:[#allocation5 + $0xa4] ss:$16 sps:$4 sm:$0xff]  }
  0x64   :  { %4161 = vmatprep.mubr.msk.bf16.mxu0 %vm197_vm1, %v4288_v26 }
  0x6b   :  { %4162 = vmatmul.mubr.msk.bf16.gmra.mrb[24].mxu0 %vm197_vm1, %v4289_v27 }
  0x6c   :  { %4165 = vmatprep.mubr.msk.bf16.mxu0 %vm197_vm1, %v4290_v28 }
  0x73   :  { %4166 = vmatmul.mubr.msk.bf16.gmra.mrb[28].mxu0 %vm197_vm1, %v4291_v29 }
 0x10e   :  { %v4139_v36 = vpop.f32.mrb[0].mxu0 }
 0x10f   :  { %v293_v37 = vadd.f32 %v4139_v36, %v4900_v35  ;;  %v284_v38 = vpop.f32.mrb[1].mxu0 }
 0x110   :  { %v285_v39 = vadd.f32 %v4900_v35, %v284_v38  ;;  %v4140_v40 = vpop.f32.mrb[2].mxu0  ;;  %v4336_v38 = vld [vmem:[#allocation5 + $0xc4] ss:$16 sps:$4 sm:$0xff]  }
 0x111   :  { %v296_v42 = vadd.f32 %v4140_v40, %v4900_v35  ;;  %v287_v43 = vpop.f32.mrb[3].mxu0  ;;  %v413_v45 = vmax.f32 %v293_v37, 0.0 }
 0x112   :  { %v288_v44 = vadd.f32 %v4900_v35, %v287_v43  ;;  %v411_v47 = vmax.f32 %v285_v39, 0.0 }
 0x113   :  { %v414_v46 = vmax.f32 %v296_v42, 0.0  ;;  %v4334_v42 = vld [vmem:[#allocation5 + $0xc0] ss:$16 sps:$4 sm:$0xff]  }
 0x114   :  { %v412_v48 = vmax.f32 %v288_v44, 0.0 }
 0x115   :  { %v444_v49 = vpack.c.bf16 %v414_v46, %v413_v45  ;;  %v4339_v45 = vld [vmem:[#allocation5 + $0xe4] ss:$16 sps:$4 sm:$0xff]  }
 0x116   :  { %v443_v51 = vpack.c.bf16 %v412_v48, %v411_v47  ;;  %v4143_v52 = vpop.f32.mrb[4].mxu0 }
 0x117   :  { %v309_v54 = vadd.f32 %v4143_v52, %v4900_v35  ;;  %v300_v55 = vpop.f32.mrb[5].mxu0 }
 0x118   :  { %600 = vmatmul.mubr.bf16.vlgmr.msra.gmra.mrb[0].mxu1 %v443_v51  ;;  %v301_v56 = vadd.f32 %v4900_v35, %v300_v55  ;;  %v4144_v57 = vpop.f32.mrb[6].mxu0 }
 0x119   :  { %v417_v58 = vmax.f32 %v309_v54, 0.0  ;;  %v312_v59 = vadd.f32 %v4144_v57, %v4900_v35  ;;  %v303_v60 = vpop.f32.mrb[7].mxu0  ;;  %609 = vmatprep.mubr.bf16.mxu1 %v4681_v34  ;;  %1964 = vmatpush1.bf16.msra.mxu1 %v4316_v50 }
 0x11a   :  { %v415_v62 = vmax.f32 %v301_v56, 0.0  ;;  %v304_v63 = vadd.f32 %v4900_v35, %v303_v60  ;;  %1965 = vmatprep.subr.bf16.mxu1 %v4321_v53  ;;  %v4337_v53 = vld [vmem:[#allocation5 + $0xe0] ss:$16 sps:$4 sm:$0xff]   ;;  %v4342_v56 = vld [vmem:[#allocation5 + $0x104] ss:$16 sps:$4 sm:$0xff]  }
 0x11b   :  { %v418_v1 = vmax.f32 %v312_v59, 0.0  ;;  %v4340_v60 = vld [vmem:[#allocation5 + $0x100] ss:$16 sps:$4 sm:$0xff]  }
 0x11c   :  { %v416_v2 = vmax.f32 %v304_v63, 0.0  ;;  %v4345_v63 = vld [vmem:[#allocation5 + $0x124] ss:$16 sps:$4 sm:$0xff]  }
 0x11d   :  { %v446_v3 = vpack.c.bf16 %v418_v1, %v417_v58  ;;  %1966 = vmatpush1.bf16.msra.mxu1 %v4319_v61 }
 0x11e   :  { %v445_v5 = vpack.c.bf16 %v416_v2, %v415_v62  ;;  %v4147_v6 = vpop.f32.mrb[8].mxu0  ;;  %1967 = vmatprep.subr.bf16.mxu1 %v4324_v0 }
 0x11f   :  { %v325_v8 = vadd.f32 %v4147_v6, %v4900_v35  ;;  %v316_v9 = vpop.f32.mrb[9].mxu0 }
 0x120   :  { %610 = vmatmul.mubr.bf16.gmra.mrb[4].mxu1 %v444_v49  ;;  %v317_v10 = vadd.f32 %v4900_v35, %v316_v9  ;;  %v4148_v11 = vpop.f32.mrb[10].mxu0 }
 0x121   :  { %619 = vmatprep.mubr.bf16.mxu1 %v4681_v34  ;;  %v421_v12 = vmax.f32 %v325_v8, 0.0  ;;  %v328_v13 = vadd.f32 %v4148_v11, %v4900_v35  ;;  %v319_v14 = vpop.f32.mrb[11].mxu0  ;;  %1968 = vmatpush1.bf16.msra.mxu1 %v4322_v4 }
 0x122   :  { %v419_v16 = vmax.f32 %v317_v10, 0.0  ;;  %v320_v17 = vadd.f32 %v4900_v35, %v319_v14  ;;  %1969 = vmatprep.subr.bf16.mxu1 %v4327_v7  ;;  %v4343_v7 = vld [vmem:[#allocation5 + $0x120] ss:$16 sps:$4 sm:$0xff]   ;;  %v4348_v10 = vld [vmem:[#allocation5 + $0x144] ss:$16 sps:$4 sm:$0xff]  }
 0x123   :  { %v422_v19 = vmax.f32 %v328_v13, 0.0  ;;  %v4346_v14 = vld [vmem:[#allocation5 + $0x140] ss:$16 sps:$4 sm:$0xff]  }
 0x124   :  { %v420_v20 = vmax.f32 %v320_v17, 0.0  ;;  %v4351_v17 = vld [vmem:[#allocation5 + $0x164] ss:$16 sps:$4 sm:$0xff]  }
 0x125   :  { %v4916_v21 = vpack.c.bf16 %v422_v19, %v421_v12  ;;  %1970 = vmatpush1.bf16.msra.mxu1 %v4325_v15 }
 0x126   :  { %v447_v23 = vpack.c.bf16 %v420_v20, %v419_v16  ;;  %v4151_v24 = vpop.f32.mrb[12].mxu0  ;;  %1971 = vmatprep.subr.bf16.mxu1 %v4330_v18 }
 0x127   :  { %v341_v26 = vadd.f32 %v4151_v24, %v4900_v35  ;;  %v332_v27 = vpop.f32.mrb[13].mxu0 }
 0x128   :  { %620 = vmatmul.mubr.bf16.gmra.mrb[8].mxu1 %v445_v5  ;;  %v333_v28 = vadd.f32 %v4900_v35, %v332_v27  ;;  %v4152_v29 = vpop.f32.mrb[14].mxu0 }
 0x129   :  { %629 = vmatprep.mubr.bf16.mxu1 %v4681_v34  ;;  %v425_v30 = vmax.f32 %v341_v26, 0.0  ;;  %v344_v31 = vadd.f32 %v4152_v29, %v4900_v35  ;;  %v335_v32 = vpop.f32.mrb[15].mxu0  ;;  %1972 = vmatpush1.bf16.msra.mxu1 %v4328_v22  ;;  %v4349_v26 = vld [vmem:[#allocation5 + $0x160] ss:$16 sps:$4 sm:$0xff]   ;;  %v4354_v29 = vld [vmem:[#allocation5 + $0x184] ss:$16 sps:$4 sm:$0xff]  }
 0x12a   :  { %v423_v36 = vmax.f32 %v333_v28, 0.0  ;;  %v336_v37 = vadd.f32 %v4900_v35, %v335_v32  ;;  %1973 = vmatprep.subr.bf16.mxu1 %v4333_v25 }
 0x12b   :  { %v426_v39 = vmax.f32 %v344_v31, 0.0 }
 0x12c   :  { %v424_v40 = vmax.f32 %v336_v37, 0.0  ;;  %v4357_v37 = vld [vmem:[#allocation5 + $0x1a4] ss:$16 sps:$4 sm:$0xff]  }
 0x12d   :  { %v4923_v41 = vpack.c.bf16 %v426_v39, %v425_v30  ;;  %1974 = vmatpush1.bf16.msra.mxu1 %v4331_v33 }
 0x12e   :  { %v4925_v43 = vpack.c.bf16 %v424_v40, %v423_v36  ;;  %v4155_v44 = vpop.f32.mrb[16].mxu0  ;;  %1975 = vmatprep.subr.bf16.mxu1 %v4336_v38 }
 0x12f   :  { %v357_v46 = vadd.f32 %v4155_v44, %v4900_v35  ;;  %v348_v47 = vpop.f32.mrb[17].mxu0 }
 0x130   :  { %630 = vmatmul.mubr.bf16.gmra.mrb[12].mxu1 %v446_v3  ;;  %v349_v48 = vadd.f32 %v4900_v35, %v348_v47  ;;  %v4156_v49 = vpop.f32.mrb[18].mxu0  ;;  %v4355_v47 = vld [vmem:[#allocation5 + $0x1a0] ss:$16 sps:$4 sm:$0xff]  }
 0x131   :  { %639 = vmatprep.mubr.bf16.mxu1 %v4681_v34  ;;  %v429_v50 = vmax.f32 %v357_v46, 0.0  ;;  %v360_v51 = vadd.f32 %v4156_v49, %v4900_v35  ;;  %v351_v52 = vpop.f32.mrb[19].mxu0  ;;  %1976 = vmatpush1.bf16.msra.mxu1 %v4334_v42 }
 0x132   :  { %v427_v54 = vmax.f32 %v349_v48, 0.0  ;;  %v352_v55 = vadd.f32 %v4900_v35, %v351_v52  ;;  %1977 = vmatprep.subr.bf16.mxu1 %v4339_v45 }
 0x133   :  { %v430_v57 = vmax.f32 %v360_v51, 0.0 }
 0x134   :  { %v428_v58 = vmax.f32 %v352_v55, 0.0  ;;  %v4361_v55 = vld [vmem:[#allocation5 + $0x1e0] ss:$16 sps:$4 sm:$0xff]  }
 0x135   :  { %v4932_v59 = vpack.c.bf16 %v430_v57, %v429_v50  ;;  %1978 = vmatpush1.bf16.msra.mxu1 %v4337_v53  ;;  %v4358_v53 = vld [vmem:[#allocation5 + $0x1c0] ss:$16 sps:$4 sm:$0xff]   ;;  %v4369_v57 = vld [vmem:[#allocation3 + $0x24] ss:$16 sps:$4 sm:$0xff]  }
 0x136   :  { %v4934_v61 = vpack.c.bf16 %v428_v58, %v427_v54  ;;  %v4159_v62 = vpop.f32.mrb[20].mxu0  ;;  %1979 = vmatprep.subr.bf16.mxu1 %v4342_v56  ;;  %v4363_v54 = vld [vmem:[#allocation5 + $0x1e4] ss:$16 sps:$4 sm:$0xff]   ;;  %v4364_v56 = vld [vmem:[#allocation3] ss:$16 sps:$4 sm:$0xff]  }
 0x137   :  { %v373_v0 = vadd.f32 %v4159_v62, %v4900_v35  ;;  %v364_v1 = vpop.f32.mrb[21].mxu0  ;;  %v4367_v58 = vld [vmem:[#allocation3 + $0x20] ss:$16 sps:$4 sm:$0xff]  }
 0x138   :  { %640 = vmatmul.mubr.bf16.gmra.mrb[16].mxu1 %v447_v23  ;;  %v365_v2 = vadd.f32 %v4900_v35, %v364_v1  ;;  %v4160_v3 = vpop.f32.mrb[22].mxu0  ;;  %v4373_v62 = vld [vmem:[#allocation3 + $0x60] ss:$16 sps:$4 sm:$0xff]  }
 0x139   :  { %649 = vmatprep.mubr.bf16.mxu1 %v4681_v34  ;;  %v433_v4 = vmax.f32 %v373_v0, 0.0  ;;  %v376_v5 = vadd.f32 %v4160_v3, %v4900_v35  ;;  %v367_v6 = vpop.f32.mrb[23].mxu0  ;;  %1980 = vmatpush1.bf16.msra.mxu1 %v4340_v60  ;;  %v4370_v60 = vld [vmem:[#allocation3 + $0x40] ss:$16 sps:$4 sm:$0xff]  }
 0x13a   :  { %v431_v8 = vmax.f32 %v365_v2, 0.0  ;;  %v368_v9 = vadd.f32 %v4900_v35, %v367_v6  ;;  %1981 = vmatprep.subr.bf16.mxu1 %v4345_v63  ;;  %v4378_v63 = vld [vmem:[#allocation3 + $0x84] ss:$16 sps:$4 sm:$0xff]   ;;  %v4376_v0 = vld [vmem:[#allocation3 + $0x80] ss:$16 sps:$4 sm:$0xff]  }
 0x13b   :  { %v434_v11 = vmax.f32 %v376_v5, 0.0  ;;  %v4379_v1 = vld [vmem:[#allocation3 + $0xa0] ss:$16 sps:$4 sm:$0xff]   ;;  %v4384_v2 = vld [vmem:[#allocation3 + $0xc4] ss:$16 sps:$4 sm:$0xff]  }
 0x13c   :  { %v432_v12 = vmax.f32 %v368_v9, 0.0  ;;  %v4382_v3 = vld [vmem:[#allocation3 + $0xc0] ss:$16 sps:$4 sm:$0xff]   ;;  %v4387_v5 = vld [vmem:[#allocation3 + $0xe4] ss:$16 sps:$4 sm:$0xff]  }
 0x13d   :  { %v4941_v13 = vpack.c.bf16 %v434_v11, %v433_v4  ;;  %1982 = vmatpush1.bf16.msra.mxu1 %v4343_v7  ;;  %v477_v4 = vlaneseq  ;;  %v4385_v6 = vld [vmem:[#allocation3 + $0xe0] ss:$16 sps:$4 sm:$0xff]   ;;  %v4393_v11 = vld [vmem:[#allocation3 + $0x124] ss:$16 sps:$4 sm:$0xff]  }
 0x13e   :  { %v453_v15 = vpack.c.bf16 %v432_v12, %v431_v8  ;;  %v4163_v16 = vpop.f32.mrb[24].mxu0  ;;  %1983 = vmatprep.subr.bf16.mxu1 %v4348_v10  ;;  %v4390_v8 = vld [vmem:[#allocation3 + $0x104] ss:$16 sps:$4 sm:$0xff]   ;;  %v4388_v9 = vld [vmem:[#allocation3 + $0x100] ss:$16 sps:$4 sm:$0xff]  }
 0x13f   :  { %v389_v18 = vadd.f32 %v4163_v16, %v4900_v35  ;;  %v380_v19 = vpop.f32.mrb[25].mxu0  ;;  %v4967_v7 = vshrl.u32 %v477_v4, 7  ;;  %v475_v12 = vld [vmem:[%s5931_s4] sm:$0x3]  ;;  %v4396_v16 = vld [vmem:[#allocation3 + $0x144] ss:$16 sps:$4 sm:$0xff]  }
 0x140   :  { %650 = vmatmul.mubr.bf16.gmra.mrb[20].mxu1 %v4916_v21  ;;  %v381_v20 = vadd.f32 %v4900_v35, %v380_v19  ;;  %v4164_v22 = vpop.f32.mrb[26].mxu0  ;;  %v4352_v21 = vld [vmem:[#allocation5 + $0x180] ss:$16 sps:$4 sm:$0xff]  }
 0x141   :  { %659 = vmatprep.mubr.bf16.mxu1 %v4681_v34  ;;  %v437_v23 = vmax.f32 %v389_v18, 0.0  ;;  %v392_v24 = vadd.f32 %v4164_v22, %v4900_v35  ;;  %v383_v25 = vpop.f32.mrb[27].mxu0  ;;  %1984 = vmatpush1.bf16.msra.mxu1 %v4346_v14  ;;  %5992 = vst [vmem:[#allocation10_spill] sm:$0xff] %v4967_v7  ;;  %v4970_v10 = vsub.s32 0, %v4967_v7  ;;  %v4391_v14 = vld [vmem:[#allocation3 + $0x120] ss:$16 sps:$4 sm:$0xff]  }
 0x142   :  { %v435_v27 = vmax.f32 %v381_v20, 0.0  ;;  %v384_v28 = vadd.f32 %v4900_v35, %v383_v25  ;;  %1985 = vmatprep.subr.bf16.mxu1 %v4351_v17  ;;  %v4394_v19 = vld [vmem:[#allocation3 + $0x140] ss:$16 sps:$4 sm:$0xff]  }
 0x143   :  { %v438_v30 = vmax.f32 %v392_v24, 0.0  ;;  %5993 = vst [vmem:[#allocation11_spill] sm:$0xff] %v4970_v10 }
 0x144   :  { %v436_v31 = vmax.f32 %v384_v28, 0.0 }
 0x145   :  { %v456_v32 = vpack.c.bf16 %v438_v30, %v437_v23  ;;  %1986 = vmatpush1.bf16.msra.mxu1 %v4349_v26  ;;  %v4399_v26 = vld [vmem:[#allocation3 + $0x164] ss:$16 sps:$4 sm:$0xff]  }
 0x146   :  { %v455_v33 = vpack.c.bf16 %v436_v31, %v435_v27  ;;  %v4167_v36 = vpop.f32.mrb[28].mxu0  ;;  %1987 = vmatprep.subr.bf16.mxu1 %v4354_v29  ;;  %v4397_v29 = vld [vmem:[#allocation3 + $0x160] ss:$16 sps:$4 sm:$0xff]  }
 0x147   :  { %v405_v38 = vadd.f32 %v4167_v36, %v4900_v35  ;;  %v396_v39 = vpop.f32.mrb[29].mxu0 }
 0x148   :  { %660 = vmatmul.mubr.bf16.gmra.mrb[24].mxu1 %v4925_v43  ;;  %v397_v40 = vadd.f32 %v4900_v35, %v396_v39  ;;  %v4168_v42 = vpop.f32.mrb[30].mxu0 }
 0x149   :  { %669 = vmatprep.mubr.bf16.mxu1 %v4681_v34  ;;  %v441_v44 = vmax.f32 %v405_v38, 0.0  ;;  %v408_v45 = vadd.f32 %v4168_v42, %v4900_v35  ;;  %v399_v46 = vpop.f32.mrb[31].mxu0  ;;  %1988 = vmatpush1.bf16.msra.mxu1 %v4352_v21  ;;  %v4405_v42 = vld [vmem:[#allocation3 + $0x1a4] ss:$16 sps:$4 sm:$0xff]  }
 0x14a   :  { %v439_v48 = vmax.f32 %v397_v40, 0.0  ;;  %v400_v49 = vadd.f32 %v4900_v35, %v399_v46  ;;  %1989 = vmatprep.subr.bf16.mxu1 %v4357_v37  ;;  %v4360_v35 = vld [vmem:[#allocation5 + $0x1c4] ss:$16 sps:$4 sm:$0xff]   ;;  %v4403_v46 = vld [vmem:[#allocation3 + $0x1a0] ss:$16 sps:$4 sm:$0xff]  }
 0x14b   :  { %v442_v50 = vmax.f32 %v408_v45, 0.0 }
 0x14c   :  { %v440_v51 = vmax.f32 %v400_v49, 0.0  ;;  %v4406_v49 = vld [vmem:[#allocation3 + $0x1c0] ss:$16 sps:$4 sm:$0xff]  }
 0x14d   :  { %v458_v52 = vpack.c.bf16 %v442_v50, %v441_v44  ;;  %1990 = vmatpush1.bf16.msra.mxu1 %v4355_v47  ;;  %v4408_v50 = vld [vmem:[#allocation3 + $0x1c4] ss:$16 sps:$4 sm:$0xff]  }
 0x14e   :  { %v457_v43 = vpack.c.bf16 %v440_v51, %v439_v48  ;;  %1991 = vmatprep.subr.bf16.mxu1 %v4360_v35 }
 0x150   :  { %670 = vmatmul.mubr.bf16.gmra.mrb[28].mxu1 %v4923_v41  ;;  %v4366_v41 = vld [vmem:[#allocation3 + $0x4] ss:$16 sps:$4 sm:$0xff]  }
 0x151   :  { %679 = vmatprep.mubr.bf16.mxu1 %v4681_v34  ;;  %1992 = vmatpush1.bf16.msra.mxu1 %v4358_v53  ;;  %v4409_v53 = vld [vmem:[#allocation3 + $0x1e0] ss:$16 sps:$4 sm:$0xff]  }
 0x152   :  { %1993 = vmatprep.subr.bf16.mxu1 %v4363_v54  ;;  %1463 = vmatprep.subr.bf16.mxu0 %v4366_v41 }
 0x153   :  { %1464 = vmatpush1.bf16.msra.mxu0 %v4364_v56 }
 0x154   :  { %1465 = vmatprep.subr.bf16.mxu0 %v4369_v57 }
 0x155   :  { %1994 = vmatpush1.bf16.msra.mxu1 %v4361_v55 }
 0x157   :  { %1466 = vmatpush1.bf16.msra.mxu0 %v4367_v58 }
 0x158   :  { %680 = vmatmul.mubr.bf16.gmra.mrb[32].mxu1 %v4934_v61  ;;  %v4375_v61 = vld [vmem:[#allocation3 + $0x64] ss:$16 sps:$4 sm:$0xff]  }
 0x159   :  { %689 = vmatprep.mubr.bf16.mxu1 %v4681_v34 }
 0x160   :  { %690 = vmatmul.mubr.bf16.gmra.mrb[36].mxu1 %v4932_v59  ;;  %v4372_v59 = vld [vmem:[#allocation3 + $0x44] ss:$16 sps:$4 sm:$0xff]  }
 0x161   :  { %699 = vmatprep.mubr.bf16.mxu1 %v4681_v34  ;;  %1467 = vmatprep.subr.bf16.mxu0 %v4372_v59 }
 0x162   :  { %1468 = vmatpush1.bf16.msra.mxu0 %v4370_v60  ;;  %v4414_v60 = vld [vmem:[#allocation3 + $0xc] ss:$16 sps:$4 sm:$0xff]  }
 0x163   :  { %1469 = vmatprep.subr.bf16.mxu0 %v4375_v61 }
 0x166   :  { %1470 = vmatpush1.bf16.msra.mxu0 %v4373_v62 }
 0x167   :  { %1471 = vmatprep.subr.bf16.mxu0 %v4378_v63 }
 0x168   :  { %700 = vmatmul.mubr.bf16.gmra.mrb[40].mxu1 %v453_v15  ;;  %v4979_v15 = vrot.slane %v475_v12, %v4970_v10 }
 0x169   :  { %709 = vmatprep.mubr.bf16.mxu1 %v4681_v34 }
 0x16a   :  { %1472 = vmatpush1.bf16.msra.mxu0 %v4376_v0 }
 0x170   :  { %710 = vmatmul.mubr.bf16.gmra.mrb[44].mxu1 %v4941_v13  ;;  %v4976_v13 = vsub.s32 1, %v4967_v7 }
 0x171   :  { %719 = vmatprep.mubr.bf16.mxu1 %v4681_v34 }
 0x172   :  { %5994 = vst [vmem:[#allocation12_spill] sm:$0xff] %v4976_v13  ;;  %v4982_v18 = vrot.slane %v475_v12, %v4976_v13 }
 0x178   :  { %720 = vmatmul.mubr.bf16.gmra.mrb[48].mxu1 %v455_v33  ;;  %v4400_v33 = vld [vmem:[#allocation3 + $0x180] ss:$16 sps:$4 sm:$0xff]  }
 0x179   :  { %729 = vmatprep.mubr.bf16.mxu1 %v4681_v34 }
 0x180   :  { %730 = vmatmul.mubr.bf16.gmra.mrb[52].mxu1 %v456_v32  ;;  %v4402_v32 = vld [vmem:[#allocation3 + $0x184] ss:$16 sps:$4 sm:$0xff]  }
 0x181   :  { %739 = vmatprep.mubr.bf16.mxu1 %v4681_v34 }
 0x188   :  { %740 = vmatmul.mubr.bf16.gmra.mrb[56].mxu1 %v457_v43 }
 0x189   :  { %749 = vmatprep.mubr.bf16.mxu1 %v4681_v34  ;;  %v4381_v34 = vld [vmem:[#allocation3 + $0xa4] ss:$16 sps:$4 sm:$0xff]  }
 0x18a   :  { %1473 = vmatprep.subr.bf16.mxu0 %v4381_v34 }
 0x18b   :  { %1474 = vmatpush1.bf16.msra.mxu0 %v4379_v1 }
 0x18c   :  { %1475 = vmatprep.subr.bf16.mxu0 %v4384_v2 }
 0x18f   :  { %1476 = vmatpush1.bf16.msra.mxu0 %v4382_v3 }
 0x190   :  { %750 = vmatmul.mubr.bf16.gmra.mrb[60].mxu1 %v458_v52  ;;  %1477 = vmatprep.subr.bf16.mxu0 %v4387_v5  ;;  %v4411_v52 = vld [vmem:[#allocation3 + $0x1e4] ss:$16 sps:$4 sm:$0xff]  }
 0x193   :  { %1478 = vmatpush1.bf16.msra.mxu0 %v4385_v6 }
 0x194   :  { %1479 = vmatprep.subr.bf16.mxu0 %v4390_v8 }
 0x197   :  { %1480 = vmatpush1.bf16.msra.mxu0 %v4388_v9 }
 0x198   :  { %1481 = vmatprep.subr.bf16.mxu0 %v4393_v11 }
 0x19b   :  { %1482 = vmatpush1.bf16.msra.mxu0 %v4391_v14 }
 0x19c   :  { %1483 = vmatprep.subr.bf16.mxu0 %v4396_v16 }
 0x19f   :  { %1484 = vmatpush1.bf16.msra.mxu0 %v4394_v19 }
 0x1a0   :  { %1485 = vmatprep.subr.bf16.mxu0 %v4399_v26 }
 0x1a3   :  { %1486 = vmatpush1.bf16.msra.mxu0 %v4397_v29 }
 0x1a4   :  { %1487 = vmatprep.subr.bf16.mxu0 %v4402_v32 }
 0x1a7   :  { %1488 = vmatpush1.bf16.msra.mxu0 %v4400_v33 }
 0x1a8   :  { %1489 = vmatprep.subr.bf16.mxu0 %v4405_v42 }
 0x1ab   :  { %1490 = vmatpush1.bf16.msra.mxu0 %v4403_v46 }
 0x1ac   :  { %1491 = vmatprep.subr.bf16.mxu0 %v4408_v50 }
 0x1af   :  { %1492 = vmatpush1.bf16.msra.mxu0 %v4406_v49 }
 0x1b0   :  { %1493 = vmatprep.subr.bf16.mxu0 %v4411_v52 }
 0x1b3   :  { %1494 = vmatpush1.bf16.msra.mxu0 %v4409_v53 }
 0x1b4   :  { %1504 = vmatprep.subr.bf16.mxu0 %v4414_v60 }
 0x1eb   :  { %v601_v17 = vpop.f32.mrb[0].mxu1 }
 0x1ec   :  { %v603_v20 = vpop.f32.mrb[1].mxu1  ;;  %v602_v23 = vadd.f32 %v601_v17, %v4979_v15 }
 0x1ed   :  { %v605_v22 = vpop.f32.mrb[2].mxu1  ;;  %v604_v27 = vadd.f32 %v603_v20, %v4982_v18 }
 0x1ee   :  { %v606_v24 = vadd.f32 %v605_v22, %v4979_v15  ;;  %v607_v25 = vpop.f32.mrb[3].mxu1 }
 0x1ef   :  { %v608_v28 = vadd.f32 %v607_v25, %v4982_v18 }
 0x1f0   :  { %v4988_v30 = vpack.c.bf16 %v606_v24, %v602_v23 }
 0x1f1   :  { %v4990_v31 = vpack.c.bf16 %v608_v28, %v604_v27 }
 0x1f3   :  { %v611_v21 = vpop.f32.mrb[4].mxu1  ;;  %1995 = vmatprep.mubr.bf16.mxu1 %v4990_v31 }
 0x1f4   :  { %v613_v36 = vpop.f32.mrb[5].mxu1  ;;  %1996 = vmatmul.mubr.bf16.vlgmr.msra.gmra.mrb[64].mxu1 %v4988_v30  ;;  %v612_v38 = vadd.f32 %v611_v21, %v4979_v15 }
 0x1f5   :  { %v615_v37 = vpop.f32.mrb[6].mxu1  ;;  %v614_v44 = vadd.f32 %v613_v36, %v4982_v18 }
 0x1f6   :  { %v616_v39 = vadd.f32 %v615_v37, %v4979_v15  ;;  %v617_v40 = vpop.f32.mrb[7].mxu1 }
 0x1f7   :  { %v618_v45 = vadd.f32 %v617_v40, %v4982_v18 }
 0x1f8   :  { %v4998_v47 = vpack.c.bf16 %v616_v39, %v612_v38 }
 0x1f9   :  { %v5000_v48 = vpack.c.bf16 %v618_v45, %v614_v44 }
 0x1fb   :  { %v621_v51 = vpop.f32.mrb[8].mxu1  ;;  %2005 = vmatprep.mubr.bf16.mxu1 %v5000_v48 }
 0x1fc   :  { %v623_v43 = vpop.f32.mrb[9].mxu1  ;;  %2006 = vmatmul.mubr.bf16.gmra.mrb[68].mxu1 %v4998_v47  ;;  %v622_v54 = vadd.f32 %v621_v51, %v4979_v15 }
 0x1fd   :  { %v625_v35 = vpop.f32.mrb[10].mxu1  ;;  %v624_v56 = vadd.f32 %v623_v43, %v4982_v18 }
 0x1fe   :  { %v626_v55 = vadd.f32 %v625_v35, %v4979_v15  ;;  %v627_v41 = vpop.f32.mrb[11].mxu1 }
 0x1ff   :  { %v628_v57 = vadd.f32 %v627_v41, %v4982_v18 }
 0x200   :  { %v5008_v58 = vpack.c.bf16 %v626_v55, %v622_v54 }
 0x201   :  { %v5010_v59 = vpack.c.bf16 %v628_v57, %v624_v56 }
 0x203   :  { %v631_v61 = vpop.f32.mrb[12].mxu1  ;;  %2015 = vmatprep.mubr.bf16.mxu1 %v5010_v59 }
 0x204   :  { %v633_v62 = vpop.f32.mrb[13].mxu1  ;;  %2016 = vmatmul.mubr.bf16.gmra.mrb[72].mxu1 %v5008_v58  ;;  %v632_v0 = vadd.f32 %v631_v61, %v4979_v15 }
 0x205   :  { %v635_v63 = vpop.f32.mrb[14].mxu1  ;;  %v634_v2 = vadd.f32 %v633_v62, %v4982_v18 }
 0x206   :  { %v636_v34 = vadd.f32 %v635_v63, %v4979_v15  ;;  %v637_v1 = vpop.f32.mrb[15].mxu1 }
 0x207   :  { %v638_v3 = vadd.f32 %v637_v1, %v4982_v18 }
 0x208   :  { %v5018_v4 = vpack.c.bf16 %v636_v34, %v632_v0 }
 0x209   :  { %v5020_v5 = vpack.c.bf16 %v638_v3, %v634_v2  ;;  %v824_v2 = vmax.bf16 %v4998_v47, %v4988_v30  ;;  %v835_v3 = vmax.bf16 %v5000_v48, %v4990_v31 }
 0x20b   :  { %v641_v6 = vpop.f32.mrb[16].mxu1  ;;  %2025 = vmatprep.mubr.bf16.mxu1 %v5020_v5 }
 0x20c   :  { %v643_v8 = vpop.f32.mrb[17].mxu1  ;;  %2026 = vmatmul.mubr.bf16.gmra.mrb[76].mxu1 %v5018_v4  ;;  %v642_v11 = vadd.f32 %v641_v6, %v4979_v15 }
 0x20d   :  { %v645_v9 = vpop.f32.mrb[18].mxu1  ;;  %v644_v16 = vadd.f32 %v643_v8, %v4982_v18 }
 0x20e   :  { %v646_v12 = vadd.f32 %v645_v9, %v4979_v15  ;;  %v647_v14 = vpop.f32.mrb[19].mxu1 }
 0x20f   :  { %v648_v17 = vadd.f32 %v647_v14, %v4982_v18  ;;  %v836_v14 = vunpack.i.l.bf16 %v835_v3 }
 0x210   :  { %v5028_v19 = vpack.c.bf16 %v646_v12, %v642_v11  ;;  %v825_v11 = vunpack.i.l.bf16 %v824_v2  ;;  %v826_v12 = vunpack.i.h.bf16 %v824_v2 }
 0x211   :  { %v5030_v20 = vpack.c.bf16 %v648_v17, %v644_v16  ;;  %v837_v16 = vunpack.i.h.bf16 %v835_v3 }
 0x213   :  { %v651_v22 = vpop.f32.mrb[20].mxu1  ;;  %2035 = vmatprep.mubr.bf16.mxu1 %v5030_v20 }
 0x214   :  { %v653_v23 = vpop.f32.mrb[21].mxu1  ;;  %2036 = vmatmul.mubr.bf16.gmra.mrb[80].mxu1 %v5028_v19  ;;  %v652_v25 = vadd.f32 %v651_v22, %v4979_v15 }
 0x215   :  { %v655_v24 = vpop.f32.mrb[22].mxu1  ;;  %v654_v28 = vadd.f32 %v653_v23, %v4982_v18 }
 0x216   :  { %v656_v26 = vadd.f32 %v655_v24, %v4979_v15  ;;  %v657_v27 = vpop.f32.mrb[23].mxu1 }
 0x217   :  { %v658_v29 = vadd.f32 %v657_v27, %v4982_v18 }
 0x218   :  { %v5038_v32 = vpack.c.bf16 %v656_v26, %v652_v25 }
 0x219   :  { %v5040_v21 = vpack.c.bf16 %v658_v29, %v654_v28  ;;  %v827_v28 = vmax.f32 %v825_v11, %v826_v12  ;;  %v838_v29 = vmax.f32 %v836_v14, %v837_v16 }
 0x21b   :  { %v661_v33 = vpop.f32.mrb[24].mxu1  ;;  %2045 = vmatprep.mubr.bf16.mxu1 %v5040_v21  ;;  %v879_v11 = vmax.bf16 %v5040_v21, %v5030_v20 }
 0x21c   :  { %v663_v36 = vpop.f32.mrb[25].mxu1  ;;  %2046 = vmatmul.mubr.bf16.gmra.mrb[84].mxu1 %v5038_v32  ;;  %v662_v38 = vadd.f32 %v661_v33, %v4979_v15 }
 0x21d   :  { %v665_v37 = vpop.f32.mrb[26].mxu1  ;;  %v664_v42 = vadd.f32 %v663_v36, %v4982_v18 }
 0x21e   :  { %v666_v39 = vadd.f32 %v665_v37, %v4979_v15  ;;  %v667_v40 = vpop.f32.mrb[27].mxu1 }
 0x21f   :  { %v668_v44 = vadd.f32 %v667_v40, %v4982_v18 }
 0x220   :  { %v5048_v45 = vpack.c.bf16 %v666_v39, %v662_v38  ;;  %v828_v38 = vrot.slane %v827_v28, 4  ;;  %v839_v39 = vrot.slane %v838_v29, 4 }
 0x221   :  { %v5050_v46 = vpack.c.bf16 %v668_v44, %v664_v42  ;;  %v846_v42 = vmax.bf16 %v5018_v4, %v5008_v58 }
 0x223   :  { %v671_v49 = vpop.f32.mrb[28].mxu1  ;;  %2055 = vmatprep.mubr.bf16.mxu1 %v5050_v46 }
 0x224   :  { %v673_v50 = vpop.f32.mrb[29].mxu1  ;;  %2056 = vmatmul.mubr.bf16.gmra.mrb[88].mxu1 %v5048_v45  ;;  %v672_v52 = vadd.f32 %v671_v49, %v4979_v15 }
 0x225   :  { %v675_v51 = vpop.f32.mrb[30].mxu1  ;;  %v674_v53 = vadd.f32 %v673_v50, %v4982_v18 }
 0x226   :  { %v676_v43 = vadd.f32 %v675_v51, %v4979_v15  ;;  %v677_v35 = vpop.f32.mrb[31].mxu1 }
 0x227   :  { %v678_v54 = vadd.f32 %v677_v35, %v4982_v18  ;;  %v829_v35 = vmax.f32 %v827_v28, %v828_v38 }
 0x228   :  { %v5058_v55 = vpack.c.bf16 %v676_v43, %v672_v52 }
 0x229   :  { %v5060_v41 = vpack.c.bf16 %v678_v54, %v674_v53  ;;  %v840_v53 = vmax.f32 %v838_v29, %v839_v39  ;;  %v857_v54 = vmax.bf16 %v5020_v5, %v5010_v59  ;;  %v880_v39 = vunpack.i.l.bf16 %v879_v11 }
 0x22b   :  { %v681_v56 = vpop.f32.mrb[32].mxu1  ;;  %2065 = vmatprep.mubr.bf16.mxu1 %v5060_v41  ;;  %v858_v2 = vunpack.i.l.bf16 %v857_v54  ;;  %v859_v3 = vunpack.i.h.bf16 %v857_v54 }
 0x22c   :  { %v683_v57 = vpop.f32.mrb[33].mxu1  ;;  %2066 = vmatmul.mubr.bf16.gmra.mrb[92].mxu1 %v5058_v55  ;;  %v682_v61 = vadd.f32 %v681_v56, %v4979_v15 }
 0x22d   :  { %v685_v60 = vpop.f32.mrb[34].mxu1  ;;  %v684_v0 = vadd.f32 %v683_v57, %v4982_v18  ;;  %v847_v57 = vunpack.i.l.bf16 %v846_v42 }
 0x22e   :  { %v686_v62 = vadd.f32 %v685_v60, %v4979_v15  ;;  %v687_v63 = vpop.f32.mrb[35].mxu1  ;;  %v848_v60 = vunpack.i.h.bf16 %v846_v42 }
 0x22f   :  { %v688_v34 = vadd.f32 %v687_v63, %v4982_v18 }
 0x230   :  { %v5068_v1 = vpack.c.bf16 %v686_v62, %v682_v61  ;;  %v868_v61 = vmax.bf16 %v5038_v32, %v5028_v19 }
 0x231   :  { %v5074_v6 = vpack.c.bf16 %v688_v34, %v684_v0  ;;  %v830_v0 = vrot.slane %v829_v35, 2  ;;  %v841_v34 = vrot.slane %v840_v53, 2 }
 0x233   :  { %v691_v8 = vpop.f32.mrb[36].mxu1  ;;  %2075 = vmatprep.mubr.bf16.mxu1 %v5074_v6  ;;  %v842_v28 = vmax.f32 %v840_v53, %v841_v34  ;;  %v901_v34 = vmax.bf16 %v5060_v41, %v5050_v46 }
 0x234   :  { %v693_v9 = vpop.f32.mrb[37].mxu1  ;;  %2076 = vmatmul.mubr.bf16.gmra.mrb[96].mxu1 %v5068_v1  ;;  %v692_v22 = vadd.f32 %v691_v8, %v4979_v15 }
 0x235   :  { %v695_v17 = vpop.f32.mrb[38].mxu1  ;;  %v694_v25 = vadd.f32 %v693_v9, %v4982_v18  ;;  %v849_v9 = vmax.f32 %v847_v57, %v848_v60 }
 0x236   :  { %v696_v23 = vadd.f32 %v695_v17, %v4979_v15  ;;  %v697_v24 = vpop.f32.mrb[39].mxu1  ;;  %v869_v17 = vunpack.i.l.bf16 %v868_v61 }
 0x237   :  { %v698_v26 = vadd.f32 %v697_v24, %v4982_v18 }
 0x238   :  { %v5082_v27 = vpack.c.bf16 %v696_v23, %v692_v22  ;;  %v870_v22 = vunpack.i.h.bf16 %v868_v61 }
 0x239   :  { %v5084_v33 = vpack.c.bf16 %v698_v26, %v694_v25  ;;  %v831_v26 = vmax.f32 %v829_v35, %v830_v0  ;;  %v890_v0 = vmax.bf16 %v5058_v55, %v5048_v45 }
 0x23a   :  { %v871_v38 = vmax.f32 %v869_v17, %v870_v22 }
 0x23b   :  { %v701_v36 = vpop.f32.mrb[40].mxu1  ;;  %2085 = vmatprep.mubr.bf16.mxu1 %v5084_v33 }
 0x23c   :  { %v703_v37 = vpop.f32.mrb[41].mxu1  ;;  %2086 = vmatmul.mubr.bf16.gmra.mrb[100].mxu1 %v5082_v27  ;;  %v702_v44 = vadd.f32 %v701_v36, %v4979_v15  ;;  %v850_v36 = vrot.slane %v849_v9, 4  ;;  %v872_v60 = vrot.slane %v871_v38, 4 }
 0x23d   :  { %v705_v40 = vpop.f32.mrb[42].mxu1  ;;  %v704_v51 = vadd.f32 %v703_v37, %v4982_v18  ;;  %v860_v37 = vmax.f32 %v858_v2, %v859_v3  ;;  %v912_v3 = vmax.bf16 %v5082_v27, %v5068_v1 }
 0x23e   :  { %v706_v49 = vadd.f32 %v705_v40, %v4979_v15  ;;  %v707_v50 = vpop.f32.mrb[43].mxu1  ;;  %v881_v40 = vunpack.i.h.bf16 %v879_v11  ;;  %v5140_v22 = vmax.f32 %v871_v38, %v872_v60 }
 0x23f   :  { %v708_v52 = vadd.f32 %v707_v50, %v4982_v18  ;;  %v843_v50 = vrot.slane %v842_v28, 1  ;;  %v861_v54 = vrot.slane %v860_v37, 4 }
 0x240   :  { %v5094_v43 = vpack.c.bf16 %v706_v49, %v702_v44  ;;  %v832_v49 = vrot.slane %v831_v26, 1  ;;  %v882_v61 = vmax.f32 %v880_v39, %v881_v40  ;;  %v891_v39 = vunpack.i.l.bf16 %v890_v0 }
 0x241   :  { %v5098_v56 = vpack.c.bf16 %v708_v52, %v704_v51  ;;  %v851_v52 = vmax.f32 %v849_v9, %v850_v36  ;;  %v902_v40 = vunpack.i.l.bf16 %v901_v34 }
 0x242   :  { %5995 = vst [vmem:[#allocation13_spill] sm:$0xff] %v5094_v43  ;;  %v5132_v11 = vmax.f32 %v831_v26, %v832_v49  ;;  %v892_v26 = vunpack.i.h.bf16 %v890_v0 }
 0x243   :  { %5996 = vst [vmem:[#allocation14_spill] sm:$0xff] %v5098_v56  ;;  %v711_v62 = vpop.f32.mrb[44].mxu1  ;;  %2095 = vmatprep.mubr.bf16.mxu1 %v5098_v56  ;;  %v852_v17 = vrot.slane %v851_v52, 2 }
 0x244   :  { %v713_v63 = vpop.f32.mrb[45].mxu1  ;;  %2096 = vmatmul.mubr.bf16.gmra.mrb[104].mxu1 %v5094_v43  ;;  %v712_v12 = vadd.f32 %v711_v62, %v4979_v15 }
 0x245   :  { %v715_v8 = vpop.f32.mrb[46].mxu1  ;;  %v714_v23 = vadd.f32 %v713_v63, %v4982_v18  ;;  %v5158_v13 = vmax.f32 %v851_v52, %v852_v17 }
 0x246   :  { %v716_v14 = vadd.f32 %v715_v8, %v4979_v15  ;;  %v717_v16 = vpop.f32.mrb[47].mxu1  ;;  %v923_v8 = vmax.bf16 %v5084_v33, %v5074_v6 }
 0x247   :  { %v718_v24 = vadd.f32 %v717_v16, %v4982_v18 }
 0x248   :  { %v5110_v25 = vpack.c.bf16 %v716_v14, %v712_v12  ;;  %v5134_v12 = vmax.f32 %v842_v28, %v843_v50  ;;  %v5136_v14 = vmax.f32 %v860_v37, %v861_v54  ;;  %v903_v28 = vunpack.i.h.bf16 %v901_v34 }
 0x249   :  { %v5112_v29 = vpack.c.bf16 %v718_v24, %v714_v23  ;;  %v883_v23 = vrot.slane %v882_v61, 4  ;;  %v913_v37 = vunpack.i.l.bf16 %v912_v3  ;;  %v924_v49 = vunpack.i.l.bf16 %v923_v8 }
 0x24a   :  { %5997 = vst [vmem:[#allocation15_spill] sm:$0xff] %v5110_v25  ;;  %v934_v16 = vmax.bf16 %v5110_v25, %v5094_v43  ;;  %v925_v50 = vunpack.i.h.bf16 %v923_v8  ;;  %v834_v34 = vpack.i.bf16 %v5132_v11, %v5132_v11  ;;  %v904_v7 = vmax.f32 %v902_v40, %v903_v28 }
 0x24b   :  { %5998 = vst [vmem:[#allocation16_spill] sm:$0xff] %v5112_v29  ;;  %v721_v42 = vpop.f32.mrb[48].mxu1  ;;  %2105 = vmatprep.mubr.bf16.mxu1 %v5112_v29  ;;  %v945_v24 = vmax.bf16 %v5112_v29, %v5098_v56  ;;  %v874_v11 = vrot.slane %v5140_v22, 2 }
 0x24c   :  { %v723_v44 = vpop.f32.mrb[49].mxu1  ;;  %2106 = vmatmul.mubr.bf16.gmra.mrb[108].mxu1 %v5110_v25  ;;  %v722_v35 = vadd.f32 %v721_v42, %v4979_v15  ;;  %v936_v54 = vunpack.i.h.bf16 %v934_v16  ;;  %v926_v25 = vmax.f32 %v924_v49, %v925_v50 }
 0x24d   :  { %v725_v51 = vpop.f32.mrb[50].mxu1  ;;  %v724_v62 = vadd.f32 %v723_v44, %v4982_v18  ;;  %v914_v44 = vunpack.i.h.bf16 %v912_v3  ;;  %v946_v60 = vunpack.i.l.bf16 %v945_v24  ;;  %v893_v3 = vmax.f32 %v891_v39, %v892_v26 }
 0x24e   :  { %v726_v53 = vadd.f32 %v725_v51, %v4979_v15  ;;  %v727_v57 = vpop.f32.mrb[51].mxu1  ;;  %v935_v51 = vunpack.i.l.bf16 %v934_v16  ;;  %v845_v16 = vpack.i.bf16 %v5134_v12, %v5134_v12  ;;  %v884_v39 = vmax.f32 %v882_v61, %v883_v23 }
 0x24f   :  { %v728_v63 = vadd.f32 %v727_v57, %v4982_v18  ;;  %v894_v28 = vrot.slane %v893_v3, 4  ;;  %v927_v50 = vrot.slane %v926_v25, 4 }
 0x250   :  { %v5124_v2 = vpack.c.bf16 %v726_v53, %v722_v35  ;;  %v5178_v56 = vunpack.c.l.b16 %v845_v16 }
 0x251   :  { %v5130_v9 = vpack.c.bf16 %v728_v63, %v724_v62  ;;  %v947_v62 = vunpack.i.h.bf16 %v945_v24  ;;  %v863_v24 = vrot.slane %v5136_v14, 2 }
 0x252   :  { %5999 = vst [vmem:[#allocation17_spill] sm:$0xff] %v5124_v2 }
 0x253   :  { %6000 = vst [vmem:[#allocation18_spill] sm:$0xff] %v5130_v9  ;;  %v731_v36 = vpop.f32.mrb[52].mxu1  ;;  %2115 = vmatprep.mubr.bf16.mxu1 %v5130_v9  ;;  %v948_v26 = vmax.f32 %v946_v60, %v947_v62 }
 0x254   :  { %v733_v42 = vpop.f32.mrb[53].mxu1  ;;  %2116 = vmatmul.mubr.bf16.gmra.mrb[112].mxu1 %v5124_v2  ;;  %v732_v35 = vadd.f32 %v731_v36, %v4979_v15  ;;  %v915_v36 = vmax.f32 %v913_v37, %v914_v44  ;;  %v905_v37 = vrot.slane %v904_v7, 4 }
 0x255   :  { %v735_v38 = vpop.f32.mrb[54].mxu1  ;;  %v734_v63 = vadd.f32 %v733_v42, %v4982_v18  ;;  %v937_v42 = vmax.f32 %v935_v51, %v936_v54 }
 0x256   :  { %v736_v53 = vadd.f32 %v735_v38, %v4979_v15  ;;  %v737_v57 = vpop.f32.mrb[55].mxu1  ;;  %v916_v49 = vrot.slane %v915_v36, 4 }
 0x257   :  { %v738_v0 = vadd.f32 %v737_v57, %v4982_v18  ;;  %v938_v61 = vrot.slane %v937_v42, 4 }
 0x258   :  { %v5152_v8 = vpack.c.bf16 %v736_v53, %v732_v35  ;;  %v917_v10 = vmax.f32 %v915_v36, %v916_v49 }
 0x259   :  { %v5156_v38 = vpack.c.bf16 %v738_v0, %v734_v63  ;;  %v949_v63 = vrot.slane %v948_v26, 4 }
 0x25a   :  { %6001 = vst [vmem:[#allocation19_spill] sm:$0xff] %v5152_v8  ;;  %v956_v57 = vmax.bf16 %v5152_v8, %v5124_v2  ;;  %v885_v2 = vrot.slane %v884_v39, 2  ;;  %v918_v16 = vrot.slane %v917_v10, 2 }
 0x25b   :  { %6002 = vst [vmem:[#allocation20_spill] sm:$0xff] %v5156_v38  ;;  %v967_v40 = vmax.bf16 %v5156_v38, %v5130_v9  ;;  %v741_v12 = vpop.f32.mrb[56].mxu1  ;;  %2125 = vmatprep.mubr.bf16.mxu1 %v5156_v38 }
 0x25c   :  { %v957_v52 = vunpack.i.l.bf16 %v956_v57  ;;  %v958_v17 = vunpack.i.h.bf16 %v956_v57  ;;  %v743_v44 = vpop.f32.mrb[57].mxu1  ;;  %2126 = vmatmul.mubr.bf16.gmra.mrb[116].mxu1 %v5152_v8  ;;  %v742_v53 = vadd.f32 %v741_v12, %v4979_v15  ;;  %v895_v8 = vmax.f32 %v893_v3, %v894_v28 }
 0x25d   :  { %v968_v51 = vunpack.i.l.bf16 %v967_v40  ;;  %v969_v54 = vunpack.i.h.bf16 %v967_v40  ;;  %v745_v35 = vpop.f32.mrb[58].mxu1  ;;  %v744_v38 = vadd.f32 %v743_v44, %v4982_v18  ;;  %v906_v40 = vmax.f32 %v904_v7, %v905_v37 }
 0x25e   :  { %v959_v23 = vmax.f32 %v957_v52, %v958_v17  ;;  %v746_v60 = vadd.f32 %v745_v35, %v4979_v15  ;;  %v747_v62 = vpop.f32.mrb[59].mxu1  ;;  %v928_v12 = vmax.f32 %v926_v25, %v927_v50  ;;  %v939_v17 = vmax.f32 %v937_v42, %v938_v61 }
 0x25f   :  { %v970_v0 = vmax.f32 %v968_v51, %v969_v54  ;;  %v748_v57 = vadd.f32 %v747_v62, %v4982_v18  ;;  %v5176_v35 = vunpack.c.l.b16 %v834_v34  ;;  %v950_v51 = vmax.f32 %v948_v26, %v949_v63 }
 0x260   :  { %v960_v9 = vrot.slane %v959_v23, 4  ;;  %v5172_v29 = vpack.c.bf16 %v746_v60, %v742_v53  ;;  %v854_v3 = vrot.slane %v5158_v13, 1  ;;  %v864_v28 = vmax.f32 %v5136_v14, %v863_v24 }
 0x261   :  { %v971_v43 = vrot.slane %v970_v0, 4  ;;  %v5174_v52 = vpack.c.bf16 %v748_v57, %v744_v38  ;;  %v896_v7 = vrot.slane %v895_v8, 2  ;;  %v875_v25 = vmax.f32 %v5140_v22, %v874_v11 }
 0x262   :  { %v961_v44 = vmax.f32 %v959_v23, %v960_v9  ;;  %v886_v34 = vmax.f32 %v884_v39, %v885_v2  ;;  %v907_v38 = vrot.slane %v906_v40, 2  ;;  %v929_v26 = vrot.slane %v928_v12, 2 }
 0x263   :  { %v751_v54 = vpop.f32.mrb[60].mxu1  ;;  %2135 = vmatprep.mubr.bf16.mxu1 %v5174_v52  ;;  %v972_v36 = vmax.f32 %v970_v0, %v971_v43  ;;  %v940_v9 = vrot.slane %v939_v17, 2  ;;  %v951_v23 = vrot.slane %v950_v51, 2  ;;  %v865_v53 = vrot.slane %v864_v28, 1 }
 0x264   :  { %v753_v37 = vpop.f32.mrb[61].mxu1  ;;  %2136 = vmatmul.mubr.bf16.gmra.mrb[120].mxu1 %v5172_v29  ;;  %v752_v49 = vadd.f32 %v751_v54, %v4979_v15  ;;  %v962_v14 = vrot.slane %v961_v44, 2  ;;  %v897_v60 = vmax.f32 %v895_v8, %v896_v7  ;;  %v855_v11 = vmax.f32 %v5158_v13, %v854_v3 }
 0x265   :  { %v755_v42 = vpop.f32.mrb[62].mxu1  ;;  %v754_v43 = vadd.f32 %v753_v37, %v4982_v18  ;;  %v973_v22 = vrot.slane %v972_v36, 2  ;;  %v908_v39 = vmax.f32 %v906_v40, %v907_v38  ;;  %v919_v62 = vmax.f32 %v917_v10, %v918_v16 }
 0x266   :  { %v756_v50 = vadd.f32 %v755_v42, %v4979_v15  ;;  %v757_v61 = vpop.f32.mrb[63].mxu1  ;;  %v876_v0 = vrot.slane %v875_v25, 1  ;;  %v930_v15 = vmax.f32 %v928_v12, %v929_v26  ;;  %v941_v57 = vmax.f32 %v939_v17, %v940_v9 }
 0x267   :  { %v758_v24 = vadd.f32 %v757_v61, %v4982_v18  ;;  %v887_v37 = vrot.slane %v886_v34, 1  ;;  %v952_v42 = vmax.f32 %v950_v51, %v951_v23  ;;  %v963_v18 = vmax.f32 %v961_v44, %v962_v14 }
 0x268   :  { %v5189_v2 = vpack.c.bf16 %v756_v50, %v752_v49  ;;  %v898_v7 = vrot.slane %v897_v60, 1  ;;  %v974_v10 = vmax.f32 %v972_v36, %v973_v22  ;;  %v909_v3 = vrot.slane %v908_v39, 1 }
 0x269   :  { %v5192_v63 = vpack.c.bf16 %v758_v24, %v754_v43  ;;  %v920_v12 = vrot.slane %v919_v62, 1  ;;  %v866_v16 = vmax.f32 %v864_v28, %v865_v53  ;;  %v931_v26 = vrot.slane %v930_v15, 1 }
 0x26a   :  { %6003 = vst [vmem:[#allocation21_spill] sm:$0xff] %v5189_v2  ;;  %v978_v54 = vmax.bf16 %v5189_v2, %v5172_v29  ;;  %v942_v9 = vrot.slane %v941_v57, 1  ;;  %v877_v44 = vmax.f32 %v875_v25, %v876_v0  ;;  %v964_v49 = vrot.slane %v963_v18, 1 }
 0x26b   :  { %6004 = vst [vmem:[#allocation22_spill] sm:$0xff] %v5192_v63  ;;  %v989_v8 = vmax.bf16 %v5192_v63, %v5174_v52  ;;  %2145 = vmatprep.mubr.bf16.mxu1 %v5192_v63  ;;  %v953_v61 = vrot.slane %v952_v42, 1  ;;  %v888_v23 = vmax.f32 %v886_v34, %v887_v37  ;;  %v899_v14 = vmax.f32 %v897_v60, %v898_v7 }
 0x26c   :  { %v979_v13 = vunpack.i.l.bf16 %v978_v54  ;;  %v980_v40 = vunpack.i.h.bf16 %v978_v54  ;;  %2146 = vmatmul.mubr.bf16.gmra.mrb[124].mxu1 %v5189_v2  ;;  %v975_v24 = vrot.slane %v974_v10, 1  ;;  %v856_v54 = vpack.i.bf16 %v855_v11, %v855_v11 }
 0x26d   :  { %v990_v17 = vunpack.i.l.bf16 %v989_v8  ;;  %v991_v38 = vunpack.i.h.bf16 %v989_v8  ;;  %v910_v36 = vmax.f32 %v908_v39, %v909_v3  ;;  %v921_v22 = vmax.f32 %v919_v62, %v920_v12 }
 0x26e   :  { %v981_v51 = vmax.f32 %v979_v13, %v980_v40  ;;  %v867_v8 = vpack.i.bf16 %v866_v16, %v866_v16  ;;  %v943_v28 = vmax.f32 %v941_v57, %v942_v9  ;;  %v932_v63 = vmax.f32 %v930_v15, %v931_v26 }
 0x26f   :  { %v992_v50 = vmax.f32 %v990_v17, %v991_v38  ;;  %v878_v13 = vpack.i.bf16 %v877_v44, %v877_v44  ;;  %v965_v25 = vmax.f32 %v963_v18, %v964_v49  ;;  %v954_v40 = vmax.f32 %v952_v42, %v953_v61 }
 0x270   :  { %v982_v43 = vrot.slane %v981_v51, 4  ;;  %v889_v34 = vpack.i.bf16 %v888_v23, %v888_v23  ;;  %v900_v60 = vpack.i.bf16 %v899_v14, %v899_v14  ;;  %v976_v7 = vmax.f32 %v974_v10, %v975_v24 }
 0x271   :  { %v993_v2 = vrot.slane %v992_v50, 4  ;;  %v1104_v11 = vunpack.c.l.b16 %v856_v54  ;;  %v911_v39 = vpack.i.bf16 %v910_v36, %v910_v36  ;;  %v922_v62 = vpack.i.bf16 %v921_v22, %v921_v22 }
 0x272   :  { %v983_v53 = vmax.f32 %v981_v51, %v982_v43  ;;  %v1105_v12 = vunpack.c.l.b16 %v867_v8  ;;  %v944_v17 = vpack.i.bf16 %v943_v28, %v943_v28  ;;  %v933_v38 = vpack.i.bf16 %v932_v63, %v932_v63 }
 0x273   :  { %v994_v0 = vmax.f32 %v992_v50, %v993_v2  ;;  %v1106_v15 = vunpack.c.l.b16 %v878_v13  ;;  %v966_v16 = vpack.i.bf16 %v965_v25, %v965_v25  ;;  %v955_v26 = vpack.i.bf16 %v954_v40, %v954_v40 }
 0x274   :  { %v984_v37 = vrot.slane %v983_v53, 2  ;;  %v1107_v2 = vunpack.c.l.b16 %v889_v34  ;;  %v1108_v42 = vunpack.c.l.b16 %v900_v60  ;;  %v977_v51 = vpack.i.bf16 %v976_v7, %v976_v7 }
 0x275   :  { %v995_v3 = vrot.slane %v994_v0, 2  ;;  %v1110_v44 = vunpack.c.l.b16 %v922_v62  ;;  %v1109_v10 = vunpack.c.l.b16 %v911_v39  ;;  %v1119_v50 = vsel %vm1118_vm2, %v1104_v11, %v5176_v35 }
 0x276   :  { %v985_v57 = vmax.f32 %v983_v53, %v984_v37  ;;  %v1112_v61 = vunpack.c.l.b16 %v944_v17  ;;  %v1111_v14 = vunpack.c.l.b16 %v933_v38  ;;  %v1132_v63 = vsel %vm1118_vm2, %v1105_v12, %v5178_v56  ;;  %v4417_v17 = vld [vmem:[#allocation3 + $0x2c] ss:$16 sps:$4 sm:$0xff]  }
 0x277   :  { %v996_v18 = vmax.f32 %v994_v0, %v995_v3  ;;  %v1114_v43 = vunpack.c.l.b16 %v966_v16  ;;  %v1113_v54 = vunpack.c.l.b16 %v955_v26  ;;  %v1121_v36 = vsel %vm1120_vm3, %v1106_v15, %v1119_v50  ;;  %v4412_v3 = vld [vmem:[#allocation3 + $0x8] ss:$16 sps:$4 sm:$0xff]   ;;  %v4420_v38 = vld [vmem:[#allocation3 + $0x4c] ss:$16 sps:$4 sm:$0xff]  }
 0x278   :  { %v986_v9 = vrot.slane %v985_v57, 1  ;;  %v1115_v22 = vunpack.c.l.b16 %v977_v51  ;;  %v1133_v8 = vsel %vm1120_vm3, %v1107_v2, %v1132_v63  ;;  %v1123_v53 = vsel %vm1122_vm4, %v1108_v42, %v1121_v36  ;;  %v4418_v15 = vld [vmem:[#allocation3 + $0x48] ss:$16 sps:$4 sm:$0xff]   ;;  %v4423_v16 = vld [vmem:[#allocation3 + $0x6c] ss:$16 sps:$4 sm:$0xff]  }
 0x279   :  { %v997_v49 = vrot.slane %v996_v18, 1  ;;  %v1134_v35 = vsel %vm1122_vm4, %v1109_v10, %v1133_v8  ;;  %v1125_v25 = vsel %vm1124_vm5, %v1110_v44, %v1123_v53  ;;  %v4421_v26 = vld [vmem:[#allocation3 + $0x68] ss:$16 sps:$4 sm:$0xff]   ;;  %v4429_v42 = vld [vmem:[#allocation3 + $0xac] ss:$16 sps:$4 sm:$0xff]  }
 0x27a   :  { %v987_v23 = vmax.f32 %v985_v57, %v986_v9  ;;  %v1135_v0 = vsel %vm1124_vm5, %v1111_v14, %v1134_v35  ;;  %v1127_v40 = vsel %vm1126_vm6, %v1112_v61, %v1125_v25  ;;  %v4415_v57 = vld [vmem:[#allocation3 + $0x28] ss:$16 sps:$4 sm:$0xff]   ;;  %v4432_v51 = vld [vmem:[#allocation3 + $0xcc] ss:$16 sps:$4 sm:$0xff]  }
 0x27b   :  { %v998_v24 = vmax.f32 %v996_v18, %v997_v49  ;;  %v1136_v60 = vsel %vm1126_vm6, %v1113_v54, %v1135_v0  ;;  %v1129_v37 = vsel %vm1128_vm7, %v1114_v43, %v1127_v40  ;;  %v4426_v18 = vld [vmem:[#allocation3 + $0x8c] ss:$16 sps:$4 sm:$0xff]   ;;  %v4424_v2 = vld [vmem:[#allocation3 + $0x88] ss:$16 sps:$4 sm:$0xff]  }
 0x27c   :  { %v988_v28 = vpack.i.bf16 %v987_v23, %v987_v23  ;;  %v1137_v7 = vsel %vm1128_vm7, %v1115_v22, %v1136_v60  ;;  %v4427_v9 = vld [vmem:[#allocation3 + $0xa8] ss:$16 sps:$4 sm:$0xff]   ;;  %v4435_v49 = vld [vmem:[#allocation3 + $0xec] ss:$16 sps:$4 sm:$0xff]  }
 0x27d   :  { %v999_v13 = vpack.i.bf16 %v998_v24, %v998_v24  ;;  %v4430_v44 = vld [vmem:[#allocation3 + $0xc8] ss:$16 sps:$4 sm:$0xff]   ;;  %v4438_v50 = vld [vmem:[#allocation3 + $0x10c] ss:$16 sps:$4 sm:$0xff]  }
 0x27e   :  { %v1116_v56 = vunpack.c.l.b16 %v988_v28  ;;  %v4433_v10 = vld [vmem:[#allocation3 + $0xe8] ss:$16 sps:$4 sm:$0xff]   ;;  %v4441_v23 = vld [vmem:[#allocation3 + $0x12c] ss:$16 sps:$4 sm:$0xff]  }
 0x27f   :  { %v1117_v34 = vunpack.c.l.b16 %v999_v13  ;;  %v4436_v61 = vld [vmem:[#allocation3 + $0x108] ss:$16 sps:$4 sm:$0xff]   ;;  %v4444_v63 = vld [vmem:[#allocation3 + $0x14c] ss:$16 sps:$4 sm:$0xff]  }
 0x280   :  { %v1131_v11 = vsel %vm1130_vm8, %v1116_v56, %v1129_v37  ;;  %v4439_v14 = vld [vmem:[#allocation3 + $0x128] ss:$16 sps:$4 sm:$0xff]   ;;  %v4447_v24 = vld [vmem:[#allocation3 + $0x16c] ss:$16 sps:$4 sm:$0xff]  }
 0x281   :  { %v1138_v39 = vsel %vm1130_vm8, %v1117_v34, %v1137_v7  ;;  %v5216_v12 = vpack.c.b16 %v1131_v11, %v1131_v11  ;;  %v4442_v43 = vld [vmem:[#allocation3 + $0x148] ss:$16 sps:$4 sm:$0xff]   ;;  %v4450_v36 = vld [vmem:[#allocation3 + $0x18c] ss:$16 sps:$4 sm:$0xff]  }
 0x282   :  { %v1140_v62 = vpack.c.b16 %v1138_v39, %v1138_v39  ;;  %v4445_v54 = vld [vmem:[#allocation3 + $0x168] ss:$16 sps:$4 sm:$0xff]   ;;  %v4453_v8 = vld [vmem:[#allocation3 + $0x1ac] ss:$16 sps:$4 sm:$0xff]  }
 0x283   :  { %v4448_v22 = vld [vmem:[#allocation3 + $0x188] ss:$16 sps:$4 sm:$0xff]   ;;  %v4456_v53 = vld [vmem:[#allocation3 + $0x1cc] ss:$16 sps:$4 sm:$0xff]  }
 0x284   :  { %1495 = vmatprep.mubr.bf16.mxu0 %v1140_v62  ;;  %v4451_v28 = vld [vmem:[#allocation3 + $0x1a8] ss:$16 sps:$4 sm:$0xff]   ;;  %v4459_v35 = vld [vmem:[#allocation3 + $0x1ec] ss:$16 sps:$4 sm:$0xff]  }
 0x285   :  { %1496 = vmatmul.mubr.bf16.vlgmr.msra.gmra.mrb[32].mxu0 %v5216_v12  ;;  %v4454_v13 = vld [vmem:[#allocation3 + $0x1c8] ss:$16 sps:$4 sm:$0xff]   ;;  %v4462_v0 = vld [vmem:[#allocation5 + $0xc] ss:$16 sps:$4 sm:$0xff]  }
 0x286   :  { %1505 = vmatpush1.bf16.msra.mxu0 %v4412_v3  ;;  %1536 = vmatprep.mubr.bf16.mxu0 %v1140_v62  ;;  %v4457_v25 = vld [vmem:[#allocation3 + $0x1e8] ss:$16 sps:$4 sm:$0xff]   ;;  %v4465_v40 = vld [vmem:[#allocation5 + $0x2c] ss:$16 sps:$4 sm:$0xff]  }
 0x287   :  { %1506 = vmatprep.subr.bf16.mxu0 %v4417_v17  ;;  %v4460_v56 = vld [vmem:[#allocation5 + $0x8] ss:$16 sps:$4 sm:$0xff]   ;;  %v4510_v37 = vld [vmem:[#allocation7 + $0x4] ss:$8 sps:$4 sm:$0xff]  }
 0x288   :  { %v4463_v34 = vld [vmem:[#allocation5 + $0x28] ss:$16 sps:$4 sm:$0xff]   ;;  %v4468_v11 = vld [vmem:[#allocation5 + $0x4c] ss:$16 sps:$4 sm:$0xff]   ;;  %3285 = vmatprep.subr.bf16.mxu1 %v4510_v37 }
 0x289   :  { %v4508_v60 = vld [vmem:[#allocation7] ss:$8 sps:$4 sm:$0xff]   ;;  %v4471_v17 = vld [vmem:[#allocation5 + $0x6c] ss:$16 sps:$4 sm:$0xff]  }
 0x28a   :  { %1507 = vmatpush1.bf16.msra.mxu0 %v4415_v57  ;;  %3286 = vmatpush1.bf16.msra.mxu1 %v4508_v60  ;;  %v4511_v57 = vld [vmem:[#allocation7 + $0x10] ss:$8 sps:$4 sm:$0xff]   ;;  %v4492_v60 = vld [vmem:[#allocation5 + $0x14c] ss:$16 sps:$4 sm:$0xff]  }
 0x28b   :  { %1508 = vmatprep.subr.bf16.mxu0 %v4420_v38  ;;  %v4513_v38 = vld [vmem:[#allocation7 + $0x14] ss:$8 sps:$4 sm:$0xff]  }
 0x28c   :  { %3287 = vmatprep.subr.bf16.mxu1 %v4513_v38  ;;  %v4523_v38 = vld [vmem:[#allocation7 + $0x50] ss:$8 sps:$4 sm:$0xff]  }
 0x28e   :  { %1509 = vmatpush1.bf16.msra.mxu0 %v4418_v15  ;;  %3288 = vmatpush1.bf16.msra.mxu1 %v4511_v57  ;;  %v4493_v57 = vld [vmem:[#allocation5 + $0x168] ss:$16 sps:$4 sm:$0xff]  }
 0x28f   :  { %1510 = vmatprep.subr.bf16.mxu0 %v4423_v16  ;;  %v4474_v16 = vld [vmem:[#allocation5 + $0x8c] ss:$16 sps:$4 sm:$0xff]  }
 0x292   :  { %1511 = vmatpush1.bf16.msra.mxu0 %v4421_v26 }
 0x293   :  { %1512 = vmatprep.subr.bf16.mxu0 %v4426_v18 }
 0x296   :  { %1513 = vmatpush1.bf16.msra.mxu0 %v4424_v2 }
 0x297   :  { %1514 = vmatprep.subr.bf16.mxu0 %v4429_v42  ;;  %v4472_v42 = vld [vmem:[#allocation5 + $0x88] ss:$16 sps:$4 sm:$0xff]  }
 0x29a   :  { %1515 = vmatpush1.bf16.msra.mxu0 %v4427_v9  ;;  %v4477_v9 = vld [vmem:[#allocation5 + $0xac] ss:$16 sps:$4 sm:$0xff]  }
 0x29b   :  { %1516 = vmatprep.subr.bf16.mxu0 %v4432_v51  ;;  %v4475_v51 = vld [vmem:[#allocation5 + $0xa8] ss:$16 sps:$4 sm:$0xff]  }
 0x29e   :  { %1517 = vmatpush1.bf16.msra.mxu0 %v4430_v44 }
 0x29f   :  { %1518 = vmatprep.subr.bf16.mxu0 %v4435_v49  ;;  %v4480_v49 = vld [vmem:[#allocation5 + $0xcc] ss:$16 sps:$4 sm:$0xff]  }
 0x2a2   :  { %1519 = vmatpush1.bf16.msra.mxu0 %v4433_v10 }
 0x2a3   :  { %1520 = vmatprep.subr.bf16.mxu0 %v4438_v50 }
 0x2a6   :  { %1521 = vmatpush1.bf16.msra.mxu0 %v4436_v61 }
 0x2a7   :  { %1522 = vmatprep.subr.bf16.mxu0 %v4441_v23  ;;  %v4478_v23 = vld [vmem:[#allocation5 + $0xc8] ss:$16 sps:$4 sm:$0xff]  }
 0x2aa   :  { %1523 = vmatpush1.bf16.msra.mxu0 %v4439_v14  ;;  %v4483_v14 = vld [vmem:[#allocation5 + $0xec] ss:$16 sps:$4 sm:$0xff]  }
 0x2ab   :  { %1524 = vmatprep.subr.bf16.mxu0 %v4444_v63  ;;  %v4481_v63 = vld [vmem:[#allocation5 + $0xe8] ss:$16 sps:$4 sm:$0xff]  }
 0x2ae   :  { %1525 = vmatpush1.bf16.msra.mxu0 %v4442_v43  ;;  %v4514_v43 = vld [vmem:[#allocation7 + $0x20] ss:$8 sps:$4 sm:$0xff]  }
 0x2af   :  { %1526 = vmatprep.subr.bf16.mxu0 %v4447_v24  ;;  %v4516_v24 = vld [vmem:[#allocation7 + $0x24] ss:$8 sps:$4 sm:$0xff]  }
 0x2b0   :  { %3289 = vmatprep.subr.bf16.mxu1 %v4516_v24  ;;  %v4529_v24 = vld [vmem:[#allocation7 + $0x60] ss:$8 sps:$4 sm:$0xff]  }
 0x2b1   :  { %3290 = vmatpush1.bf16.msra.mxu1 %v4514_v43  ;;  %v4499_v43 = vld [vmem:[#allocation5 + $0x1a8] ss:$16 sps:$4 sm:$0xff]  }
 0x2b2   :  { %1527 = vmatpush1.bf16.msra.mxu0 %v4445_v54 }
 0x2b3   :  { %1528 = vmatprep.subr.bf16.mxu0 %v4450_v36  ;;  %v4486_v36 = vld [vmem:[#allocation5 + $0x10c] ss:$16 sps:$4 sm:$0xff]  }
 0x2b6   :  { %1529 = vmatpush1.bf16.msra.mxu0 %v4448_v22  ;;  %v4519_v22 = vld [vmem:[#allocation7 + $0x34] ss:$8 sps:$4 sm:$0xff]  }
 0x2b7   :  { %1530 = vmatprep.subr.bf16.mxu0 %v4453_v8  ;;  %3291 = vmatprep.subr.bf16.mxu1 %v4519_v22 }
 0x2ba   :  { %1531 = vmatpush1.bf16.msra.mxu0 %v4451_v28 }
 0x2bb   :  { %1532 = vmatprep.subr.bf16.mxu0 %v4456_v53  ;;  %v4517_v53 = vld [vmem:[#allocation7 + $0x30] ss:$8 sps:$4 sm:$0xff]  }
 0x2bc   :  { %3292 = vmatpush1.bf16.msra.mxu1 %v4517_v53  ;;  %v4504_v53 = vld [vmem:[#allocation5 + $0x1cc] ss:$16 sps:$4 sm:$0xff]  }
 0x2be   :  { %1533 = vmatpush1.bf16.msra.mxu0 %v4454_v13 }
 0x2bf   :  { %1534 = vmatprep.subr.bf16.mxu0 %v4459_v35  ;;  %v4484_v35 = vld [vmem:[#allocation5 + $0x108] ss:$16 sps:$4 sm:$0xff]  }
 0x2c2   :  { %1535 = vmatpush1.bf16.msra.mxu0 %v4457_v25  ;;  %v4489_v25 = vld [vmem:[#allocation5 + $0x12c] ss:$16 sps:$4 sm:$0xff]  }
 0x2c3   :  { %2156 = vmatprep.subr.bf16.mxu0 %v4462_v0  ;;  %v4487_v0 = vld [vmem:[#allocation5 + $0x128] ss:$16 sps:$4 sm:$0xff]  }
 0x2c5   :  { %1537 = vmatmul.mubr.bf16.vlgmr.msra.gmra.mrb[36].mxu0 %v5216_v12  ;;  %v4466_v12 = vld [vmem:[#allocation5 + $0x48] ss:$16 sps:$4 sm:$0xff]  }
 0x2c6   :  { %2157 = vmatpush1.bf16.msra.mxu0 %v4460_v56  ;;  %2188 = vmatprep.mubr.bf16.mxu0 %v4990_v31  ;;  %v4469_v31 = vld [vmem:[#allocation5 + $0x68] ss:$16 sps:$4 sm:$0xff]  }
 0x2c7   :  { %v5221_v7 = vpop.f32.mrb[64].mxu1  ;;  %2158 = vmatprep.subr.bf16.mxu0 %v4465_v40  ;;  %v4520_v56 = vld [vmem:[#allocation7 + $0x40] ss:$8 sps:$4 sm:$0xff]   ;;  %v4522_v40 = vld [vmem:[#allocation7 + $0x44] ss:$8 sps:$4 sm:$0xff]  }
 0x2c8   :  { %v5223_v39 = vpop.f32.mrb[65].mxu1  ;;  %3293 = vmatprep.subr.bf16.mxu1 %v4522_v40  ;;  %v4507_v40 = vld [vmem:[#allocation5 + $0x1ec] ss:$16 sps:$4 sm:$0xff]  }
 0x2c9   :  { %v5225_v62 = vpop.f32.mrb[66].mxu1  ;;  %3294 = vmatpush1.bf16.msra.mxu1 %v4520_v56  ;;  %v4502_v56 = vld [vmem:[#allocation5 + $0x1c8] ss:$16 sps:$4 sm:$0xff]  }
 0x2ca   :  { %2159 = vmatpush1.bf16.msra.mxu0 %v4463_v34  ;;  %v5227_v3 = vpop.f32.mrb[67].mxu1 }
 0x2cb   :  { %2160 = vmatprep.subr.bf16.mxu0 %v4468_v11 }
 0x2ce   :  { %2161 = vmatpush1.bf16.msra.mxu0 %v4466_v12 }
 0x2cf   :  { %v5229_v15 = vpop.f32.mrb[68].mxu1  ;;  %2162 = vmatprep.subr.bf16.mxu0 %v4471_v17  ;;  %v4490_v17 = vld [vmem:[#allocation5 + $0x148] ss:$16 sps:$4 sm:$0xff]  }
 0x2d0   :  { %v5231_v26 = vpop.f32.mrb[69].mxu1 }
 0x2d1   :  { %v5233_v18 = vpop.f32.mrb[70].mxu1 }
 0x2d2   :  { %2163 = vmatpush1.bf16.msra.mxu0 %v4469_v31  ;;  %v5235_v2 = vpop.f32.mrb[71].mxu1  ;;  %v4495_v31 = vld [vmem:[#allocation5 + $0x16c] ss:$16 sps:$4 sm:$0xff]  }
 0x2d3   :  { %2164 = vmatprep.subr.bf16.mxu0 %v4474_v16  ;;  %v4525_v16 = vld [vmem:[#allocation7 + $0x54] ss:$8 sps:$4 sm:$0xff]  }
 0x2d4   :  { %3295 = vmatprep.subr.bf16.mxu1 %v4525_v16  ;;  %v5279_v16 = vld [vmem:[#allocation7 + $0x104] ss:$8 sps:$4 sm:$0xff]  }
 0x2d5   :  { %3296 = vmatpush1.bf16.msra.mxu1 %v4523_v38 }
 0x2d6   :  { %2165 = vmatpush1.bf16.msra.mxu0 %v4472_v42 }
 0x2d7   :  { %v5237_v44 = vpop.f32.mrb[72].mxu1  ;;  %2166 = vmatprep.subr.bf16.mxu0 %v4477_v9  ;;  %v4498_v9 = vld [vmem:[#allocation5 + $0x18c] ss:$16 sps:$4 sm:$0xff]  }
 0x2d8   :  { %v5239_v10 = vpop.f32.mrb[73].mxu1 }
 0x2d9   :  { %v5241_v50 = vpop.f32.mrb[74].mxu1 }
 0x2da   :  { %2167 = vmatpush1.bf16.msra.mxu0 %v4475_v51  ;;  %v5243_v61 = vpop.f32.mrb[75].mxu1 }
 0x2db   :  { %2168 = vmatprep.subr.bf16.mxu0 %v4480_v49 }
 0x2de   :  { %2169 = vmatpush1.bf16.msra.mxu0 %v4478_v23 }
 0x2df   :  { %v5245_v54 = vpop.f32.mrb[76].mxu1  ;;  %2170 = vmatprep.subr.bf16.mxu0 %v4483_v14  ;;  %v4496_v14 = vld [vmem:[#allocation5 + $0x188] ss:$16 sps:$4 sm:$0xff]  }
 0x2e0   :  { %v5247_v8 = vpop.f32.mrb[77].mxu1 }
 0x2e1   :  { %v5249_v28 = vpop.f32.mrb[78].mxu1 }
 0x2e2   :  { %2171 = vmatpush1.bf16.msra.mxu0 %v4481_v63  ;;  %v5251_v13 = vpop.f32.mrb[79].mxu1  ;;  %v4501_v63 = vld [vmem:[#allocation5 + $0x1ac] ss:$16 sps:$4 sm:$0xff]  }
 0x2e3   :  { %2172 = vmatprep.subr.bf16.mxu0 %v4486_v36  ;;  %v4531_v36 = vld [vmem:[#allocation7 + $0x64] ss:$8 sps:$4 sm:$0xff]  }
 0x2e4   :  { %3297 = vmatprep.subr.bf16.mxu1 %v4531_v36  ;;  %v5287_v36 = vld [vmem:[#allocation7 + $0x100] ss:$8 sps:$4 sm:$0xff]  }
 0x2e5   :  { %3298 = vmatpush1.bf16.msra.mxu1 %v4529_v24 }
 0x2e6   :  { %2173 = vmatpush1.bf16.msra.mxu0 %v4484_v35 }
 0x2e7   :  { %v5253_v34 = vpop.f32.mrb[80].mxu1  ;;  %2174 = vmatprep.subr.bf16.mxu0 %v4489_v25 }
 0x2e8   :  { %v5255_v37 = vpop.f32.mrb[81].mxu1 }
 0x2e9   :  { %v5257_v11 = vpop.f32.mrb[82].mxu1 }
 0x2ea   :  { %2175 = vmatpush1.bf16.msra.mxu0 %v4487_v0  ;;  %v5259_v12 = vpop.f32.mrb[83].mxu1 }
 0x2eb   :  { %2176 = vmatprep.subr.bf16.mxu0 %v4492_v60  ;;  %v4535_v60 = vld [vmem:[#allocation7 + $0x70] ss:$8 sps:$4 sm:$0xff]  }
 0x2ee   :  { %2177 = vmatpush1.bf16.msra.mxu0 %v4490_v17  ;;  %v4537_v17 = vld [vmem:[#allocation7 + $0x74] ss:$8 sps:$4 sm:$0xff]  }
 0x2ef   :  { %v5261_v42 = vpop.f32.mrb[84].mxu1  ;;  %2178 = vmatprep.subr.bf16.mxu0 %v4495_v31  ;;  %v4505_v31 = vld [vmem:[#allocation5 + $0x1e8] ss:$16 sps:$4 sm:$0xff]   ;;  %3299 = vmatprep.subr.bf16.mxu1 %v4537_v17 }
 0x2f0   :  { %v5263_v51 = vpop.f32.mrb[85].mxu1  ;;  %3300 = vmatpush1.bf16.msra.mxu1 %v4535_v60  ;;  %v5295_v60 = vld [vmem:[#allocation7 + $0x110] ss:$8 sps:$4 sm:$0xff]  }
 0x2f1   :  { %v5265_v49 = vpop.f32.mrb[86].mxu1 }
 0x2f2   :  { %2179 = vmatpush1.bf16.msra.mxu0 %v4493_v57  ;;  %v5267_v23 = vpop.f32.mrb[87].mxu1  ;;  %v4543_v57 = vld [vmem:[#allocation7 + $0x84] ss:$8 sps:$4 sm:$0xff]  }
 0x2f3   :  { %2180 = vmatprep.subr.bf16.mxu0 %v4498_v9  ;;  %3301 = vmatprep.subr.bf16.mxu1 %v4543_v57 }
 0x2f6   :  { %2181 = vmatpush1.bf16.msra.mxu0 %v4496_v14  ;;  %v4541_v14 = vld [vmem:[#allocation7 + $0x80] ss:$8 sps:$4 sm:$0xff]  }
 0x2f7   :  { %v5269_v22 = vpop.f32.mrb[88].mxu1  ;;  %2182 = vmatprep.subr.bf16.mxu0 %v4501_v63  ;;  %3302 = vmatpush1.bf16.msra.mxu1 %v4541_v14  ;;  %v4553_v14 = vld [vmem:[#allocation7 + $0xa0] ss:$8 sps:$4 sm:$0xff]  }
 0x2f8   :  { %v5271_v35 = vpop.f32.mrb[89].mxu1 }
 0x2f9   :  { %v5273_v25 = vpop.f32.mrb[90].mxu1 }
 0x2fa   :  { %2183 = vmatpush1.bf16.msra.mxu0 %v4499_v43  ;;  %v5275_v0 = vpop.f32.mrb[91].mxu1  ;;  %v4549_v43 = vld [vmem:[#allocation7 + $0x94] ss:$8 sps:$4 sm:$0xff]  }
 0x2fb   :  { %2184 = vmatprep.subr.bf16.mxu0 %v4504_v53  ;;  %v5290_v53 = vld [vmem:[#allocation7 + $0x114] ss:$8 sps:$4 sm:$0xff]   ;;  %3303 = vmatprep.subr.bf16.mxu1 %v4549_v43 }
 0x2fc   :  { %v5312_v43 = vld [vmem:[#allocation7 + $0x134] ss:$8 sps:$4 sm:$0xff]  }
 0x2fe   :  { %2185 = vmatpush1.bf16.msra.mxu0 %v4502_v56  ;;  %v4547_v56 = vld [vmem:[#allocation7 + $0x90] ss:$8 sps:$4 sm:$0xff]  }
 0x2ff   :  { %v5277_v38 = vpop.f32.mrb[92].mxu1  ;;  %2186 = vmatprep.subr.bf16.mxu0 %v4507_v40  ;;  %v4555_v40 = vld [vmem:[#allocation7 + $0xa4] ss:$8 sps:$4 sm:$0xff]   ;;  %3304 = vmatpush1.bf16.msra.mxu1 %v4547_v56  ;;  %v5317_v56 = vld [vmem:[#allocation7 + $0x130] ss:$8 sps:$4 sm:$0xff]  }
 0x300   :  { %v5281_v9 = vpop.f32.mrb[93].mxu1  ;;  %3305 = vmatprep.subr.bf16.mxu1 %v4555_v40  ;;  %6010 = vst [vmem:[#allocation28_spill] sm:$0xff] %v5317_v56 }
 0x301   :  { %v5283_v63 = vpop.f32.mrb[94].mxu1 }
 0x302   :  { %6005 = vst [vmem:[#allocation23_spill] sm:$0xff] %v5283_v63  ;;  %2187 = vmatpush1.bf16.msra.mxu0 %v4505_v31  ;;  %v5285_v24 = vpop.f32.mrb[95].mxu1  ;;  %v5300_v31 = vld [vmem:[#allocation7 + $0x124] ss:$8 sps:$4 sm:$0xff]  }
 0x303   :  { %3478 = vmatprep.subr.bf16.mxu0 %v5279_v16  ;;  %3306 = vmatpush1.bf16.msra.mxu1 %v4553_v14 }
 0x305   :  { %2189 = vmatmul.mubr.bf16.vlgmr.msra.gmra.mrb[40].mxu0 %v4988_v30 }
 0x306   :  { %2198 = vmatprep.mubr.bf16.mxu0 %v5000_v48  ;;  %3479 = vmatpush1.bf16.msra.mxu0 %v5287_v36  ;;  %v5309_v48 = vld [vmem:[#allocation7 + $0x120] ss:$8 sps:$4 sm:$0xff]  }
 0x307   :  { %v5297_v17 = vpop.f32.mrb[96].mxu1  ;;  %3480 = vmatprep.subr.bf16.mxu0 %v5290_v53 }
 0x308   :  { %6006 = vst [vmem:[#allocation24_spill] sm:$0xff] %v5297_v17  ;;  %v5302_v57 = vpop.f32.mrb[97].mxu1 }
 0x309   :  { %6007 = vst [vmem:[#allocation25_spill] sm:$0xff] %v5302_v57  ;;  %v5304_v63 = vpop.f32.mrb[98].mxu1 }
 0x30a   :  { %6008 = vst [vmem:[#allocation26_spill] sm:$0xff] %v5304_v63  ;;  %v5306_v30 = vpop.f32.mrb[99].mxu1  ;;  %3481 = vmatpush1.bf16.msra.mxu0 %v5295_v60  ;;  %v5322_v63 = vld [vmem:[#allocation7 + $0x144] ss:$8 sps:$4 sm:$0xff]  }
 0x30b   :  { %6009 = vst [vmem:[#allocation27_spill] sm:$0xff] %v5306_v30  ;;  %3482 = vmatprep.subr.bf16.mxu0 %v5300_v31  ;;  %6012 = vst [vmem:[#allocation30_spill] sm:$0xff] %v5322_v63 }
 0x30d   :  { %2199 = vmatmul.mubr.bf16.gmra.mrb[44].mxu0 %v4998_v47  ;;  %v5331_v47 = vld [vmem:[#allocation7 + $0x140] ss:$8 sps:$4 sm:$0xff]  }
 0x30e   :  { %2208 = vmatprep.mubr.bf16.mxu0 %v5010_v59  ;;  %3483 = vmatpush1.bf16.msra.mxu0 %v5309_v48  ;;  %6016 = vst [vmem:[#allocation34_spill] sm:$0xff] %v5331_v47 }
 0x30f   :  { %v5319_v40 = vpop.f32.mrb[100].mxu1  ;;  %3484 = vmatprep.subr.bf16.mxu0 %v5312_v43 }
 0x310   :  { %6011 = vst [vmem:[#allocation29_spill] sm:$0xff] %v5319_v40  ;;  %v5324_v17 = vpop.f32.mrb[101].mxu1  ;;  %v4558_v40 = vld [vmem:[#allocation7 + $0xb4] ss:$8 sps:$4 sm:$0xff]  }
 0x311   :  { %6013 = vst [vmem:[#allocation31_spill] sm:$0xff] %v5324_v17  ;;  %v5326_v30 = vpop.f32.mrb[102].mxu1  ;;  %3307 = vmatprep.subr.bf16.mxu1 %v4558_v40  ;;  %v4571_v40 = vld [vmem:[#allocation7 + $0xe0] ss:$8 sps:$4 sm:$0xff]  }
 0x312   :  { %6014 = vst [vmem:[#allocation32_spill] sm:$0xff] %v5326_v30  ;;  %v5328_v57 = vpop.f32.mrb[103].mxu1  ;;  %3485 = vmatpush1.bf16.msra.mxu0 %v5317_v56  ;;  %v4564_v56 = vld [vmem:[#allocation7 + $0xc4] ss:$8 sps:$4 sm:$0xff]  }
 0x313   :  { %6015 = vst [vmem:[#allocation33_spill] sm:$0xff] %v5328_v57  ;;  %3486 = vmatprep.subr.bf16.mxu0 %v5322_v63  ;;  %v4556_v57 = vld [vmem:[#allocation7 + $0xb0] ss:$8 sps:$4 sm:$0xff]  }
 0x314   :  { %3308 = vmatpush1.bf16.msra.mxu1 %v4556_v57  ;;  %v4573_v57 = vld [vmem:[#allocation7 + $0xe4] ss:$8 sps:$4 sm:$0xff]  }
 0x315   :  { %2209 = vmatmul.mubr.bf16.gmra.mrb[48].mxu0 %v5008_v58  ;;  %v4562_v58 = vld [vmem:[#allocation7 + $0xc0] ss:$8 sps:$4 sm:$0xff]   ;;  %3309 = vmatprep.subr.bf16.mxu1 %v4564_v56  ;;  %v5361_v56 = vld [vmem:[#allocation7 + $0x164] ss:$8 sps:$4 sm:$0xff]  }
 0x316   :  { %2218 = vmatprep.mubr.bf16.mxu0 %v5020_v5  ;;  %3487 = vmatpush1.bf16.msra.mxu0 %v5331_v47  ;;  %6027 = vst [vmem:[#allocation45_spill] sm:$0xff] %v5361_v56 }
 0x317   :  { %v5337_v59 = vpop.f32.mrb[104].mxu1 }
 0x318   :  { %6017 = vst [vmem:[#allocation35_spill] sm:$0xff] %v5337_v59  ;;  %v5339_v14 = vpop.f32.mrb[105].mxu1  ;;  %3310 = vmatpush1.bf16.msra.mxu1 %v4562_v58 }
 0x319   :  { %6018 = vst [vmem:[#allocation36_spill] sm:$0xff] %v5339_v14  ;;  %v5341_v30 = vpop.f32.mrb[106].mxu1  ;;  %v4567_v14 = vld [vmem:[#allocation7 + $0xd4] ss:$8 sps:$4 sm:$0xff]  }
 0x31a   :  { %6019 = vst [vmem:[#allocation37_spill] sm:$0xff] %v5341_v30  ;;  %v5343_v17 = vpop.f32.mrb[107].mxu1  ;;  %v4565_v30 = vld [vmem:[#allocation7 + $0xd0] ss:$8 sps:$4 sm:$0xff]   ;;  %3311 = vmatprep.subr.bf16.mxu1 %v4567_v14 }
 0x31b   :  { %6020 = vst [vmem:[#allocation38_spill] sm:$0xff] %v5343_v17 }
 0x31c   :  { %3312 = vmatpush1.bf16.msra.mxu1 %v4565_v30  ;;  %v4574_v30 = vld [vmem:[#allocation7 + $0xf0] ss:$8 sps:$4 sm:$0xff]  }
 0x31d   :  { %2219 = vmatmul.mubr.bf16.gmra.mrb[52].mxu0 %v5018_v4  ;;  %v5356_v4 = vld [vmem:[#allocation7 + $0x150] ss:$8 sps:$4 sm:$0xff]   ;;  %3313 = vmatprep.subr.bf16.mxu1 %v4573_v57 }
 0x31e   :  { %2228 = vmatprep.mubr.bf16.mxu0 %v5030_v20  ;;  %6025 = vst [vmem:[#allocation43_spill] sm:$0xff] %v5356_v4  ;;  %v5358_v20 = vld [vmem:[#allocation7 + $0x154] ss:$8 sps:$4 sm:$0xff]  }
 0x31f   :  { %v5347_v5 = vpop.f32.mrb[108].mxu1  ;;  %6026 = vst [vmem:[#allocation44_spill] sm:$0xff] %v5358_v20  ;;  %3488 = vmatprep.subr.bf16.mxu0 %v5358_v20 }
 0x320   :  { %6021 = vst [vmem:[#allocation39_spill] sm:$0xff] %v5347_v5  ;;  %v5349_v59 = vpop.f32.mrb[109].mxu1  ;;  %3489 = vmatpush1.bf16.msra.mxu0 %v5356_v4  ;;  %3314 = vmatpush1.bf16.msra.mxu1 %v4571_v40 }
 0x321   :  { %6022 = vst [vmem:[#allocation40_spill] sm:$0xff] %v5349_v59  ;;  %v5351_v47 = vpop.f32.mrb[110].mxu1  ;;  %3490 = vmatprep.subr.bf16.mxu0 %v5361_v56  ;;  %v5467_v56 = vld [vmem:[#allocation7 + $0x1f4] ss:$8 sps:$4 sm:$0xff]  }
 0x322   :  { %6023 = vst [vmem:[#allocation41_spill] sm:$0xff] %v5351_v47  ;;  %v5353_v63 = vpop.f32.mrb[111].mxu1  ;;  %v4576_v47 = vld [vmem:[#allocation7 + $0xf4] ss:$8 sps:$4 sm:$0xff]  }
 0x323   :  { %6024 = vst [vmem:[#allocation42_spill] sm:$0xff] %v5353_v63  ;;  %3315 = vmatprep.subr.bf16.mxu1 %v4576_v47  ;;  %v5387_v47 = vld [vmem:[#allocation7 + $0x184] ss:$8 sps:$4 sm:$0xff]  }
 0x324   :  { %3316 = vmatpush1.bf16.msra.mxu1 %v4574_v30  ;;  %6036 = vst [vmem:[#allocation54_spill] sm:$0xff] %v5387_v47 }
 0x325   :  { %2229 = vmatmul.mubr.bf16.gmra.mrb[56].mxu0 %v5028_v19  ;;  %v5369_v19 = vld [vmem:[#allocation7 + $0x160] ss:$8 sps:$4 sm:$0xff]   ;;  %4169 = vmatprep.subr.bf16.mxu1 %v5279_v16  ;;  %v5404_v16 = vld [vmem:[#allocation7 + $0x190] ss:$8 sps:$4 sm:$0xff]  }
 0x326   :  { %2238 = vmatprep.mubr.bf16.mxu0 %v5040_v21  ;;  %6030 = vst [vmem:[#allocation48_spill] sm:$0xff] %v5369_v19  ;;  %v5374_v21 = vld [vmem:[#allocation7 + $0x174] ss:$8 sps:$4 sm:$0xff]   ;;  %3491 = vmatpush1.bf16.msra.mxu0 %v5369_v19  ;;  %6042 = vst [vmem:[#allocation60_spill] sm:$0xff] %v5404_v16  ;;  %v5465_v19 = vld [vmem:[#allocation7 + $0x1e4] ss:$8 sps:$4 sm:$0xff]  }
 0x327   :  { %v5363_v58 = vpop.f32.mrb[112].mxu1  ;;  %6032 = vst [vmem:[#allocation50_spill] sm:$0xff] %v5374_v21  ;;  %3492 = vmatprep.subr.bf16.mxu0 %v5374_v21  ;;  %v6064_v21 = vld [vmem:[#allocation15_spill] sm:$0xff] }
 0x328   :  { %6028 = vst [vmem:[#allocation46_spill] sm:$0xff] %v5363_v58  ;;  %v5366_v14 = vpop.f32.mrb[113].mxu1  ;;  %v5379_v58 = vld [vmem:[#allocation7 + $0x170] ss:$8 sps:$4 sm:$0xff]   ;;  %6068 = vst [vmem:[#allocation15_spill] sm:$0xff] %v5467_v56 }
 0x329   :  { %6029 = vst [vmem:[#allocation47_spill] sm:$0xff] %v5366_v14  ;;  %v5371_v5 = vpop.f32.mrb[114].mxu1  ;;  %6034 = vst [vmem:[#allocation52_spill] sm:$0xff] %v5379_v58  ;;  %v5463_v14 = vld [vmem:[#allocation7 + $0x1e0] ss:$8 sps:$4 sm:$0xff]  }
 0x32a   :  { %6031 = vst [vmem:[#allocation49_spill] sm:$0xff] %v5371_v5  ;;  %v5376_v57 = vpop.f32.mrb[115].mxu1  ;;  %3493 = vmatpush1.bf16.msra.mxu0 %v5379_v58 }
 0x32b   :  { %6033 = vst [vmem:[#allocation51_spill] sm:$0xff] %v5376_v57  ;;  %v5392_v57 = vld [vmem:[#allocation7 + $0x180] ss:$8 sps:$4 sm:$0xff]   ;;  %3494 = vmatprep.subr.bf16.mxu0 %v5387_v47 }
 0x32c   :  { %6038 = vst [vmem:[#allocation56_spill] sm:$0xff] %v5392_v57 }
 0x32d   :  { %2239 = vmatmul.mubr.bf16.gmra.mrb[60].mxu0 %v5038_v32 }
 0x32e   :  { %2248 = vmatprep.mubr.bf16.mxu0 %v5050_v46  ;;  %3495 = vmatpush1.bf16.msra.mxu0 %v5392_v57 }
 0x32f   :  { %v5385_v40 = vpop.f32.mrb[116].mxu1 }
 0x330   :  { %6035 = vst [vmem:[#allocation53_spill] sm:$0xff] %v5385_v40  ;;  %v5389_v5 = vpop.f32.mrb[117].mxu1  ;;  %v5406_v40 = vld [vmem:[#allocation7 + $0x194] ss:$8 sps:$4 sm:$0xff]  }
 0x331   :  { %6037 = vst [vmem:[#allocation55_spill] sm:$0xff] %v5389_v5  ;;  %v5394_v30 = vpop.f32.mrb[118].mxu1  ;;  %6043 = vst [vmem:[#allocation61_spill] sm:$0xff] %v5406_v40  ;;  %3496 = vmatprep.subr.bf16.mxu0 %v5406_v40 }
 0x332   :  { %6039 = vst [vmem:[#allocation57_spill] sm:$0xff] %v5394_v30  ;;  %v5397_v32 = vpop.f32.mrb[119].mxu1  ;;  %3497 = vmatpush1.bf16.msra.mxu0 %v5404_v16  ;;  %v6055_v16 = vld [vmem:[#allocation14_spill] sm:$0xff] }
 0x333   :  { %6040 = vst [vmem:[#allocation58_spill] sm:$0xff] %v5397_v32 }
 0x335   :  { %2249 = vmatmul.mubr.bf16.gmra.mrb[64].mxu0 %v5048_v45 }
 0x336   :  { %2258 = vmatprep.mubr.bf16.mxu0 %v5060_v41  ;;  %v5420_v41 = vld [vmem:[#allocation7 + $0x1a0] ss:$8 sps:$4 sm:$0xff]  }
 0x337   :  { %v5402_v46 = vpop.f32.mrb[120].mxu1  ;;  %6048 = vst [vmem:[#allocation66_spill] sm:$0xff] %v5420_v41 }
 0x338   :  { %6041 = vst [vmem:[#allocation59_spill] sm:$0xff] %v5402_v46  ;;  %v5408_v58 = vpop.f32.mrb[121].mxu1  ;;  %v5422_v46 = vld [vmem:[#allocation7 + $0x1a4] ss:$8 sps:$4 sm:$0xff]  }
 0x339   :  { %6044 = vst [vmem:[#allocation62_spill] sm:$0xff] %v5408_v58  ;;  %v5410_v5 = vpop.f32.mrb[122].mxu1  ;;  %6049 = vst [vmem:[#allocation67_spill] sm:$0xff] %v5422_v46  ;;  %3498 = vmatprep.subr.bf16.mxu0 %v5422_v46  ;;  %v5442_v46 = vld [vmem:[#allocation7 + $0x1c0] ss:$8 sps:$4 sm:$0xff]  }
 0x33a   :  { %6045 = vst [vmem:[#allocation63_spill] sm:$0xff] %v5410_v5  ;;  %v5413_v30 = vpop.f32.mrb[123].mxu1  ;;  %3499 = vmatpush1.bf16.msra.mxu0 %v5420_v41  ;;  %6056 = vst [vmem:[#allocation14_spill] sm:$0xff] %v5442_v46  ;;  %v6060_v41 = vld [vmem:[#allocation16_spill] sm:$0xff] }
 0x33b   :  { %6046 = vst [vmem:[#allocation64_spill] sm:$0xff] %v5413_v30  ;;  %6066 = vst [vmem:[#allocation16_spill] sm:$0xff] %v5463_v14 }
 0x33d   :  { %2259 = vmatmul.mubr.bf16.gmra.mrb[68].mxu0 %v5058_v55  ;;  %v5434_v55 = vld [vmem:[#allocation7 + $0x1b0] ss:$8 sps:$4 sm:$0xff]  }
 0x33e   :  { %2268 = vmatprep.mubr.bf16.mxu0 %v5074_v6  ;;  %6053 = vst [vmem:[#allocation71_spill] sm:$0xff] %v5434_v55  ;;  %v5436_v6 = vld [vmem:[#allocation7 + $0x1b4] ss:$8 sps:$4 sm:$0xff]  }
 0x33f   :  { %v5418_v45 = vpop.f32.mrb[124].mxu1  ;;  %6054 = vst [vmem:[#allocation72_spill] sm:$0xff] %v5436_v6  ;;  %3500 = vmatprep.subr.bf16.mxu0 %v5436_v6  ;;  %v6059_v6 = vld [vmem:[#allocation11_spill] sm:$0xff] }
 0x340   :  { %6047 = vst [vmem:[#allocation65_spill] sm:$0xff] %v5418_v45  ;;  %v5424_v57 = vpop.f32.mrb[125].mxu1  ;;  %3501 = vmatpush1.bf16.msra.mxu0 %v5434_v55  ;;  %v5455_v45 = vld [vmem:[#allocation7 + $0x1d0] ss:$8 sps:$4 sm:$0xff]  }
 0x341   :  { %6050 = vst [vmem:[#allocation68_spill] sm:$0xff] %v5424_v57  ;;  %v5426_v58 = vpop.f32.mrb[126].mxu1 }
 0x342   :  { %6051 = vst [vmem:[#allocation69_spill] sm:$0xff] %v5426_v58  ;;  %v5429_v40 = vpop.f32.mrb[127].mxu1  ;;  %v5444_v58 = vld [vmem:[#allocation7 + $0x1c4] ss:$8 sps:$4 sm:$0xff]  }
 0x343   :  { %6052 = vst [vmem:[#allocation70_spill] sm:$0xff] %v5429_v40  ;;  %6057 = vst [vmem:[#allocation73_spill] sm:$0xff] %v5444_v58  ;;  %3502 = vmatprep.subr.bf16.mxu0 %v5444_v58  ;;  %v5457_v40 = vld [vmem:[#allocation7 + $0x1d4] ss:$8 sps:$4 sm:$0xff]  }
 0x344   :  { %3503 = vmatpush1.bf16.msra.mxu0 %v5442_v46  ;;  %6063 = vst [vmem:[#allocation11_spill] sm:$0xff] %v5457_v40 }
 0x345   :  { %2269 = vmatmul.mubr.bf16.gmra.mrb[72].mxu0 %v5068_v1  ;;  %v1064_v1 = vld [vmem:[%s5934_s7] sm:$0xf]  ;;  %3504 = vmatprep.subr.bf16.mxu0 %v5457_v40 }
 0x346   :  { %2278 = vmatprep.mubr.bf16.mxu0 %v5084_v33  ;;  %v6058_v33 = vld [vmem:[#allocation13_spill] sm:$0xff]  ;;  %v1069_v55 = vrot.slane %v1064_v1, %v6059_v6 }
 0x347   :  { %6062 = vst [vmem:[#allocation13_spill] sm:$0xff] %v5455_v45 }
 0x348   :  { %3505 = vmatpush1.bf16.msra.mxu0 %v5455_v45 }
 0x349   :  { %3506 = vmatprep.subr.bf16.mxu0 %v5465_v19 }
 0x34c   :  { %3507 = vmatpush1.bf16.msra.mxu0 %v5463_v14 }
 0x34d   :  { %2279 = vmatmul.mubr.bf16.gmra.mrb[76].mxu0 %v5082_v27  ;;  %v6061_v27 = vld [vmem:[#allocation12_spill] sm:$0xff]  ;;  %3508 = vmatprep.subr.bf16.mxu0 %v5467_v56 }
 0x34e   :  { %2288 = vmatprep.mubr.bf16.mxu0 %v6055_v16  ;;  %v1073_v16 = vrot.slane %v1064_v1, %v6061_v27  ;;  %6067 = vst [vmem:[#allocation12_spill] sm:$0xff] %v5465_v19 }
 0x355   :  { %2289 = vmatmul.mubr.bf16.gmra.mrb[80].mxu0 %v6058_v33 }
 0x356   :  { %2298 = vmatprep.mubr.bf16.mxu0 %v6060_v41  ;;  %v6065_v41 = vld [vmem:[#allocation18_spill] sm:$0xff] }
 0x358   :  { %v1497_v57 = vpop.f32.mrb[32].mxu0 }
 0x359   :  { %v1498_v58 = vadd.f32 %v1497_v57, %v1069_v55  ;;  %v1499_v5 = vpop.f32.mrb[33].mxu0  ;;  %v6070_v57 = vld [vmem:[#allocation17_spill] sm:$0xff]  ;;  %v6075_v55 = vld [vmem:[#allocation10_spill] sm:$0xff] }
 0x35a   :  { %v1500_v30 = vadd.f32 %v1499_v5, %v1073_v16  ;;  %v1501_v47 = vpop.f32.mrb[34].mxu0  ;;  %v5471_v5 = vld [vmem:[#allocation7 + $0x1f0] ss:$8 sps:$4 sm:$0xff]   ;;  %v5483_v16 = vsub.s32 2, %v6075_v55 }
 0x35b   :  { %v1502_v33 = vpop.f32.mrb[35].mxu0  ;;  %6069 = vst [vmem:[#allocation18_spill] sm:$0xff] %v5471_v5  ;;  %3509 = vmatpush1.bf16.msra.mxu0 %v5471_v5  ;;  %v6073_v47 = vld [vmem:[#allocation22_spill] sm:$0xff] }
 0x35c   :  { %v2353_v46 = vcombine.low %v1498_v58, %v1500_v30  ;;  %v2354_v32 = vcombine.high %v1498_v58, %v1500_v30  ;;  %v6071_v58 = vld [vmem:[#allocation20_spill] sm:$0xff]  ;;  %v6074_v30 = vld [vmem:[#allocation21_spill] sm:$0xff]  ;;  %6076 = vst [vmem:[#allocation17_spill] sm:$0xff] %v5483_v16  ;;  %v4682_v33 = vmov 1966171168  }
 0x35d   :  { %2299 = vmatmul.mubr.bf16.gmra.mrb[84].mxu0 %v6064_v21  ;;  %v6072_v21 = vld [vmem:[#allocation19_spill] sm:$0xff] }
 0x35e   :  { %2308 = vmatprep.mubr.bf16.mxu0 %v6065_v41  ;;  %v2358_v41 = vunpack.c.l.s4 %v4682_v33 }
 0x360   :  { %v2359_v5 = vunpack.c.0.s8 %v2358_v41 }
 0x365   :  { %2309 = vmatmul.mubr.bf16.gmra.mrb[88].mxu0 %v6070_v57  ;;  %v5486_v57 = vsub.s32 3, %v6075_v55 }
 0x366   :  { %2318 = vmatprep.mubr.bf16.mxu0 %v6071_v58  ;;  %v1077_v58 = vrot.slane %v1064_v1, %v5483_v16 }
 0x367   :  { %6077 = vst [vmem:[#allocation20_spill] sm:$0xff] %v5486_v57 }
 0x36d   :  { %2319 = vmatmul.mubr.bf16.gmra.mrb[92].mxu0 %v6072_v21  ;;  %v1081_v21 = vrot.slane %v1064_v1, %v5486_v57 }
 0x36e   :  { %2328 = vmatprep.mubr.bf16.mxu0 %v5174_v52 }
 0x375   :  { %2329 = vmatmul.mubr.bf16.gmra.mrb[96].mxu0 %v5172_v29 }
 0x376   :  { %2338 = vmatprep.mubr.bf16.mxu0 %v6073_v47  ;;  %v5491_v47 = vsub.s32 %v2359_v5, %v6075_v55 }
 0x378   :  { %6078 = vst [vmem:[#allocation19_spill] sm:$0xff] %v5491_v47  ;;  %v2363_v33 = vrot.slane %v2353_v46, %v5491_v47  ;;  %v5495_v63 = vrot.slane %v2354_v32, %v5491_v47 }
 0x37a   :  { %6079 = vst [vmem:[#allocation22_spill] sm:$0xff] %v5495_v63 }
 0x37d   :  { %2339 = vmatmul.mubr.bf16.gmra.mrb[100].mxu0 %v6074_v30 }
 0x398   :  { %v1538_v52 = vpop.f32.mrb[36].mxu0 }
 0x399   :  { %v1539_v56 = vadd.f32 %v1538_v52, %v1077_v58  ;;  %v1540_v29 = vpop.f32.mrb[37].mxu0 }
 0x39a   :  { %v1541_v30 = vadd.f32 %v1540_v29, %v1081_v21  ;;  %v1542_v14 = vpop.f32.mrb[38].mxu0 }
 0x39b   :  { %v1543_v19 = vpop.f32.mrb[39].mxu0 }
 0x39c   :  { %v2355_v45 = vcombine.low %v1539_v56, %v1541_v30  ;;  %v2356_v40 = vcombine.high %v1539_v56, %v1541_v30 }
 0x39e   :  { %v2377_v41 = vrot.slane %v2355_v45, %v5491_v47  ;;  %v5499_v1 = vrot.slane %v2356_v40, %v5491_v47 }
 0x3a0   :  { %6080 = vst [vmem:[#allocation21_spill] sm:$0xff] %v5499_v1  ;;  %v2385_v58 = vcombine.low %v2363_v33, %v2377_v41  ;;  %v2386_v52 = vcombine.high %v2363_v33, %v2377_v41  ;;  %v2387_v5 = vcombine.low %v5495_v63, %v5499_v1 }
 0x3a2   :  { %v5506_v56 = vrot.slane %v2385_v58, %v5491_v47  ;;  %v5509_v19 = vrot.slane %v2386_v52, %v5491_v47  ;;  %v5520_v46 = vrot.slane %v2387_v5, %v5491_v47 }
 0x3a4   :  { %6081 = vst [vmem:[#allocation10_spill] sm:$0xff] %v5506_v56  ;;  %6082 = vst [vmem:[#allocation74_spill] sm:$0xff] %v5509_v19  ;;  %v5513_v32 = vcombine.high %v5506_v56, %v5506_v56  ;;  %v5517_v40 = vcombine.high %v5509_v19, %v5509_v19  ;;  %v2424_v45 = vrot.slane %v5506_v56, %v6059_v6 }
 0x3a5   :  { %v2428_v55 = vrot.slane %v5506_v56, %v6061_v27  ;;  %v2444_v21 = vrot.slane %v5509_v19, %v6061_v27  ;;  %v2440_v29 = vrot.slane %v5509_v19, %v6059_v6 }
 0x3a6   :  { %6083 = vst [vmem:[#allocation75_spill] sm:$0xff] %v5513_v32  ;;  %v2460_v30 = vrot.slane %v5513_v32, %v6061_v27  ;;  %v2456_v33 = vrot.slane %v5513_v32, %v6059_v6  ;;  %v5536_v41 = vrot.slane %v5517_v40, %v6061_v27  ;;  %v2581_v5 = vadd.f32 %v2424_v45, %v5221_v7 }
 0x3a7   :  { %v2582_v58 = vadd.f32 %v2428_v55, %v5223_v39  ;;  %v2586_v52 = vadd.f32 %v2428_v55, %v5227_v3  ;;  %v2585_v14 = vadd.f32 %v2424_v45, %v5225_v62  ;;  %v2590_v19 = vadd.f32 %v2428_v55, %v5231_v26 }
 0x3a8   :  { %v2594_v57 = vadd.f32 %v2428_v55, %v5235_v2  ;;  %v2589_v56 = vadd.f32 %v2424_v45, %v5229_v15  ;;  %v2593_v32 = vadd.f32 %v2424_v45, %v5233_v18  ;;  %v2709_v4 = vmax.f32 %v2581_v5, 0.0 }
 0x3a9   :  { %v2710_v16 = vmax.f32 %v2582_v58, 0.0  ;;  %v2714_v59 = vmax.f32 %v2586_v52, 0.0  ;;  %v2713_v17 = vmax.f32 %v2585_v14, 0.0  ;;  %v2718_v20 = vmax.f32 %v2590_v19, 0.0 }
 0x3aa   :  { %v2722_v39 = vmax.f32 %v2594_v57, 0.0  ;;  %v2717_v1 = vmax.f32 %v2589_v56, 0.0  ;;  %v2721_v3 = vmax.f32 %v2593_v32, 0.0  ;;  %v2598_v62 = vadd.f32 %v2444_v21, %v5239_v10 }
 0x3ab   :  { %v2838_v63 = vpack.c.bf16 %v2714_v59, %v2710_v16  ;;  %v2837_v7 = vpack.c.bf16 %v2713_v17, %v2709_v4  ;;  %v2602_v26 = vadd.f32 %v2444_v21, %v5243_v61  ;;  %v2597_v15 = vadd.f32 %v2440_v29, %v5237_v44 }
 0x3ac   :  { %v2842_v47 = vpack.c.bf16 %v2722_v39, %v2718_v20  ;;  %v2841_v2 = vpack.c.bf16 %v2721_v3, %v2717_v1  ;;  %v2601_v18 = vadd.f32 %v2440_v29, %v5241_v50  ;;  %v2726_v45 = vmax.f32 %v2598_v62, 0.0 }
 0x3ad   :  { %3317 = vmatprep.mubr.bf16.mxu1 %v2838_v63  ;;  %v2730_v55 = vmax.f32 %v2602_v26, 0.0  ;;  %v2606_v14 = vadd.f32 %v2444_v21, %v5247_v8  ;;  %v2610_v57 = vadd.f32 %v2444_v21, %v5251_v13  ;;  %v2725_v59 = vmax.f32 %v2597_v15, 0.0 }
 0x3ae   :  { %3318 = vmatmul.mubr.bf16.vlgmr.msra.gmra.mrb[128].mxu1 %v2837_v7  ;;  %v2729_v17 = vmax.f32 %v2601_v18, 0.0  ;;  %v2605_v10 = vadd.f32 %v2440_v29, %v5245_v54  ;;  %v2609_v61 = vadd.f32 %v2440_v29, %v5249_v28  ;;  %v2614_v50 = vadd.f32 %v2460_v30, %v5255_v37  ;;  %v6084_v7 = vld [vmem:[#allocation23_spill] sm:$0xff] }
 0x3af   :  { %3327 = vmatprep.mubr.bf16.mxu1 %v2842_v47  ;;  %v2846_v4 = vpack.c.bf16 %v2730_v55, %v2726_v45  ;;  %v2734_v20 = vmax.f32 %v2606_v14, 0.0  ;;  %v2738_v44 = vmax.f32 %v2610_v57, 0.0  ;;  %4185 = vmatpush1.bf16.msra.mxu1 %v5287_v36  ;;  %v2618_v13 = vadd.f32 %v2460_v30, %v5259_v12  ;;  %v6086_v45 = vld [vmem:[#allocation22_spill] sm:$0xff]  ;;  %v6089_v14 = vld [vmem:[#allocation28_spill] sm:$0xff]  ;;  %v6090_v57 = vld [vmem:[#allocation25_spill] sm:$0xff] }
 0x3b0   :  { %v5556_v63 = vpack.c.bf16 %v2729_v17, %v2725_v59  ;;  %v2733_v8 = vmax.f32 %v2605_v10, 0.0  ;;  %v2737_v16 = vmax.f32 %v2609_v61, 0.0  ;;  %4170 = vmatprep.subr.bf16.mxu1 %v5290_v53  ;;  %v2742_v54 = vmax.f32 %v2614_v50, 0.0  ;;  %v6091_v17 = vld [vmem:[#allocation27_spill] sm:$0xff] }
 0x3b1   :  { %v5560_v1 = vpack.c.bf16 %v2738_v44, %v2734_v20  ;;  %v2613_v28 = vadd.f32 %v2456_v33, %v5253_v34  ;;  %v2617_v47 = vadd.f32 %v2456_v33, %v5257_v11  ;;  %v2746_v37 = vmax.f32 %v2618_v13, 0.0  ;;  %v6092_v20 = vld [vmem:[#allocation30_spill] sm:$0xff] }
 0x3b2   :  { %v5564_v56 = vpack.c.bf16 %v2737_v16, %v2733_v8  ;;  %v2622_v36 = vadd.f32 %v2460_v30, %v5263_v51  ;;  %v2626_v19 = vadd.f32 %v2460_v30, %v5267_v23  ;;  %v2621_v12 = vadd.f32 %v2456_v33, %v5261_v42  ;;  %v6093_v16 = vld [vmem:[#allocation31_spill] sm:$0xff] }
 0x3b3   :  { %v2741_v32 = vmax.f32 %v2613_v28, 0.0  ;;  %v2745_v21 = vmax.f32 %v2617_v47, 0.0  ;;  %4186 = vmatpush1.bf16.msra.mxu1 %v5295_v60  ;;  %v2625_v53 = vadd.f32 %v2456_v33, %v5265_v49  ;;  %v5571_v29 = vpack.c.bf16 %v2746_v37, %v2742_v54  ;;  %v6094_v54 = vld [vmem:[#allocation33_spill] sm:$0xff]  ;;  %v6095_v47 = vld [vmem:[#allocation24_spill] sm:$0xff] }
 0x3b4   :  { %v2750_v34 = vmax.f32 %v2622_v36, 0.0  ;;  %v2754_v58 = vmax.f32 %v2626_v19, 0.0  ;;  %v2630_v11 = vadd.f32 %v5536_v41, %v5271_v35  ;;  %4171 = vmatprep.subr.bf16.mxu1 %v5300_v31  ;;  %v2749_v23 = vmax.f32 %v2621_v12, 0.0  ;;  %v6096_v36 = vld [vmem:[#allocation26_spill] sm:$0xff]  ;;  %v6098_v12 = vld [vmem:[#allocation32_spill] sm:$0xff] }
 0x3b5   :  { %v5576_v51 = vpack.c.bf16 %v2745_v21, %v2741_v32  ;;  %v2753_v30 = vmax.f32 %v2625_v53, 0.0  ;;  %v2634_v60 = vadd.f32 %v5536_v41, %v5275_v0  ;;  %v2472_v33 = vrot.slane %v5517_v40, %v6059_v6  ;;  %v6097_v32 = vld [vmem:[#allocation29_spill] sm:$0xff] }
 0x3b6   :  { %3328 = vmatmul.mubr.bf16.gmra.mrb[132].mxu1 %v2841_v2  ;;  %v5580_v42 = vpack.c.bf16 %v2754_v58, %v2750_v34  ;;  %v2758_v49 = vmax.f32 %v2630_v11, 0.0  ;;  %v2638_v31 = vadd.f32 %v5536_v41, %v5281_v9  ;;  %v2642_v5 = vadd.f32 %v5536_v41, %v5285_v24  ;;  %v6099_v58 = vld [vmem:[#allocation34_spill] sm:$0xff] }
 0x3b7   :  { %3337 = vmatprep.mubr.bf16.mxu1 %v2846_v4  ;;  %v5584_v52 = vpack.c.bf16 %v2753_v30, %v2749_v23  ;;  %v2762_v35 = vmax.f32 %v2634_v60, 0.0  ;;  %4187 = vmatpush1.bf16.msra.mxu1 %v5309_v48  ;;  %v2629_v0 = vadd.f32 %v2472_v33, %v5269_v22  ;;  %v2633_v39 = vadd.f32 %v2472_v33, %v5273_v25  ;;  %v6085_v22 = vld [vmem:[#allocation19_spill] sm:$0xff]  ;;  %v6087_v25 = vld [vmem:[#allocation21_spill] sm:$0xff] }
 0x3b8   :  { %4172 = vmatprep.subr.bf16.mxu1 %v5312_v43  ;;  %v2637_v3 = vadd.f32 %v2472_v33, %v5277_v38  ;;  %v2641_v62 = vadd.f32 %v2472_v33, %v6084_v7  ;;  %v2766_v2 = vmax.f32 %v2638_v31, 0.0  ;;  %v2770_v48 = vmax.f32 %v2642_v5, 0.0  ;;  %v6101_v5 = vld [vmem:[#allocation36_spill] sm:$0xff] }
 0x3b9   :  { %v5596_v26 = vpack.c.bf16 %v2762_v35, %v2758_v49  ;;  %v2492_v9 = vrot.slane %v5520_v46, %v6061_v27  ;;  %v2757_v15 = vmax.f32 %v2629_v0, 0.0  ;;  %v2761_v18 = vmax.f32 %v2633_v39, 0.0  ;;  %v6100_v49 = vld [vmem:[#allocation44_spill] sm:$0xff]  ;;  %v6102_v39 = vld [vmem:[#allocation38_spill] sm:$0xff] }
 0x3ba   :  { %v2765_v24 = vmax.f32 %v2637_v3, 0.0  ;;  %v2769_v41 = vmax.f32 %v2641_v62, 0.0  ;;  %v6088_v55 = vcombine.high %v6086_v45, %v6087_v25  ;;  %v5606_v38 = vpack.c.bf16 %v2770_v48, %v2766_v2  ;;  %v6106_v25 = vld [vmem:[#allocation45_spill] sm:$0xff] }
 0x3bb   :  { %4188 = vmatpush1.bf16.msra.mxu1 %v6089_v14  ;;  %v2646_v59 = vadd.f32 %v2492_v9, %v6090_v57  ;;  %v2650_v10 = vadd.f32 %v2492_v9, %v6091_v17  ;;  %v5611_v61 = vpack.c.bf16 %v2761_v18, %v2757_v15  ;;  %v2488_v44 = vrot.slane %v5520_v46, %v6059_v6  ;;  %v6108_v57 = vld [vmem:[#allocation37_spill] sm:$0xff]  ;;  %v6109_v17 = vld [vmem:[#allocation39_spill] sm:$0xff] }
 0x3bc   :  { %v5604_v43 = vrot.slane %v6088_v55, %v6085_v22  ;;  %v5613_v4 = vpack.c.bf16 %v2769_v41, %v2765_v24  ;;  %4173 = vmatprep.subr.bf16.mxu1 %v6092_v20  ;;  %v2654_v13 = vadd.f32 %v2492_v9, %v6093_v16  ;;  %v2658_v28 = vadd.f32 %v2492_v9, %v6094_v54  ;;  %v6103_v9 = vld [vmem:[#allocation43_spill] sm:$0xff]  ;;  %v6104_v24 = vld [vmem:[#allocation40_spill] sm:$0xff]  ;;  %v6105_v22 = vld [vmem:[#allocation42_spill] sm:$0xff] }
 0x3bd   :  { %v2774_v50 = vmax.f32 %v2646_v59, 0.0  ;;  %v2778_v8 = vmax.f32 %v2650_v10, 0.0  ;;  %v2645_v37 = vadd.f32 %v2488_v44, %v6095_v47  ;;  %v2649_v19 = vadd.f32 %v2488_v44, %v6096_v36  ;;  %v6107_v55 = vld [vmem:[#allocation35_spill] sm:$0xff]  ;;  %v6110_v20 = vld [vmem:[#allocation41_spill] sm:$0xff]  ;;  %v6111_v36 = vld [vmem:[#allocation48_spill] sm:$0xff] }
 0x3be   :  { %3338 = vmatmul.mubr.bf16.gmra.mrb[136].mxu1 %v5556_v63  ;;  %v2653_v21 = vadd.f32 %v2488_v44, %v6097_v32  ;;  %v2657_v53 = vadd.f32 %v2488_v44, %v6098_v12  ;;  %v2782_v11 = vmax.f32 %v2654_v13, 0.0  ;;  %v2786_v23 = vmax.f32 %v2658_v28, 0.0  ;;  %v6112_v32 = vld [vmem:[#allocation47_spill] sm:$0xff] }
 0x3bf   :  { %3347 = vmatprep.mubr.bf16.mxu1 %v5560_v1  ;;  %v5626_v34 = vpack.c.bf16 %v2778_v8, %v2774_v50  ;;  %4189 = vmatpush1.bf16.msra.mxu1 %v6099_v58  ;;  %v2508_v30 = vrot.slane %v5604_v43, %v6061_v27  ;;  %v2773_v63 = vmax.f32 %v2645_v37, 0.0  ;;  %v2777_v60 = vmax.f32 %v2649_v19, 0.0  ;;  %v6113_v12 = vld [vmem:[#allocation51_spill] sm:$0xff] }
 0x3c0   :  { %4174 = vmatprep.subr.bf16.mxu1 %v6100_v49  ;;  %v2781_v33 = vmax.f32 %v2653_v21, 0.0  ;;  %v2785_v35 = vmax.f32 %v2657_v53, 0.0  ;;  %v5634_v31 = vcombine.high %v5520_v46, %v5520_v46  ;;  %v5636_v1 = vpack.c.bf16 %v2786_v23, %v2782_v11  ;;  %v6114_v11 = vld [vmem:[#allocation50_spill] sm:$0xff] }
 0x3c1   :  { %v2662_v0 = vadd.f32 %v2508_v30, %v6101_v5  ;;  %v2666_v3 = vadd.f32 %v2508_v30, %v6102_v39  ;;  %v5642_v7 = vcombine.high %v5604_v43, %v5604_v43  ;;  %v5644_v62 = vpack.c.bf16 %v2777_v60, %v2773_v63  ;;  %v6116_v49 = vld [vmem:[#allocation58_spill] sm:$0xff]  ;;  %v6117_v5 = vld [vmem:[#allocation52_spill] sm:$0xff] }
 0x3c2   :  { %v5646_v2 = vpack.c.bf16 %v2785_v35, %v2781_v33  ;;  %v2504_v48 = vrot.slane %v5604_v43, %v6059_v6  ;;  %v2670_v41 = vadd.f32 %v2508_v30, %v6104_v24  ;;  %v2674_v45 = vadd.f32 %v2508_v30, %v6105_v22  ;;  %v6118_v39 = vld [vmem:[#allocation46_spill] sm:$0xff] }
 0x3c3   :  { %4190 = vmatpush1.bf16.msra.mxu1 %v6103_v9  ;;  %v2790_v15 = vmax.f32 %v2662_v0, 0.0  ;;  %v2794_v18 = vmax.f32 %v2666_v3, 0.0  ;;  %v2524_v13 = vrot.slane %v5634_v31, %v6061_v27  ;;  %v2520_v63 = vrot.slane %v5634_v31, %v6059_v6 }
 0x3c4   :  { %4175 = vmatprep.subr.bf16.mxu1 %v6106_v25  ;;  %v2661_v14 = vadd.f32 %v2504_v48, %v6107_v55  ;;  %v2665_v59 = vadd.f32 %v2504_v48, %v6108_v57  ;;  %v2669_v10 = vadd.f32 %v2504_v48, %v6109_v17  ;;  %v2673_v44 = vadd.f32 %v2504_v48, %v6110_v20  ;;  %v6119_v48 = vld [vmem:[#allocation49_spill] sm:$0xff]  ;;  %v6123_v55 = vld [vmem:[#allocation62_spill] sm:$0xff]  ;;  %v6124_v17 = vld [vmem:[#allocation64_spill] sm:$0xff] }
 0x3c5   :  { %v5658_v50 = vpack.c.bf16 %v2794_v18, %v2790_v15  ;;  %v2798_v8 = vmax.f32 %v2670_v41, 0.0  ;;  %v2802_v16 = vmax.f32 %v2674_v45, 0.0  ;;  %v2678_v21 = vadd.f32 %v2524_v13, %v6112_v32  ;;  %v6120_v18 = vld [vmem:[#allocation54_spill] sm:$0xff]  ;;  %v6121_v41 = vld [vmem:[#allocation53_spill] sm:$0xff]  ;;  %v6127_v32 = vld [vmem:[#allocation63_spill] sm:$0xff] }
 0x3c6   :  { %3348 = vmatmul.mubr.bf16.gmra.mrb[140].mxu1 %v5564_v56  ;;  %v2789_v54 = vmax.f32 %v2661_v14, 0.0  ;;  %v2793_v28 = vmax.f32 %v2665_v59, 0.0  ;;  %v2797_v47 = vmax.f32 %v2669_v10, 0.0  ;;  %v2801_v37 = vmax.f32 %v2673_v44, 0.0  ;;  %v6122_v45 = vld [vmem:[#allocation57_spill] sm:$0xff] }
 0x3c7   :  { %3357 = vmatprep.mubr.bf16.mxu1 %v5571_v29  ;;  %4191 = vmatpush1.bf16.msra.mxu1 %v6111_v36  ;;  %v5665_v19 = vpack.c.bf16 %v2802_v16, %v2798_v8  ;;  %v2682_v53 = vadd.f32 %v2524_v13, %v6113_v12  ;;  %v2806_v56 = vmax.f32 %v2678_v21, 0.0  ;;  %v6115_v29 = vld [vmem:[#allocation55_spill] sm:$0xff]  ;;  %v2690_v33 = vadd.f32 %v2524_v13, %v6116_v49  ;;  %v6128_v12 = vld [vmem:[#allocation61_spill] sm:$0xff] }
 0x3c8   :  { %v5669_v58 = vpack.c.bf16 %v2793_v28, %v2789_v54  ;;  %4176 = vmatprep.subr.bf16.mxu1 %v6114_v11  ;;  %v5672_v23 = vpack.c.bf16 %v2801_v37, %v2797_v47  ;;  %v2686_v60 = vadd.f32 %v2524_v13, %v6115_v29  ;;  %v2540_v35 = vrot.slane %v5642_v7, %v6061_v27  ;;  %v6125_v54 = vld [vmem:[#allocation56_spill] sm:$0xff]  ;;  %v6126_v37 = vld [vmem:[#allocation59_spill] sm:$0xff] }
 0x3c9   :  { %v2810_v30 = vmax.f32 %v2682_v53, 0.0  ;;  %v2677_v3 = vadd.f32 %v2520_v63, %v6118_v39  ;;  %v2681_v9 = vadd.f32 %v2520_v63, %v6119_v48  ;;  %v2818_v24 = vmax.f32 %v2690_v33, 0.0  ;;  %v6132_v33 = vld [vmem:[#allocation69_spill] sm:$0xff] }
 0x3ca   :  { %v2814_v15 = vmax.f32 %v2686_v60, 0.0  ;;  %v2685_v22 = vadd.f32 %v2520_v63, %v6121_v41  ;;  %v2689_v25 = vadd.f32 %v2520_v63, %v6122_v45  ;;  %v2694_v14 = vadd.f32 %v2540_v35, %v6123_v55  ;;  %v6131_v63 = vld [vmem:[#allocation65_spill] sm:$0xff]  ;;  %v6136_v45 = vld [vmem:[#allocation10_spill] sm:$0xff] }
 0x3cb   :  { %4192 = vmatpush1.bf16.msra.mxu1 %v6117_v5  ;;  %v5681_v0 = vpack.c.bf16 %v2810_v30, %v2806_v56  ;;  %v2805_v57 = vmax.f32 %v2677_v3, 0.0  ;;  %v2809_v59 = vmax.f32 %v2681_v9, 0.0  ;;  %v2698_v10 = vadd.f32 %v2540_v35, %v6124_v17  ;;  %v6130_v56 = vld [vmem:[#allocation70_spill] sm:$0xff]  ;;  %v6133_v9 = vld [vmem:[#allocation60_spill] sm:$0xff] }
 0x3cc   :  { %4177 = vmatprep.subr.bf16.mxu1 %v6120_v18  ;;  %v2536_v20 = vrot.slane %v5642_v7, %v6059_v6  ;;  %v5693_v44 = vpack.c.bf16 %v2818_v24, %v2814_v15  ;;  %v2813_v8 = vmax.f32 %v2685_v22, 0.0  ;;  %v2817_v16 = vmax.f32 %v2689_v25, 0.0  ;;  %v6134_v24 = vld [vmem:[#allocation67_spill] sm:$0xff]  ;;  %v6135_v22 = vld [vmem:[#allocation17_spill] sm:$0xff]  ;;  %v6137_v55 = vld [vmem:[#allocation66_spill] sm:$0xff] }
 0x3cd   :  { %v2822_v13 = vmax.f32 %v2694_v14, 0.0  ;;  %v5697_v28 = vpack.c.bf16 %v2809_v59, %v2805_v57  ;;  %v2826_v47 = vmax.f32 %v2698_v10, 0.0  ;;  %v2706_v30 = vadd.f32 %v2540_v35, %v6130_v56  ;;  %v6138_v57 = vld [vmem:[#allocation20_spill] sm:$0xff] }
 0x3ce   :  { %3358 = vmatmul.mubr.bf16.gmra.mrb[144].mxu1 %v5576_v51  ;;  %v2693_v36 = vadd.f32 %v2536_v20, %v6126_v37  ;;  %v2697_v21 = vadd.f32 %v2536_v20, %v6127_v32  ;;  %v5702_v53 = vpack.c.bf16 %v2817_v16, %v2813_v8  ;;  %v6129_v51 = vld [vmem:[#allocation68_spill] sm:$0xff]  ;;  %v2701_v29 = vadd.f32 %v2536_v20, %v6131_v63 }
 0x3cf   :  { %3367 = vmatprep.mubr.bf16.mxu1 %v5580_v42  ;;  %4193 = vmatpush1.bf16.msra.mxu1 %v6125_v54  ;;  %v2702_v11 = vadd.f32 %v2540_v35, %v6129_v51  ;;  %v5707_v42 = vpack.c.bf16 %v2826_v47, %v2822_v13  ;;  %v2705_v5 = vadd.f32 %v2536_v20, %v6132_v33  ;;  %v2834_v3 = vmax.f32 %v2706_v30, 0.0  ;;  %v6139_v17 = vld [vmem:[#allocation72_spill] sm:$0xff]  ;;  %v6141_v47 = vld [vmem:[#allocation73_spill] sm:$0xff]  ;;  %v6142_v51 = vld [vmem:[#allocation14_spill] sm:$0xff] }
 0x3d0   :  { %4178 = vmatprep.subr.bf16.mxu1 %v6128_v12  ;;  %v2821_v60 = vmax.f32 %v2693_v36, 0.0  ;;  %v2825_v49 = vmax.f32 %v2697_v21, 0.0  ;;  %v2829_v48 = vmax.f32 %v2701_v29, 0.0  ;;  %v2432_v25 = vrot.slane %v6136_v45, %v6135_v22  ;;  %v6143_v30 = vld [vmem:[#allocation11_spill] sm:$0xff] }
 0x3d1   :  { %v2830_v39 = vmax.f32 %v2702_v11, 0.0  ;;  %v2833_v18 = vmax.f32 %v2705_v5, 0.0  ;;  %v2436_v59 = vrot.slane %v6136_v45, %v6138_v57  ;;  %v6146_v45 = vld [vmem:[#allocation74_spill] sm:$0xff] }
 0x3d2   :  { %v5711_v15 = vpack.c.bf16 %v2825_v49, %v2821_v60 }
 0x3d3   :  { %4194 = vmatpush1.bf16.msra.mxu1 %v6133_v9  ;;  %v5714_v41 = vpack.c.bf16 %v2834_v3, %v2830_v39  ;;  %v5716_v35 = vpack.c.bf16 %v2833_v18, %v2829_v48  ;;  %v6144_v39 = vld [vmem:[#allocation13_spill] sm:$0xff]  ;;  %v6145_v3 = vld [vmem:[#allocation12_spill] sm:$0xff] }
 0x3d4   :  { %4179 = vmatprep.subr.bf16.mxu1 %v6134_v24 }
 0x3d6   :  { %3368 = vmatmul.mubr.bf16.gmra.mrb[148].mxu1 %v5584_v52  ;;  %v6140_v52 = vld [vmem:[#allocation71_spill] sm:$0xff] }
 0x3d7   :  { %3377 = vmatprep.mubr.bf16.mxu1 %v5596_v26  ;;  %4195 = vmatpush1.bf16.msra.mxu1 %v6137_v55  ;;  %v2448_v55 = vrot.slane %v6146_v45, %v6135_v22 }
 0x3d8   :  { %v2190_v14 = vpop.f32.mrb[40].mxu0  ;;  %4180 = vmatprep.subr.bf16.mxu1 %v6139_v17 }
 0x3d9   :  { %v2583_v10 = vadd.f32 %v2432_v25, %v2190_v14  ;;  %v2192_v20 = vpop.f32.mrb[41].mxu0 }
 0x3da   :  { %v2584_v8 = vadd.f32 %v2436_v59, %v2192_v20  ;;  %v2194_v16 = vpop.f32.mrb[42].mxu0 }
 0x3db   :  { %v2587_v13 = vadd.f32 %v2432_v25, %v2194_v16  ;;  %v2196_v54 = vpop.f32.mrb[43].mxu0  ;;  %4196 = vmatpush1.bf16.msra.mxu1 %v6140_v52  ;;  %v2711_v37 = vmax.f32 %v2583_v10, 0.0  ;;  %v6148_v10 = vld [vmem:[#allocation15_spill] sm:$0xff] }
 0x3dc   :  { %v2588_v26 = vadd.f32 %v2436_v59, %v2196_v54  ;;  %4181 = vmatprep.subr.bf16.mxu1 %v6141_v47  ;;  %v2712_v32 = vmax.f32 %v2584_v8, 0.0 }
 0x3dd   :  { %v2715_v36 = vmax.f32 %v2587_v13, 0.0 }
 0x3de   :  { %v2716_v21 = vmax.f32 %v2588_v26, 0.0  ;;  %3378 = vmatmul.mubr.bf16.gmra.mrb[152].mxu1 %v5611_v61 }
 0x3df   :  { %v2839_v12 = vpack.c.bf16 %v2715_v36, %v2711_v37  ;;  %3387 = vmatprep.mubr.bf16.mxu1 %v5606_v38  ;;  %4197 = vmatpush1.bf16.msra.mxu1 %v6142_v51 }
 0x3e0   :  { %v2840_v11 = vpack.c.bf16 %v2716_v21, %v2712_v32  ;;  %v2200_v56 = vpop.f32.mrb[44].mxu0  ;;  %4182 = vmatprep.subr.bf16.mxu1 %v6143_v30 }
 0x3e1   :  { %v2591_v63 = vadd.f32 %v2432_v25, %v2200_v56  ;;  %v2202_v29 = vpop.f32.mrb[45].mxu0 }
 0x3e2   :  { %v2592_v60 = vadd.f32 %v2436_v59, %v2202_v29  ;;  %v2204_v49 = vpop.f32.mrb[46].mxu0  ;;  %3510 = vmatprep.mubr.bf16.mxu0 %v2840_v11 }
 0x3e3   :  { %v2595_v33 = vadd.f32 %v2432_v25, %v2204_v49  ;;  %v2206_v5 = vpop.f32.mrb[47].mxu0  ;;  %3511 = vmatmul.mubr.bf16.vlgmr.msra.gmra.mrb[104].mxu0 %v2839_v12  ;;  %4198 = vmatpush1.bf16.msra.mxu1 %v6144_v39  ;;  %v2719_v38 = vmax.f32 %v2591_v63, 0.0  ;;  %v6147_v25 = vld [vmem:[#allocation16_spill] sm:$0xff] }
 0x3e4   :  { %v2596_v61 = vadd.f32 %v2436_v59, %v2206_v5  ;;  %4183 = vmatprep.subr.bf16.mxu1 %v6145_v3  ;;  %v2720_v9 = vmax.f32 %v2592_v60, 0.0  ;;  %v2452_v59 = vrot.slane %v6146_v45, %v6138_v57 }
 0x3e5   :  { %v2723_v48 = vmax.f32 %v2595_v33, 0.0 }
 0x3e6   :  { %v2724_v18 = vmax.f32 %v2596_v61, 0.0  ;;  %3388 = vmatmul.mubr.bf16.gmra.mrb[156].mxu1 %v5613_v4 }
 0x3e7   :  { %v2843_v24 = vpack.c.bf16 %v2723_v48, %v2719_v38  ;;  %3397 = vmatprep.mubr.bf16.mxu1 %v5626_v34  ;;  %4199 = vmatpush1.bf16.msra.mxu1 %v6147_v25  ;;  %v6149_v34 = vld [vmem:[#allocation18_spill] sm:$0xff] }
 0x3e8   :  { %v2844_v14 = vpack.c.bf16 %v2724_v18, %v2720_v9  ;;  %v2210_v17 = vpop.f32.mrb[48].mxu0  ;;  %4184 = vmatprep.subr.bf16.mxu1 %v6148_v10 }
 0x3e9   :  { %v2599_v20 = vadd.f32 %v2448_v55, %v2210_v17  ;;  %v2212_v8 = vpop.f32.mrb[49].mxu0 }
 0x3ea   :  { %v2600_v16 = vadd.f32 %v2452_v59, %v2212_v8  ;;  %v2214_v13 = vpop.f32.mrb[50].mxu0  ;;  %3520 = vmatprep.mubr.bf16.mxu0 %v2844_v14 }
 0x3eb   :  { %v2603_v4 = vadd.f32 %v2448_v55, %v2214_v13  ;;  %v2216_v54 = vpop.f32.mrb[51].mxu0  ;;  %3521 = vmatmul.mubr.bf16.gmra.mrb[108].mxu0 %v2843_v24  ;;  %4200 = vmatpush1.bf16.msra.mxu1 %v6149_v34  ;;  %v2727_v26 = vmax.f32 %v2599_v20, 0.0 }
 0x3ec   :  { %v2604_v52 = vadd.f32 %v2452_v59, %v2216_v54  ;;  %v2728_v37 = vmax.f32 %v2600_v16, 0.0 }
 0x3ed   :  { %v2731_v47 = vmax.f32 %v2603_v4, 0.0 }
 0x3ee   :  { %v2732_v36 = vmax.f32 %v2604_v52, 0.0  ;;  %3398 = vmatmul.mubr.bf16.gmra.mrb[160].mxu1 %v5644_v62 }
 0x3ef   :  { %v2847_v32 = vpack.c.bf16 %v2731_v47, %v2727_v26  ;;  %3407 = vmatprep.mubr.bf16.mxu1 %v5636_v1  ;;  %v6150_v1 = vld [vmem:[#allocation75_spill] sm:$0xff] }
 0x3f0   :  { %v2848_v21 = vpack.c.bf16 %v2732_v36, %v2728_v37  ;;  %v2220_v12 = vpop.f32.mrb[52].mxu0  ;;  %v2464_v61 = vrot.slane %v6150_v1, %v6135_v22  ;;  %v2468_v48 = vrot.slane %v6150_v1, %v6138_v57 }
 0x3f1   :  { %v2607_v51 = vadd.f32 %v2448_v55, %v2220_v12  ;;  %v2222_v11 = vpop.f32.mrb[53].mxu0 }
 0x3f2   :  { %v2608_v56 = vadd.f32 %v2452_v59, %v2222_v11  ;;  %v2224_v30 = vpop.f32.mrb[54].mxu0  ;;  %3530 = vmatprep.mubr.bf16.mxu0 %v2848_v21 }
 0x3f3   :  { %v2611_v63 = vadd.f32 %v2448_v55, %v2224_v30  ;;  %v2226_v29 = vpop.f32.mrb[55].mxu0  ;;  %3531 = vmatmul.mubr.bf16.gmra.mrb[112].mxu0 %v2847_v32  ;;  %v2735_v49 = vmax.f32 %v2607_v51, 0.0  ;;  %v2484_v51 = vrot.slane %v5517_v40, %v6138_v57 }
 0x3f4   :  { %v2612_v60 = vadd.f32 %v2452_v59, %v2226_v29  ;;  %v2736_v5 = vmax.f32 %v2608_v56, 0.0 }
 0x3f5   :  { %v2739_v33 = vmax.f32 %v2611_v63, 0.0 }
 0x3f6   :  { %v2740_v39 = vmax.f32 %v2612_v60, 0.0  ;;  %3408 = vmatmul.mubr.bf16.gmra.mrb[164].mxu1 %v5646_v2 }
 0x3f7   :  { %v2851_v62 = vpack.c.bf16 %v2739_v33, %v2735_v49  ;;  %3417 = vmatprep.mubr.bf16.mxu1 %v5658_v50 }
 0x3f8   :  { %v2852_v3 = vpack.c.bf16 %v2740_v39, %v2736_v5  ;;  %v2230_v38 = vpop.f32.mrb[56].mxu0 }
 0x3f9   :  { %v2615_v9 = vadd.f32 %v2464_v61, %v2230_v38  ;;  %v2232_v18 = vpop.f32.mrb[57].mxu0 }
 0x3fa   :  { %v2616_v24 = vadd.f32 %v2468_v48, %v2232_v18  ;;  %v2234_v45 = vpop.f32.mrb[58].mxu0  ;;  %3540 = vmatprep.mubr.bf16.mxu0 %v2852_v3 }
 0x3fb   :  { %v2619_v55 = vadd.f32 %v2464_v61, %v2234_v45  ;;  %v2236_v25 = vpop.f32.mrb[59].mxu0  ;;  %3541 = vmatmul.mubr.bf16.gmra.mrb[116].mxu0 %v2851_v62  ;;  %v2743_v14 = vmax.f32 %v2615_v9, 0.0 }
 0x3fc   :  { %v2620_v2 = vadd.f32 %v2468_v48, %v2236_v25  ;;  %v2744_v50 = vmax.f32 %v2616_v24, 0.0 }
 0x3fd   :  { %v2747_v17 = vmax.f32 %v2619_v55, 0.0 }
 0x3fe   :  { %v2748_v59 = vmax.f32 %v2620_v2, 0.0  ;;  %3418 = vmatmul.mubr.bf16.gmra.mrb[168].mxu1 %v5669_v58 }
 0x3ff   :  { %v2855_v10 = vpack.c.bf16 %v2747_v17, %v2743_v14  ;;  %3427 = vmatprep.mubr.bf16.mxu1 %v5665_v19  ;;  %v2480_v19 = vrot.slane %v5517_v40, %v6135_v22  ;;  %v2500_v17 = vrot.slane %v5520_v46, %v6138_v57 }
 0x400   :  { %v2856_v20 = vpack.c.bf16 %v2748_v59, %v2744_v50  ;;  %v2240_v8 = vpop.f32.mrb[60].mxu0 }
 0x401   :  { %v2623_v16 = vadd.f32 %v2464_v61, %v2240_v8  ;;  %v2242_v13 = vpop.f32.mrb[61].mxu0 }
 0x402   :  { %v2624_v4 = vadd.f32 %v2468_v48, %v2242_v13  ;;  %v2244_v54 = vpop.f32.mrb[62].mxu0  ;;  %3550 = vmatprep.mubr.bf16.mxu0 %v2856_v20 }
 0x403   :  { %v2627_v34 = vadd.f32 %v2464_v61, %v2244_v54  ;;  %v2246_v52 = vpop.f32.mrb[63].mxu0  ;;  %3551 = vmatmul.mubr.bf16.gmra.mrb[120].mxu0 %v2855_v10  ;;  %v2751_v47 = vmax.f32 %v2623_v16, 0.0 }
 0x404   :  { %v2628_v26 = vadd.f32 %v2468_v48, %v2246_v52  ;;  %v2752_v36 = vmax.f32 %v2624_v4, 0.0 }
 0x405   :  { %v2755_v37 = vmax.f32 %v2627_v34, 0.0 }
 0x406   :  { %v2756_v32 = vmax.f32 %v2628_v26, 0.0  ;;  %3428 = vmatmul.mubr.bf16.gmra.mrb[172].mxu1 %v5672_v23 }
 0x407   :  { %v2859_v58 = vpack.c.bf16 %v2755_v37, %v2751_v47  ;;  %3437 = vmatprep.mubr.bf16.mxu1 %v5681_v0 }
 0x408   :  { %v2860_v21 = vpack.c.bf16 %v2756_v32, %v2752_v36  ;;  %v2250_v12 = vpop.f32.mrb[64].mxu0 }
 0x409   :  { %v2631_v11 = vadd.f32 %v2480_v19, %v2250_v12  ;;  %v2252_v56 = vpop.f32.mrb[65].mxu0 }
 0x40a   :  { %v2632_v30 = vadd.f32 %v2484_v51, %v2252_v56  ;;  %v2254_v63 = vpop.f32.mrb[66].mxu0  ;;  %3560 = vmatprep.mubr.bf16.mxu0 %v2860_v21 }
 0x40b   :  { %v2635_v29 = vadd.f32 %v2480_v19, %v2254_v63  ;;  %v2256_v60 = vpop.f32.mrb[67].mxu0  ;;  %3561 = vmatmul.mubr.bf16.gmra.mrb[124].mxu0 %v2859_v58  ;;  %v2759_v49 = vmax.f32 %v2631_v11, 0.0  ;;  %v2516_v63 = vrot.slane %v5604_v43, %v6138_v57 }
 0x40c   :  { %v2636_v23 = vadd.f32 %v2484_v51, %v2256_v60  ;;  %v2760_v0 = vmax.f32 %v2632_v30, 0.0 }
 0x40d   :  { %v2763_v33 = vmax.f32 %v2635_v29, 0.0 }
 0x40e   :  { %v2764_v5 = vmax.f32 %v2636_v23, 0.0  ;;  %3438 = vmatmul.mubr.bf16.gmra.mrb[176].mxu1 %v5697_v28 }
 0x40f   :  { %v2863_v39 = vpack.c.bf16 %v2763_v33, %v2759_v49  ;;  %3447 = vmatprep.mubr.bf16.mxu1 %v5693_v44  ;;  %v2496_v44 = vrot.slane %v5520_v46, %v6135_v22 }
 0x410   :  { %v2864_v62 = vpack.c.bf16 %v2764_v5, %v2760_v0  ;;  %v2260_v40 = vpop.f32.mrb[68].mxu0 }
 0x411   :  { %v2639_v1 = vadd.f32 %v2480_v19, %v2260_v40  ;;  %v2262_v61 = vpop.f32.mrb[69].mxu0 }
 0x412   :  { %v2640_v3 = vadd.f32 %v2484_v51, %v2262_v61  ;;  %v2264_v38 = vpop.f32.mrb[70].mxu0  ;;  %3570 = vmatprep.mubr.bf16.mxu0 %v2864_v62 }
 0x413   :  { %v2643_v48 = vadd.f32 %v2480_v19, %v2264_v38  ;;  %v2266_v9 = vpop.f32.mrb[71].mxu0  ;;  %3571 = vmatmul.mubr.bf16.gmra.mrb[128].mxu0 %v2863_v39  ;;  %v2767_v24 = vmax.f32 %v2639_v1, 0.0 }
 0x414   :  { %v2644_v18 = vadd.f32 %v2484_v51, %v2266_v9  ;;  %v2768_v55 = vmax.f32 %v2640_v3, 0.0 }
 0x415   :  { %v2771_v45 = vmax.f32 %v2643_v48, 0.0 }
 0x416   :  { %v2772_v25 = vmax.f32 %v2644_v18, 0.0  ;;  %3448 = vmatmul.mubr.bf16.gmra.mrb[180].mxu1 %v5702_v53 }
 0x417   :  { %v2867_v28 = vpack.c.bf16 %v2771_v45, %v2767_v24  ;;  %3457 = vmatprep.mubr.bf16.mxu1 %v5707_v42 }
 0x418   :  { %v2868_v2 = vpack.c.bf16 %v2772_v25, %v2768_v55  ;;  %v2270_v14 = vpop.f32.mrb[72].mxu0 }
 0x419   :  { %v2647_v50 = vadd.f32 %v2496_v44, %v2270_v14  ;;  %v2272_v59 = vpop.f32.mrb[73].mxu0  ;;  %v2528_v14 = vrot.slane %v5634_v31, %v6135_v22 }
 0x41a   :  { %v2648_v10 = vadd.f32 %v2500_v17, %v2272_v59  ;;  %v2274_v20 = vpop.f32.mrb[74].mxu0  ;;  %3580 = vmatprep.mubr.bf16.mxu0 %v2868_v2  ;;  %v2532_v59 = vrot.slane %v5634_v31, %v6138_v57 }
 0x41b   :  { %v2651_v8 = vadd.f32 %v2496_v44, %v2274_v20  ;;  %v2276_v16 = vpop.f32.mrb[75].mxu0  ;;  %3581 = vmatmul.mubr.bf16.gmra.mrb[132].mxu0 %v2867_v28  ;;  %v2775_v13 = vmax.f32 %v2647_v50, 0.0 }
 0x41c   :  { %v2652_v53 = vadd.f32 %v2500_v17, %v2276_v16  ;;  %v2776_v42 = vmax.f32 %v2648_v10, 0.0 }
 0x41d   :  { %v2779_v4 = vmax.f32 %v2651_v8, 0.0 }
 0x41e   :  { %v2780_v54 = vmax.f32 %v2652_v53, 0.0  ;;  %3458 = vmatmul.mubr.bf16.gmra.mrb[184].mxu1 %v5711_v15 }
 0x41f   :  { %v2871_v34 = vpack.c.bf16 %v2779_v4, %v2775_v13  ;;  %3467 = vmatprep.mubr.bf16.mxu1 %v5714_v41  ;;  %v2512_v41 = vrot.slane %v5604_v43, %v6135_v22 }
 0x420   :  { %v2872_v52 = vpack.c.bf16 %v2780_v54, %v2776_v42  ;;  %v2280_v46 = vpop.f32.mrb[76].mxu0 }
 0x421   :  { %v2655_v26 = vadd.f32 %v2496_v44, %v2280_v46  ;;  %v2282_v47 = vpop.f32.mrb[77].mxu0 }
 0x422   :  { %v2656_v37 = vadd.f32 %v2500_v17, %v2282_v47  ;;  %v2284_v36 = vpop.f32.mrb[78].mxu0  ;;  %3590 = vmatprep.mubr.bf16.mxu0 %v2872_v52 }
 0x423   :  { %v2659_v32 = vadd.f32 %v2496_v44, %v2284_v36  ;;  %v2286_v58 = vpop.f32.mrb[79].mxu0  ;;  %3591 = vmatmul.mubr.bf16.gmra.mrb[136].mxu0 %v2871_v34  ;;  %v2783_v21 = vmax.f32 %v2655_v26, 0.0 }
 0x424   :  { %v2660_v19 = vadd.f32 %v2500_v17, %v2286_v58  ;;  %v2784_v51 = vmax.f32 %v2656_v37, 0.0 }
 0x425   :  { %v2787_v12 = vmax.f32 %v2659_v32, 0.0 }
 0x426   :  { %v2788_v11 = vmax.f32 %v2660_v19, 0.0  ;;  %3468 = vmatmul.mubr.bf16.gmra.mrb[188].mxu1 %v5716_v35 }
 0x427   :  { %v2875_v15 = vpack.c.bf16 %v2787_v12, %v2783_v21 }
 0x428   :  { %v2876_v56 = vpack.c.bf16 %v2788_v11, %v2784_v51  ;;  %v2290_v30 = vpop.f32.mrb[80].mxu0 }
 0x429   :  { %v2663_v29 = vadd.f32 %v2512_v41, %v2290_v30  ;;  %v2292_v60 = vpop.f32.mrb[81].mxu0 }
 0x42a   :  { %v2664_v23 = vadd.f32 %v2516_v63, %v2292_v60  ;;  %v2294_v49 = vpop.f32.mrb[82].mxu0  ;;  %3600 = vmatprep.mubr.bf16.mxu0 %v2876_v56  ;;  %v2544_v56 = vrot.slane %v5642_v7, %v6135_v22 }
 0x42b   :  { %v2667_v33 = vadd.f32 %v2512_v41, %v2294_v49  ;;  %v2296_v0 = vpop.f32.mrb[83].mxu0  ;;  %3601 = vmatmul.mubr.bf16.gmra.mrb[140].mxu0 %v2875_v15  ;;  %v2791_v39 = vmax.f32 %v2663_v29, 0.0  ;;  %v2548_v29 = vrot.slane %v5642_v7, %v6138_v57 }
 0x42c   :  { %v2668_v5 = vadd.f32 %v2516_v63, %v2296_v0  ;;  %v2792_v62 = vmax.f32 %v2664_v23, 0.0 }
 0x42d   :  { %v2795_v35 = vmax.f32 %v2667_v33, 0.0 }
 0x42e   :  { %v2796_v40 = vmax.f32 %v2668_v5, 0.0 }
 0x42f   :  { %v2879_v1 = vpack.c.bf16 %v2795_v35, %v2791_v39 }
 0x430   :  { %v2880_v61 = vpack.c.bf16 %v2796_v40, %v2792_v62  ;;  %v2300_v3 = vpop.f32.mrb[84].mxu0 }
 0x431   :  { %v2671_v38 = vadd.f32 %v2512_v41, %v2300_v3  ;;  %v2302_v48 = vpop.f32.mrb[85].mxu0 }
 0x432   :  { %v2672_v9 = vadd.f32 %v2516_v63, %v2302_v48  ;;  %v2304_v43 = vpop.f32.mrb[86].mxu0  ;;  %3610 = vmatprep.mubr.bf16.mxu0 %v2880_v61 }
 0x433   :  { %v2675_v18 = vadd.f32 %v2512_v41, %v2304_v43  ;;  %v2306_v24 = vpop.f32.mrb[87].mxu0  ;;  %3611 = vmatmul.mubr.bf16.gmra.mrb[144].mxu0 %v2879_v1  ;;  %v2799_v55 = vmax.f32 %v2671_v38, 0.0 }
 0x434   :  { %v2676_v45 = vadd.f32 %v2516_v63, %v2306_v24  ;;  %v2800_v28 = vmax.f32 %v2672_v9, 0.0 }
 0x435   :  { %v2803_v25 = vmax.f32 %v2675_v18, 0.0 }
 0x436   :  { %v2804_v44 = vmax.f32 %v2676_v45, 0.0 }
 0x437   :  { %v2883_v2 = vpack.c.bf16 %v2803_v25, %v2799_v55 }
 0x438   :  { %v2884_v17 = vpack.c.bf16 %v2804_v44, %v2800_v28  ;;  %v2310_v50 = vpop.f32.mrb[88].mxu0 }
 0x439   :  { %v2679_v10 = vadd.f32 %v2528_v14, %v2310_v50  ;;  %v2312_v20 = vpop.f32.mrb[89].mxu0 }
 0x43a   :  { %v2680_v8 = vadd.f32 %v2532_v59, %v2312_v20  ;;  %v2314_v16 = vpop.f32.mrb[90].mxu0  ;;  %3620 = vmatprep.mubr.bf16.mxu0 %v2884_v17 }
 0x43b   :  { %v2683_v53 = vadd.f32 %v2528_v14, %v2314_v16  ;;  %v2316_v13 = vpop.f32.mrb[91].mxu0  ;;  %3621 = vmatmul.mubr.bf16.gmra.mrb[148].mxu0 %v2883_v2  ;;  %v2807_v42 = vmax.f32 %v2679_v10, 0.0 }
 0x43c   :  { %v2684_v4 = vadd.f32 %v2532_v59, %v2316_v13  ;;  %v2808_v34 = vmax.f32 %v2680_v8, 0.0 }
 0x43d   :  { %v2811_v54 = vmax.f32 %v2683_v53, 0.0 }
 0x43e   :  { %v2812_v52 = vmax.f32 %v2684_v4, 0.0 }
 0x43f   :  { %v2887_v46 = vpack.c.bf16 %v2811_v54, %v2807_v42 }
 0x440   :  { %v2888_v26 = vpack.c.bf16 %v2812_v52, %v2808_v34  ;;  %v2320_v47 = vpop.f32.mrb[92].mxu0 }
 0x441   :  { %v2687_v37 = vadd.f32 %v2528_v14, %v2320_v47  ;;  %v2322_v36 = vpop.f32.mrb[93].mxu0 }
 0x442   :  { %v2688_v32 = vadd.f32 %v2532_v59, %v2322_v36  ;;  %v2324_v31 = vpop.f32.mrb[94].mxu0  ;;  %3630 = vmatprep.mubr.bf16.mxu0 %v2888_v26 }
 0x443   :  { %v2691_v58 = vadd.f32 %v2528_v14, %v2324_v31  ;;  %v2326_v19 = vpop.f32.mrb[95].mxu0  ;;  %3631 = vmatmul.mubr.bf16.gmra.mrb[152].mxu0 %v2887_v46  ;;  %v2815_v12 = vmax.f32 %v2687_v37, 0.0 }
 0x444   :  { %v2692_v21 = vadd.f32 %v2532_v59, %v2326_v19  ;;  %v2816_v11 = vmax.f32 %v2688_v32, 0.0 }
 0x445   :  { %v2819_v51 = vmax.f32 %v2691_v58, 0.0 }
 0x446   :  { %v2820_v15 = vmax.f32 %v2692_v21, 0.0 }
 0x447   :  { %v2891_v41 = vpack.c.bf16 %v2819_v51, %v2815_v12 }
 0x448   :  { %v2892_v30 = vpack.c.bf16 %v2820_v15, %v2816_v11  ;;  %v2330_v63 = vpop.f32.mrb[96].mxu0 }
 0x449   :  { %v2695_v60 = vadd.f32 %v2544_v56, %v2330_v63  ;;  %v2332_v23 = vpop.f32.mrb[97].mxu0 }
 0x44a   :  { %v2696_v49 = vadd.f32 %v2548_v29, %v2332_v23  ;;  %v2334_v33 = vpop.f32.mrb[98].mxu0  ;;  %3640 = vmatprep.mubr.bf16.mxu1 %v2892_v30 }
 0x44b   :  { %v2699_v0 = vadd.f32 %v2544_v56, %v2334_v33  ;;  %v2336_v5 = vpop.f32.mrb[99].mxu0  ;;  %3641 = vmatmul.mubr.bf16.vlgmr.msra.gmra.mrb[180].mxu1 %v2891_v41  ;;  %v2823_v35 = vmax.f32 %v2695_v60, 0.0 }
 0x44c   :  { %v2700_v39 = vadd.f32 %v2548_v29, %v2336_v5  ;;  %v2824_v40 = vmax.f32 %v2696_v49, 0.0 }
 0x44d   :  { %v2827_v62 = vmax.f32 %v2699_v0, 0.0 }
 0x44e   :  { %v2828_v1 = vmax.f32 %v2700_v39, 0.0 }
 0x44f   :  { %v2895_v61 = vpack.c.bf16 %v2827_v62, %v2823_v35 }
 0x450   :  { %v2896_v22 = vpack.c.bf16 %v2828_v1, %v2824_v40  ;;  %v2340_v3 = vpop.f32.mrb[100].mxu0 }
 0x451   :  { %v2703_v38 = vadd.f32 %v2544_v56, %v2340_v3  ;;  %v2342_v48 = vpop.f32.mrb[101].mxu0 }
 0x452   :  { %v2704_v9 = vadd.f32 %v2548_v29, %v2342_v48  ;;  %v2344_v7 = vpop.f32.mrb[102].mxu0  ;;  %3650 = vmatprep.mubr.bf16.mxu1 %v2896_v22 }
 0x453   :  { %v2707_v57 = vadd.f32 %v2544_v56, %v2344_v7  ;;  %v2346_v43 = vpop.f32.mrb[103].mxu0  ;;  %3651 = vmatmul.mubr.bf16.gmra.mrb[184].mxu1 %v2895_v61  ;;  %v2831_v24 = vmax.f32 %v2703_v38, 0.0 }
 0x454   :  { %v2708_v18 = vadd.f32 %v2548_v29, %v2346_v43  ;;  %v2832_v55 = vmax.f32 %v2704_v9, 0.0 }
 0x455   :  { %v2835_v45 = vmax.f32 %v2707_v57, 0.0 }
 0x456   :  { %v2836_v25 = vmax.f32 %v2708_v18, 0.0 }
 0x457   :  { %v2899_v28 = vpack.c.bf16 %v2835_v45, %v2831_v24 }
 0x458   :  { %v2900_v44 = vpack.c.bf16 %v2836_v25, %v2832_v55 }
 0x45a   :  { %3660 = vmatprep.mubr.bf16.mxu1 %v2900_v44 }
 0x45b   :  { %3661 = vmatmul.mubr.bf16.gmra.mrb[188].mxu1 %v2899_v28 }
 0x481   :  { %v3319_v2 = vpop.f32.mrb[128].mxu1 }
 0x482   :  { %v3321_v14 = vpop.f32.mrb[129].mxu1 }
 0x483   :  { %v3323_v17 = vpop.f32.mrb[130].mxu1 }
 0x484   :  { %v3325_v50 = vpop.f32.mrb[131].mxu1 }
 0x489   :  { %v3329_v59 = vpop.f32.mrb[132].mxu1 }
 0x48a   :  { %v3331_v10 = vpop.f32.mrb[133].mxu1 }
 0x48b   :  { %v3333_v20 = vpop.f32.mrb[134].mxu1 }
 0x48c   :  { %v3335_v8 = vpop.f32.mrb[135].mxu1 }
 0x491   :  { %v3339_v16 = vpop.f32.mrb[136].mxu1 }
 0x492   :  { %v3341_v53 = vpop.f32.mrb[137].mxu1 }
 0x493   :  { %v3343_v13 = vpop.f32.mrb[138].mxu1 }
 0x494   :  { %v3345_v4 = vpop.f32.mrb[139].mxu1 }
 0x499   :  { %v5782_v42 = vpop.f32.mrb[140].mxu1 }
 0x49a   :  { %v5784_v54 = vpop.f32.mrb[141].mxu1 }
 0x49b   :  { %v5786_v34 = vpop.f32.mrb[142].mxu1 }
 0x49c   :  { %v5788_v52 = vpop.f32.mrb[143].mxu1 }
 0x4a1   :  { %v5790_v46 = vpop.f32.mrb[144].mxu1 }
 0x4a2   :  { %v5792_v26 = vpop.f32.mrb[145].mxu1 }
 0x4a3   :  { %v5794_v47 = vpop.f32.mrb[146].mxu1 }
 0x4a4   :  { %v5796_v37 = vpop.f32.mrb[147].mxu1 }
 0x4a9   :  { %v5798_v36 = vpop.f32.mrb[148].mxu1 }
 0x4aa   :  { %v5800_v32 = vpop.f32.mrb[149].mxu1 }
 0x4ab   :  { %v5802_v31 = vpop.f32.mrb[150].mxu1 }
 0x4ac   :  { %v5804_v58 = vpop.f32.mrb[151].mxu1 }
 0x4b1   :  { %v5806_v19 = vpop.f32.mrb[152].mxu1 }
 0x4b2   :  { %v5808_v21 = vpop.f32.mrb[153].mxu1 }
 0x4b3   :  { %v5810_v12 = vpop.f32.mrb[154].mxu1 }
 0x4b4   :  { %v5812_v51 = vpop.f32.mrb[155].mxu1 }
 0x4b6   :  { %v3512_v11 = vpop.f32.mrb[104].mxu0 }
 0x4b7   :  { %v3513_v15 = vadd.f32 %v3512_v11, %v3319_v2  ;;  %v3514_v41 = vpop.f32.mrb[105].mxu0 }
 0x4b8   :  { %v3515_v56 = vadd.f32 %v3514_v41, %v3321_v14  ;;  %v3516_v30 = vpop.f32.mrb[106].mxu0 }
 0x4b9   :  { %v5814_v63 = vpop.f32.mrb[156].mxu1  ;;  %v3517_v29 = vadd.f32 %v3516_v30, %v3323_v17  ;;  %v3518_v60 = vpop.f32.mrb[107].mxu0 }
 0x4ba   :  { %v5816_v23 = vpop.f32.mrb[157].mxu1  ;;  %v3519_v49 = vadd.f32 %v3518_v60, %v3325_v50 }
 0x4bb   :  { %v3673_v33 = vmax.f32 %v3513_v15, %v3517_v29  ;;  %v5818_v0 = vpop.f32.mrb[158].mxu1 }
 0x4bc   :  { %v3682_v5 = vmax.f32 %v3515_v56, %v3519_v49  ;;  %v5820_v39 = vpop.f32.mrb[159].mxu1 }
 0x4be   :  { %v3522_v35 = vpop.f32.mrb[108].mxu0 }
 0x4bf   :  { %v3523_v62 = vadd.f32 %v3522_v35, %v3329_v59  ;;  %v3524_v40 = vpop.f32.mrb[109].mxu0 }
 0x4c0   :  { %v3525_v1 = vadd.f32 %v3524_v40, %v3331_v10  ;;  %v3526_v61 = vpop.f32.mrb[110].mxu0 }
 0x4c1   :  { %v3674_v22 = vmax.f32 %v3673_v33, %v3523_v62  ;;  %v5822_v3 = vpop.f32.mrb[160].mxu1  ;;  %v3527_v38 = vadd.f32 %v3526_v61, %v3333_v20  ;;  %v3528_v48 = vpop.f32.mrb[111].mxu0 }
 0x4c2   :  { %v3683_v9 = vmax.f32 %v3682_v5, %v3525_v1  ;;  %v5824_v7 = vpop.f32.mrb[161].mxu1  ;;  %v3529_v57 = vadd.f32 %v3528_v48, %v3335_v8 }
 0x4c3   :  { %v3675_v43 = vmax.f32 %v3674_v22, %v3527_v38  ;;  %v5826_v18 = vpop.f32.mrb[162].mxu1 }
 0x4c4   :  { %v3684_v24 = vmax.f32 %v3683_v9, %v3529_v57  ;;  %v5828_v45 = vpop.f32.mrb[163].mxu1 }
 0x4c5   :  { %v3676_v20 = vrot.slane %v3675_v43, 4 }
 0x4c6   :  { %v3532_v55 = vpop.f32.mrb[112].mxu0  ;;  %v3685_v15 = vrot.slane %v3684_v24, 4 }
 0x4c7   :  { %v3533_v25 = vadd.f32 %v3532_v55, %v3339_v16  ;;  %v3534_v28 = vpop.f32.mrb[113].mxu0  ;;  %v3677_v16 = vmax.f32 %v3675_v43, %v3676_v20 }
 0x4c8   :  { %v3535_v44 = vadd.f32 %v3534_v28, %v3341_v53  ;;  %v3536_v2 = vpop.f32.mrb[114].mxu0  ;;  %v3686_v60 = vmax.f32 %v3684_v24, %v3685_v15 }
 0x4c9   :  { %v5830_v14 = vpop.f32.mrb[164].mxu1  ;;  %v3537_v17 = vadd.f32 %v3536_v2, %v3343_v13  ;;  %v3538_v50 = vpop.f32.mrb[115].mxu0  ;;  %v3678_v61 = vrot.slane %v3677_v16, 2 }
 0x4ca   :  { %v5832_v59 = vpop.f32.mrb[165].mxu1  ;;  %v3539_v10 = vadd.f32 %v3538_v50, %v3345_v4 }
 0x4cb   :  { %v3691_v8 = vmax.f32 %v3533_v25, %v3537_v17  ;;  %v5834_v11 = vpop.f32.mrb[166].mxu1  ;;  %v3679_v24 = vmax.f32 %v3677_v16, %v3678_v61 }
 0x4cc   :  { %v3700_v41 = vmax.f32 %v3535_v44, %v3539_v10  ;;  %v5836_v56 = vpop.f32.mrb[167].mxu1 }
 0x4ce   :  { %v3542_v30 = vpop.f32.mrb[116].mxu0 }
 0x4cf   :  { %v3543_v53 = vadd.f32 %v3542_v30, %v5782_v42  ;;  %v3544_v29 = vpop.f32.mrb[117].mxu0  ;;  %v3687_v42 = vrot.slane %v3686_v60, 2  ;;  %v3680_v30 = vrot.slane %v3679_v24, 1 }
 0x4d0   :  { %v3545_v13 = vadd.f32 %v3544_v29, %v5784_v54  ;;  %v3546_v49 = vpop.f32.mrb[118].mxu0 }
 0x4d1   :  { %v3692_v33 = vmax.f32 %v3691_v8, %v3543_v53  ;;  %v5840_v5 = vpop.f32.mrb[168].mxu1  ;;  %v3547_v4 = vadd.f32 %v3546_v49, %v5786_v34  ;;  %v3548_v35 = vpop.f32.mrb[119].mxu0  ;;  %v3688_v28 = vmax.f32 %v3686_v60, %v3687_v42 }
 0x4d2   :  { %v3701_v62 = vmax.f32 %v3700_v41, %v3545_v13  ;;  %v5843_v40 = vpop.f32.mrb[169].mxu1  ;;  %v3549_v1 = vadd.f32 %v3548_v35, %v5788_v52 }
 0x4d3   :  { %v3693_v22 = vmax.f32 %v3692_v33, %v3547_v4  ;;  %v5846_v38 = vpop.f32.mrb[170].mxu1  ;;  %v3689_v29 = vrot.slane %v3688_v28, 1 }
 0x4d4   :  { %v3702_v48 = vmax.f32 %v3701_v62, %v3549_v1  ;;  %v5848_v9 = vpop.f32.mrb[171].mxu1 }
 0x4d5   :  { %v3694_v54 = vrot.slane %v3693_v22, 4  ;;  %v3690_v61 = vmax.f32 %v3688_v28, %v3689_v29 }
 0x4d6   :  { %v3703_v57 = vrot.slane %v3702_v48, 4  ;;  %v3552_v43 = vpop.f32.mrb[120].mxu0 }
 0x4d7   :  { %v3695_v55 = vmax.f32 %v3693_v22, %v3694_v54  ;;  %v3553_v34 = vadd.f32 %v3552_v43, %v5790_v46  ;;  %v3554_v25 = vpop.f32.mrb[121].mxu0 }
 0x4d8   :  { %v3704_v44 = vmax.f32 %v3702_v48, %v3703_v57  ;;  %v3555_v52 = vadd.f32 %v3554_v25, %v5792_v26  ;;  %v3556_v2 = vpop.f32.mrb[122].mxu0 }
 0x4d9   :  { %v3696_v17 = vrot.slane %v3695_v55, 2  ;;  %v5852_v50 = vpop.f32.mrb[172].mxu1  ;;  %v3557_v10 = vadd.f32 %v3556_v2, %v5794_v47  ;;  %v3558_v20 = vpop.f32.mrb[123].mxu0  ;;  %v3681_v47 = vmax.f32 %v3679_v24, %v3680_v30 }
 0x4da   :  { %v3705_v8 = vrot.slane %v3704_v44, 2  ;;  %v5855_v15 = vpop.f32.mrb[173].mxu1  ;;  %v3559_v41 = vadd.f32 %v3558_v20, %v5796_v37 }
 0x4db   :  { %v3697_v16 = vmax.f32 %v3695_v55, %v3696_v17  ;;  %v3709_v46 = vmax.f32 %v3553_v34, %v3557_v10  ;;  %v5858_v53 = vpop.f32.mrb[174].mxu1 }
 0x4dc   :  { %v3706_v60 = vmax.f32 %v3704_v44, %v3705_v8  ;;  %v3718_v26 = vmax.f32 %v3555_v52, %v3559_v41  ;;  %v5860_v13 = vpop.f32.mrb[175].mxu1 }
 0x4dd   :  { %v3698_v49 = vrot.slane %v3697_v16, 1 }
 0x4de   :  { %v3707_v33 = vrot.slane %v3706_v60, 1  ;;  %v3562_v4 = vpop.f32.mrb[124].mxu0 }
 0x4df   :  { %v3699_v35 = vmax.f32 %v3697_v16, %v3698_v49  ;;  %v3563_v62 = vadd.f32 %v3562_v4, %v5798_v36  ;;  %v3564_v1 = vpop.f32.mrb[125].mxu0 }
 0x4e0   :  { %v3708_v37 = vmax.f32 %v3706_v60, %v3707_v33  ;;  %v3565_v22 = vadd.f32 %v3564_v1, %v5800_v32  ;;  %v3566_v42 = vpop.f32.mrb[126].mxu0 }
 0x4e1   :  { %v3833_v48 = vsel %vm1118_vm2, %v3699_v35, %v3681_v47  ;;  %v3710_v54 = vmax.f32 %v3709_v46, %v3563_v62  ;;  %v5865_v57 = vpop.f32.mrb[176].mxu1  ;;  %v3567_v43 = vadd.f32 %v3566_v42, %v5802_v31  ;;  %v3568_v55 = vpop.f32.mrb[127].mxu0 }
 0x4e2   :  { %v3840_v34 = vsel %vm1118_vm2, %v3708_v37, %v3690_v61  ;;  %v3719_v24 = vmax.f32 %v3718_v26, %v3565_v22  ;;  %v5869_v25 = vpop.f32.mrb[177].mxu1  ;;  %v3569_v36 = vadd.f32 %v3568_v55, %v5804_v58 }
 0x4e3   :  { %v3711_v28 = vmax.f32 %v3710_v54, %v3567_v43  ;;  %v5872_v44 = vpop.f32.mrb[178].mxu1 }
 0x4e4   :  { %v3720_v32 = vmax.f32 %v3719_v24, %v3569_v36  ;;  %v5874_v52 = vpop.f32.mrb[179].mxu1 }
 0x4e5   :  { %v3712_v2 = vrot.slane %v3711_v28, 4 }
 0x4e6   :  { %v3721_v17 = vrot.slane %v3720_v32, 4  ;;  %v3572_v10 = vpop.f32.mrb[128].mxu0 }
 0x4e7   :  { %v3713_v20 = vmax.f32 %v3711_v28, %v3712_v2  ;;  %v3573_v31 = vadd.f32 %v3572_v10, %v5806_v19  ;;  %v3574_v8 = vpop.f32.mrb[129].mxu0 }
 0x4e8   :  { %v3722_v41 = vmax.f32 %v3720_v32, %v3721_v17  ;;  %v3575_v30 = vadd.f32 %v3574_v8, %v5808_v21  ;;  %v3576_v16 = vpop.f32.mrb[130].mxu0 }
 0x4e9   :  { %v3714_v46 = vrot.slane %v3713_v20, 2  ;;  %v3577_v58 = vadd.f32 %v3576_v16, %v5810_v12  ;;  %v3578_v29 = vpop.f32.mrb[131].mxu0 }
 0x4ea   :  { %v3723_v60 = vrot.slane %v3722_v41, 2  ;;  %v3579_v26 = vadd.f32 %v3578_v29, %v5812_v51 }
 0x4eb   :  { %v3715_v49 = vmax.f32 %v3713_v20, %v3714_v46  ;;  %v3727_v33 = vmax.f32 %v3573_v31, %v3577_v58 }
 0x4ec   :  { %v3724_v4 = vmax.f32 %v3722_v41, %v3723_v60  ;;  %v3736_v47 = vmax.f32 %v3575_v30, %v3579_v26 }
 0x4ed   :  { %v3716_v35 = vrot.slane %v3715_v49, 1 }
 0x4ee   :  { %v3725_v62 = vrot.slane %v3724_v4, 1  ;;  %v3582_v1 = vpop.f32.mrb[132].mxu0 }
 0x4ef   :  { %v3717_v19 = vmax.f32 %v3715_v49, %v3716_v35  ;;  %v3583_v61 = vadd.f32 %v3582_v1, %v5814_v63  ;;  %v3584_v37 = vpop.f32.mrb[133].mxu0 }
 0x4f0   :  { %v3726_v21 = vmax.f32 %v3724_v4, %v3725_v62  ;;  %v3585_v22 = vadd.f32 %v3584_v37, %v5816_v23  ;;  %v3586_v42 = vpop.f32.mrb[134].mxu0 }
 0x4f1   :  { %v3834_v12 = vsel %vm1120_vm3, %v3717_v19, %v3833_v48  ;;  %v3728_v54 = vmax.f32 %v3727_v33, %v3583_v61  ;;  %v3587_v51 = vadd.f32 %v3586_v42, %v5818_v0  ;;  %v3588_v43 = vpop.f32.mrb[135].mxu0 }
 0x4f2   :  { %v3841_v55 = vsel %vm1120_vm3, %v3726_v21, %v3840_v34  ;;  %v3737_v24 = vmax.f32 %v3736_v47, %v3585_v22  ;;  %v3589_v36 = vadd.f32 %v3588_v43, %v5820_v39 }
 0x4f3   :  { %v3729_v28 = vmax.f32 %v3728_v54, %v3587_v51 }
 0x4f4   :  { %v3738_v32 = vmax.f32 %v3737_v24, %v3589_v36 }
 0x4f5   :  { %v3730_v2 = vrot.slane %v3729_v28, 4 }
 0x4f6   :  { %v3739_v63 = vrot.slane %v3738_v32, 4  ;;  %v3592_v17 = vpop.f32.mrb[136].mxu0 }
 0x4f7   :  { %v3731_v10 = vmax.f32 %v3729_v28, %v3730_v2  ;;  %v3593_v23 = vadd.f32 %v3592_v17, %v5822_v3  ;;  %v3594_v20 = vpop.f32.mrb[137].mxu0 }
 0x4f8   :  { %v3740_v31 = vmax.f32 %v3738_v32, %v3739_v63  ;;  %v3595_v48 = vadd.f32 %v3594_v20, %v5824_v7  ;;  %v3596_v8 = vpop.f32.mrb[138].mxu0 }
 0x4f9   :  { %v3732_v0 = vrot.slane %v3731_v10, 2  ;;  %v3597_v41 = vadd.f32 %v3596_v8, %v5826_v18  ;;  %v3598_v34 = vpop.f32.mrb[139].mxu0 }
 0x4fa   :  { %v3741_v30 = vrot.slane %v3740_v31, 2  ;;  %v3599_v39 = vadd.f32 %v3598_v34, %v5828_v45 }
 0x4fb   :  { %v3733_v16 = vmax.f32 %v3731_v10, %v3732_v0  ;;  %v3745_v46 = vmax.f32 %v3593_v23, %v3597_v41 }
 0x4fc   :  { %v3742_v58 = vmax.f32 %v3740_v31, %v3741_v30  ;;  %v3754_v29 = vmax.f32 %v3595_v48, %v3599_v39 }
 0x4fd   :  { %v3734_v60 = vrot.slane %v3733_v16, 1 }
 0x4fe   :  { %v3743_v26 = vrot.slane %v3742_v58, 1  ;;  %v3602_v49 = vpop.f32.mrb[140].mxu0 }
 0x4ff   :  { %v3735_v3 = vmax.f32 %v3733_v16, %v3734_v60  ;;  %v3603_v33 = vadd.f32 %v3602_v49, %v5830_v14  ;;  %v3604_v4 = vpop.f32.mrb[141].mxu0 }
 0x500   :  { %v3744_v7 = vmax.f32 %v3742_v58, %v3743_v26  ;;  %v3605_v47 = vadd.f32 %v3604_v4, %v5832_v59  ;;  %v3606_v35 = vpop.f32.mrb[142].mxu0 }
 0x501   :  { %v3835_v18 = vsel %vm1122_vm4, %v3735_v3, %v3834_v12  ;;  %v3746_v62 = vmax.f32 %v3745_v46, %v3603_v33  ;;  %v3607_v45 = vadd.f32 %v3606_v35, %v5834_v11  ;;  %v3608_v1 = vpop.f32.mrb[143].mxu0 }
 0x502   :  { %v3842_v19 = vsel %vm1122_vm4, %v3744_v7, %v3841_v55  ;;  %v3755_v61 = vmax.f32 %v3754_v29, %v3605_v47  ;;  %v3609_v37 = vadd.f32 %v3608_v1, %v5836_v56 }
 0x503   :  { %v3747_v21 = vmax.f32 %v3746_v62, %v3607_v45 }
 0x504   :  { %v3756_v22 = vmax.f32 %v3755_v61, %v3609_v37 }
 0x505   :  { %v3748_v42 = vrot.slane %v3747_v21, 4 }
 0x506   :  { %v3757_v14 = vrot.slane %v3756_v22, 4  ;;  %v3612_v54 = vpop.f32.mrb[144].mxu0 }
 0x507   :  { %v3749_v51 = vmax.f32 %v3747_v21, %v3748_v42  ;;  %v3613_v59 = vadd.f32 %v3612_v54, %v5840_v5  ;;  %v3614_v43 = vpop.f32.mrb[145].mxu0 }
 0x508   :  { %v3758_v24 = vmax.f32 %v3756_v22, %v3757_v14  ;;  %v3615_v12 = vadd.f32 %v3614_v43, %v5843_v40  ;;  %v3616_v36 = vpop.f32.mrb[146].mxu0 }
 0x509   :  { %v3750_v11 = vrot.slane %v3749_v51, 2  ;;  %v3617_v28 = vadd.f32 %v3616_v36, %v5846_v38  ;;  %v3618_v55 = vpop.f32.mrb[147].mxu0 }
 0x50a   :  { %v3759_v32 = vrot.slane %v3758_v24, 2  ;;  %v3619_v56 = vadd.f32 %v3618_v55, %v5848_v9 }
 0x50b   :  { %v3751_v2 = vmax.f32 %v3749_v51, %v3750_v11  ;;  %v3763_v63 = vmax.f32 %v3613_v59, %v3617_v28 }
 0x50c   :  { %v3760_v17 = vmax.f32 %v3758_v24, %v3759_v32  ;;  %v3772_v10 = vmax.f32 %v3615_v12, %v3619_v56 }
 0x50d   :  { %v3752_v23 = vrot.slane %v3751_v2, 1 }
 0x50e   :  { %v3761_v20 = vrot.slane %v3760_v17, 1  ;;  %v3622_v31 = vpop.f32.mrb[148].mxu0 }
 0x50f   :  { %v3753_v5 = vmax.f32 %v3751_v2, %v3752_v23  ;;  %v3623_v48 = vadd.f32 %v3622_v31, %v5852_v50  ;;  %v3624_v8 = vpop.f32.mrb[149].mxu0 }
 0x510   :  { %v3762_v40 = vmax.f32 %v3760_v17, %v3761_v20  ;;  %v3625_v0 = vadd.f32 %v3624_v8, %v5855_v15  ;;  %v3626_v41 = vpop.f32.mrb[150].mxu0 }
 0x511   :  { %v3836_v38 = vsel %vm1124_vm5, %v3753_v5, %v3835_v18  ;;  %v3764_v34 = vmax.f32 %v3763_v63, %v3623_v48  ;;  %v3627_v9 = vadd.f32 %v3626_v41, %v5858_v53  ;;  %v3628_v30 = vpop.f32.mrb[151].mxu0 }
 0x512   :  { %v3843_v39 = vsel %vm1124_vm5, %v3762_v40, %v3842_v19  ;;  %v3773_v16 = vmax.f32 %v3772_v10, %v3625_v0  ;;  %v3629_v46 = vadd.f32 %v3628_v30, %v5860_v13 }
 0x513   :  { %v3765_v58 = vmax.f32 %v3764_v34, %v3627_v9 }
 0x514   :  { %v3774_v29 = vmax.f32 %v3773_v16, %v3629_v46 }
 0x515   :  { %v3766_v60 = vrot.slane %v3765_v58, 4 }
 0x516   :  { %v3775_v50 = vrot.slane %v3774_v29, 4  ;;  %v3632_v26 = vpop.f32.mrb[152].mxu0 }
 0x517   :  { %v3767_v49 = vmax.f32 %v3765_v58, %v3766_v60  ;;  %v3633_v15 = vadd.f32 %v3632_v26, %v5865_v57  ;;  %v3634_v3 = vpop.f32.mrb[153].mxu0 }
 0x518   :  { %v3776_v33 = vmax.f32 %v3774_v29, %v3775_v50  ;;  %v3635_v4 = vadd.f32 %v3634_v3, %v5869_v25  ;;  %v3636_v7 = vpop.f32.mrb[154].mxu0 }
 0x519   :  { %v3768_v53 = vrot.slane %v3767_v49, 2  ;;  %v3637_v47 = vadd.f32 %v3636_v7, %v5872_v44  ;;  %v3638_v35 = vpop.f32.mrb[155].mxu0 }
 0x51a   :  { %v3777_v18 = vrot.slane %v3776_v33, 2  ;;  %v3639_v13 = vadd.f32 %v3638_v35, %v5874_v52 }
 0x51b   :  { %v3769_v62 = vmax.f32 %v3767_v49, %v3768_v53  ;;  %v3781_v45 = vmax.f32 %v3633_v15, %v3637_v47 }
 0x51c   :  { %v3778_v1 = vmax.f32 %v3776_v33, %v3777_v18  ;;  %v3790_v19 = vmax.f32 %v3635_v4, %v3639_v13  ;;  %v3855_v4 = vld [vmem:[%s5936_s9] sm:$0x3] }
 0x51d   :  { %v3770_v61 = vrot.slane %v3769_v62, 1  ;;  %v3860_v47 = vrot.slane %v3855_v4, %v6059_v6  ;;  %v3864_v13 = vrot.slane %v3855_v4, %v6061_v27 }
 0x51e   :  { %v3779_v37 = vrot.slane %v3778_v1, 1  ;;  %v3642_v21 = vpop.f32.mrb[180].mxu1 }
 0x51f   :  { %v3771_v57 = vmax.f32 %v3769_v62, %v3770_v61  ;;  %v3782_v22 = vmax.f32 %v3781_v45, %v3642_v21  ;;  %v3644_v42 = vpop.f32.mrb[181].mxu1 }
 0x520   :  { %v3780_v14 = vmax.f32 %v3778_v1, %v3779_v37  ;;  %v3791_v25 = vmax.f32 %v3790_v19, %v3644_v42  ;;  %v3646_v54 = vpop.f32.mrb[182].mxu1 }
 0x521   :  { %v3837_v51 = vsel %vm1126_vm6, %v3771_v57, %v3836_v38  ;;  %v3783_v44 = vmax.f32 %v3782_v22, %v3646_v54  ;;  %v3648_v59 = vpop.f32.mrb[183].mxu1 }
 0x522   :  { %v3844_v43 = vsel %vm1126_vm6, %v3780_v14, %v3843_v39  ;;  %v3792_v52 = vmax.f32 %v3791_v25, %v3648_v59 }
 0x523   :  { %v3784_v24 = vrot.slane %v3783_v44, 4 }
 0x524   :  { %v3793_v12 = vrot.slane %v3792_v52, 4 }
 0x525   :  { %v3785_v36 = vmax.f32 %v3783_v44, %v3784_v24 }
 0x526   :  { %v3794_v11 = vmax.f32 %v3792_v52, %v3793_v12  ;;  %v3652_v28 = vpop.f32.mrb[184].mxu1 }
 0x527   :  { %v3786_v55 = vrot.slane %v3785_v36, 2  ;;  %v3654_v32 = vpop.f32.mrb[185].mxu1 }
 0x528   :  { %v3795_v56 = vrot.slane %v3794_v11, 2  ;;  %v3656_v2 = vpop.f32.mrb[186].mxu1 }
 0x529   :  { %v3787_v63 = vmax.f32 %v3785_v36, %v3786_v55  ;;  %v3799_v17 = vmax.f32 %v3652_v28, %v3656_v2  ;;  %v3658_v10 = vpop.f32.mrb[187].mxu1 }
 0x52a   :  { %v3796_v23 = vmax.f32 %v3794_v11, %v3795_v56  ;;  %v3808_v20 = vmax.f32 %v3654_v32, %v3658_v10 }
 0x52b   :  { %v3788_v31 = vrot.slane %v3787_v63, 1 }
 0x52c   :  { %v3797_v5 = vrot.slane %v3796_v23, 1 }
 0x52d   :  { %v3789_v48 = vmax.f32 %v3787_v63, %v3788_v31 }
 0x52e   :  { %v3798_v8 = vmax.f32 %v3796_v23, %v3797_v5  ;;  %v3662_v40 = vpop.f32.mrb[188].mxu1 }
 0x52f   :  { %v3838_v0 = vsel %vm1128_vm7, %v3789_v48, %v3837_v51  ;;  %v3800_v41 = vmax.f32 %v3799_v17, %v3662_v40  ;;  %v3664_v38 = vpop.f32.mrb[189].mxu1 }
 0x530   :  { %v3845_v34 = vsel %vm1128_vm7, %v3798_v8, %v3844_v43  ;;  %v3809_v9 = vmax.f32 %v3808_v20, %v3664_v38  ;;  %v3666_v30 = vpop.f32.mrb[190].mxu1 }
 0x531   :  { %v3801_v39 = vmax.f32 %v3800_v41, %v3666_v30  ;;  %v3668_v16 = vpop.f32.mrb[191].mxu1 }
 0x532   :  { %v3810_v46 = vmax.f32 %v3809_v9, %v3668_v16 }
 0x533   :  { %v3802_v58 = vrot.slane %v3801_v39, 4 }
 0x534   :  { %v3811_v29 = vrot.slane %v3810_v46, 4 }
 0x535   :  { %v3803_v60 = vmax.f32 %v3801_v39, %v3802_v58 }
 0x536   :  { %v3812_v50 = vmax.f32 %v3810_v46, %v3811_v29 }
 0x537   :  { %v3804_v26 = vrot.slane %v3803_v60, 2 }
 0x538   :  { %v3813_v49 = vrot.slane %v3812_v50, 2 }
 0x539   :  { %v3805_v15 = vmax.f32 %v3803_v60, %v3804_v26 }
 0x53a   :  { %v3814_v3 = vmax.f32 %v3812_v50, %v3813_v49 }
 0x53b   :  { %v3806_v33 = vrot.slane %v3805_v15, 1 }
 0x53c   :  { %v3815_v7 = vrot.slane %v3814_v3, 1 }
 0x53d   :  { %v3807_v53 = vmax.f32 %v3805_v15, %v3806_v33 }
 0x53e   :  { %v3816_v35 = vmax.f32 %v3814_v3, %v3815_v7 }
 0x53f   :  { %v3839_v18 = vsel %vm1130_vm8, %v3807_v53, %v3838_v0 }
 0x540   :  { %v3846_v62 = vsel %vm1130_vm8, %v3816_v35, %v3845_v34  ;;  %v3867_v45 = vadd.f32 %v3860_v47, %v3839_v18 }
 0x541   :  { %v3868_v1 = vadd.f32 %v3864_v13, %v3846_v62 }
 0x542   :  { %3869 = vst [vmem:[%s5937_s10] sm:$0xff] %v3867_v45 }
 0x543   :  { %3870 = vst [vmem:[%s5937_s10 + $0x8] sm:$0xff] %v3868_v1 }
 0x544   :  { %3875 = vsyncpa [#allocation4], 1 }
 0x545   :  { %3876 = vsyncpa [#allocation6], 1 }

</bundles_post_ra>
